<compile_context>
chip_gen: v6e
topology: v6e:2x2x1
jax: 0.10.0
libtpu: 0.0.40
codegen_flags: <defaults>
</compile_context>

<pallas_src>
import functools

import jax
import jax.numpy as jnp
from jax.experimental import pallas as pl
from jax.experimental.pallas import tpu as pltpu

BN_EPS = 1e-5
LANES = 128


def _round_up(x, m):
    return (x + m - 1) // m * m


def _cdiv(a, b):
    return -(-a // b)


def _vmem_limit(footprint_bytes):
    # Footprint-derived scoped-VMEM limit with generous headroom; capped well
    # under v7x's 64 MiB physical VMEM.
    return int(min(max(4 * footprint_bytes, 16 << 20), 48 << 20))


def _tile_m(M):
    # Balanced M tiles, multiple of 256, capped at 2048 rows.
    n_tiles = max(1, _cdiv(M, 2048))
    return _round_up(_cdiv(M, n_tiles), 256)


def _tile_n(N):
    n_tiles = max(1, _cdiv(N, 512))
    return _round_up(_cdiv(N, n_tiles), 8)


# ---------------- Pallas kernels ----------------

def fused_conv_bn_relu_kernel(p_ref, w_ref, gamma_ref, beta_ref, o_ref,
                              pre_ref, s1_ref, s2_ref, *, m_valid):
    """Per M-tile: bf16 matmul (f32 acc) into a resident VMEM scratch and
    per-channel sum / sum-of-squares accumulation. Last grid step folds the
    batch statistics into scale/shift and writes the relu'd bf16 output once.
    Zero-padded M rows contribute nothing to the stats; the division uses the
    true M (m_valid)."""
    i = pl.program_id(0)

    @pl.when(i == 0)
    def _init():
        s1_ref[...] = jnp.zeros_like(s1_ref)
        s2_ref[...] = jnp.zeros_like(s2_ref)

    acc = jnp.dot(p_ref[...], w_ref[...], preferred_element_type=jnp.float32)
    pre_ref[i] = acc
    s1_ref[...] += jnp.sum(acc, axis=0, keepdims=True)
    s2_ref[...] += jnp.sum(acc * acc, axis=0, keepdims=True)

    @pl.when(i == pl.num_programs(0) - 1)
    def _finalize():
        inv_m = 1.0 / m_valid
        mean = s1_ref[...] * inv_m
        var = jnp.maximum(s2_ref[...] * inv_m - mean * mean, 0.0)  # biased var
        scale = gamma_ref[...] * jax.lax.rsqrt(var + BN_EPS)       # (1, 128)
        shift = beta_ref[...] - mean * scale                       # (1, 128)
        y = pre_ref[...] * scale + shift                           # broadcast
        o_ref[...] = jnp.maximum(y, 0.0).astype(o_ref.dtype)


def linear_kernel(x_ref, w_ref, b_ref, o_ref):
    acc = jnp.dot(x_ref[...], w_ref[...], preferred_element_type=jnp.float32)
    o_ref[...] = acc + b_ref[...]


# ---------------- Pallas wrappers ----------------

def fused_conv_bn_relu(patches, w_mat, gamma, beta, m_valid, tm):
    """patches (M_pad, Kp) bf16, w_mat (Kp, 128) bf16, gamma/beta (1,128) f32
    -> relu(bn(patches @ w)) as (n_tiles, tm, 128) bf16."""
    M_pad, Kp = patches.shape
    n_tiles = M_pad // tm
    footprint = (M_pad * LANES * (4 + 2)      # f32 pre scratch + bf16 out
                 + 2 * tm * Kp * 2            # double-buffered patch tiles
                 + Kp * LANES * 2             # weight
                 + 4 * LANES * 4)             # gamma/beta/stats
    kernel = functools.partial(fused_conv_bn_relu_kernel, m_valid=float(m_valid))
    return pl.pallas_call(
        kernel,
        out_shape=jax.ShapeDtypeStruct((n_tiles, tm, LANES), jnp.bfloat16),
        grid=(n_tiles,),
        in_specs=[pl.BlockSpec((tm, Kp), lambda i: (i, 0)),
                  pl.BlockSpec((Kp, LANES), lambda i: (0, 0)),
                  pl.BlockSpec((1, LANES), lambda i: (0, 0)),
                  pl.BlockSpec((1, LANES), lambda i: (0, 0))],
        out_specs=pl.BlockSpec((n_tiles, tm, LANES), lambda i: (0, 0, 0)),
        scratch_shapes=[pltpu.VMEM((n_tiles, tm, LANES), jnp.float32),
                        pltpu.VMEM((1, LANES), jnp.float32),
                        pltpu.VMEM((1, LANES), jnp.float32)],
        compiler_params=pltpu.CompilerParams(
            dimension_semantics=("arbitrary",),   # stats reduction + resident out
            vmem_limit_bytes=_vmem_limit(footprint)),
    )(patches, w_mat, gamma, beta)


def linear(x, w_mat, b, tn):
    N_pad, F = x.shape
    n_tiles = N_pad // tn
    footprint = 2 * tn * F * 2 + F * LANES * 2 + 2 * tn * LANES * 4 + LANES * 4
    return pl.pallas_call(
        linear_kernel,
        out_shape=jax.ShapeDtypeStruct((N_pad, LANES), jnp.float32),
        grid=(n_tiles,),
        in_specs=[pl.BlockSpec((tn, F), lambda i: (i, 0)),
                  pl.BlockSpec((F, LANES), lambda i: (0, 0)),
                  pl.BlockSpec((1, LANES), lambda i: (0, 0))],
        out_specs=pl.BlockSpec((tn, LANES), lambda i: (i, 0)),
        compiler_params=pltpu.CompilerParams(
            dimension_semantics=("parallel",),
            vmem_limit_bytes=_vmem_limit(footprint)),
    )(x, w_mat, b)


# ---------------- Glue: im2col patch extraction ----------------

def im2col(x_nhwc, k, s):
    # TODO(synk): assemble the k*k patch columns inside the conv kernel from an
    # NHWC activation strip in VMEM (avoids materializing the k^2-inflated
    # patch matrix in HBM); kept as XLA-side glue for now.
    N, H, W, C = x_nhwc.shape
    Ho = (H - k) // s + 1
    Wo = (W - k) // s + 1
    cols = []
    for kh in range(k):
        for kw in range(k):
            cols.append(x_nhwc[:, kh:kh + s * (Ho - 1) + 1:s,
                               kw:kw + s * (Wo - 1) + 1:s, :])    # (N, Ho, Wo, C)
    p = jnp.stack(cols, axis=3)                                    # (N, Ho, Wo, k*k, C)
    return p.reshape(N * Ho * Wo, k * k * C), N, Ho, Wo


# ---------------- Model ----------------

def conv2d_size_out(size, kernel_size, stride):
    return (size - (kernel_size - 1) - 1) // stride + 1


CONV_CFG = [  # (Cin, Cout, kernel, stride)
    (4, 32, 8, 4),
    (32, 64, 4, 2),
    (64, 64, 3, 1),
]


def init_params(key, h, w, outputs):
    """Parameters in PyTorch layout (conv: OIHW, head: (out, C*H*W) CHW-flat)."""
    params = {}
    keys = jax.random.split(key, 8)
    for i, (cin, cout, k, _s) in enumerate(CONV_CFG, start=1):
        params[f"conv{i}_w"] = 0.05 * jax.random.normal(
            keys[2 * (i - 1)], (cout, cin, k, k), jnp.float32)
        # Conv bias exists in the PyTorch module but is exactly cancelled by
        # training-mode BatchNorm mean subtraction -> never fed to the kernel.
        params[f"conv{i}_b"] = 0.01 * jax.random.normal(
            keys[2 * (i - 1) + 1], (cout,), jnp.float32)
        params[f"bn{i}_gamma"] = jnp.ones((cout,), jnp.float32)   # PyTorch BN init
        params[f"bn{i}_beta"] = jnp.zeros((cout,), jnp.float32)

    convw = conv2d_size_out(conv2d_size_out(conv2d_size_out(w, 8, 4), 4, 2), 3, 1)
    convh = conv2d_size_out(conv2d_size_out(conv2d_size_out(h, 8, 4), 4, 2), 3, 1)
    lin_in = convw * convh * 64
    params["head_w"] = 0.05 * jax.random.normal(keys[6], (outputs, lin_in), jnp.float32)
    params["head_b"] = 0.01 * jax.random.normal(keys[7], (outputs,), jnp.float32)
    return params


def prepare_params(params, h, w, outputs):
    """One-time packing into kernel-friendly layout:
       * conv weights -> (Kp, 128) bf16 with Kp = round_up(KH*KW*Cin, 128) and
         Cout zero-padded to 128 lanes
       * gamma/beta   -> (1, 128) f32 (zero-padded)
       * head weight  -> CHW->HWC permuted, (F, 128) bf16; bias (1, 128) f32.
    """
    prep = {}
    for i, (cin, cout, k, _s) in enumerate(CONV_CFG, start=1):
        K = k * k * cin
        Kp = _round_up(K, LANES)
        wm = jnp.transpose(params[f"conv{i}_w"], (2, 3, 1, 0)).reshape(K, cout)
        prep[f"conv{i}_w"] = jnp.pad(
            wm, ((0, Kp - K), (0, LANES - cout))).astype(jnp.bfloat16)
        prep[f"bn{i}_gamma"] = jnp.pad(
            params[f"bn{i}_gamma"], (0, LANES - cout)).reshape(1, LANES)
        prep[f"bn{i}_beta"] = jnp.pad(
            params[f"bn{i}_beta"], (0, LANES - cout)).reshape(1, LANES)

    convw = conv2d_size_out(conv2d_size_out(conv2d_size_out(w, 8, 4), 4, 2), 3, 1)
    convh = conv2d_size_out(conv2d_size_out(conv2d_size_out(h, 8, 4), 4, 2), 3, 1)
    cout = CONV_CFG[-1][1]
    # Fold PyTorch's CHW flatten into the head weight so the head consumes the
    # NHWC flatten directly (no runtime activation transpose).
    wh = params["head_w"].reshape(outputs, cout, convh, convw)
    wh = jnp.transpose(wh, (2, 3, 1, 0)).reshape(convh * convw * cout, outputs)
    prep["head_w"] = jnp.pad(wh, ((0, 0), (0, LANES - outputs))).astype(jnp.bfloat16)
    prep["head_b"] = jnp.pad(params["head_b"],
                             (0, LANES - outputs)).reshape(1, LANES).astype(jnp.float32)
    return prep


def conv_bn_relu_layer(x_nhwc, w_mat, gamma, beta, k, s, cout):
    patches, N, Ho, Wo = im2col(x_nhwc, k, s)
    M, K = patches.shape
    Kp = w_mat.shape[0]
    tm = _tile_m(M)
    M_pad = _round_up(M, tm)
    if M_pad != M or Kp != K:
        # Zero rows/cols: no effect on matmul result or BN stats (true-M divide).
        patches = jnp.pad(patches, ((0, M_pad - M), (0, Kp - K)))
    y = fused_conv_bn_relu(patches, w_mat, gamma, beta, M, tm)
    y = y.reshape(M_pad, LANES)[:M, :cout]
    return y.reshape(N, Ho, Wo, cout)


def dqn_forward(x_nchw, prep, outputs):
    # TODO(synk): for small-batch inference all weights (<2 MB) + the largest
    # activation fit VMEM; a single whole-forward pallas_call (with in-kernel
    # patch assembly) would remove the remaining launches and XLA glue.
    x = jnp.transpose(x_nchw, (0, 2, 3, 1)).astype(jnp.bfloat16)  # NCHW -> NHWC
    for i, (_cin, cout, k, s) in enumerate(CONV_CFG, start=1):
        x = conv_bn_relu_layer(x, prep[f"conv{i}_w"], prep[f"bn{i}_gamma"],
                               prep[f"bn{i}_beta"], k, s, cout)
    N = x.shape[0]
    flat = x.reshape(N, -1)          # NHWC flatten; head_w is permuted to match
    tn = _tile_n(N)
    N_pad = _round_up(N, tn)
    if N_pad != N:
        flat = jnp.pad(flat, ((0, N_pad - N), (0, 0)))
    out = linear(flat, prep["head_w"], prep["head_b"], tn)
    return out[:N, :outputs]


# ---------------- Pure-JAX reference (PyTorch train()-mode semantics) ----------------

def reference_forward(x_nchw, params, outputs):
    x = x_nchw.astype(jnp.float32)
    for i, (_cin, cout, k, s) in enumerate(CONV_CFG, start=1):
        y = jax.lax.conv_general_dilated(
            x, params[f"conv{i}_w"], window_strides=(s, s), padding="VALID",
            dimension_numbers=("NCHW", "OIHW", "NCHW"))
        y = y + params[f"conv{i}_b"].reshape(1, cout, 1, 1)
        mean = jnp.mean(y, axis=(0, 2, 3), keepdims=True)
        var = jnp.mean(jnp.square(y - mean), axis=(0, 2, 3), keepdims=True)  # biased
        y = (y - mean) * jax.lax.rsqrt(var + BN_EPS)
        y = y * params[f"bn{i}_gamma"].reshape(1, cout, 1, 1) \
              + params[f"bn{i}_beta"].reshape(1, cout, 1, 1)
        x = jnp.maximum(y, 0.0)
    flat = x.reshape(x.shape[0], -1)                 # NCHW flatten, like .view
    return flat @ params["head_w"].T + params["head_b"]


if __name__ == "__main__":
    key = jax.random.PRNGKey(0)
    k_param, k_x = jax.random.split(key)

    batch, h, w, outputs = 2, 44, 44, 6   # small but valid through the 3 strided convs
    params = init_params(k_param, h, w, outputs)
    prep = prepare_params(params, h, w, outputs)
    x = jax.random.normal(k_x, (batch, 4, h, w), jnp.float32)  # NCHW like PyTorch

    fwd = jax.jit(dqn_forward, static_argnames=("outputs",))
    out = jax.block_until_ready(fwd(x, prep, outputs))
    assert out.shape == (batch, outputs), out.shape
    assert bool(jnp.all(jnp.isfinite(out)))

    # Loose tolerance: kernel path uses bf16 MXU inputs / bf16 inter-layer
    # activations vs the all-f32 reference.
    ref = reference_forward(x, params, outputs)
    err = float(jnp.max(jnp.abs(out - ref)))
    tol = 0.1 + 0.05 * float(jnp.max(jnp.abs(ref)))
    assert err < tol, f"max abs error {err} (tol {tol})"
    print("KERNEL_OK")
</pallas_src>

<mosaic_0001>
module attributes {stable_mosaic.version = 11 : i64} {
  func.func @fused_conv_bn_relu_kernel(%arg0: i32, %arg1: memref<256x256xbf16, #tpu.memory_space<vmem>>, %arg2: memref<256x128xbf16, #tpu.memory_space<vmem>>, %arg3: memref<1x128xf32, #tpu.memory_space<vmem>>, %arg4: memref<1x128xf32, #tpu.memory_space<vmem>>, %arg5: memref<1x256x128xbf16, #tpu.memory_space<vmem>>, %arg6: memref<1x256x128xf32, #tpu.memory_space<vmem>>, %arg7: memref<1x128xf32, #tpu.memory_space<vmem>>, %arg8: memref<1x128xf32, #tpu.memory_space<vmem>>) attributes {dimension_semantics = [#tpu.dimension_semantics<arbitrary>], iteration_bounds = array<i64: 1>, scalar_prefetch = 0 : i64, scratch_operands = 3 : i64, tpu.core_type = #tpu.core_type<tc>, window_params = [{transform_indices = @transform_0, window_bounds = array<i64: 256, 256>}, {pipeline_mode = #tpu.pipeline_mode<synchronous>, transform_indices = @transform_1, window_bounds = array<i64: 256, 128>}, {pipeline_mode = #tpu.pipeline_mode<synchronous>, transform_indices = @transform_2, window_bounds = array<i64: 1, 128>}, {pipeline_mode = #tpu.pipeline_mode<synchronous>, transform_indices = @transform_3, window_bounds = array<i64: 1, 128>}, {pipeline_mode = #tpu.pipeline_mode<synchronous>, transform_indices = @transform_4, window_bounds = array<i64: 1, 256, 128>}]} {
    %c0_i32 = arith.constant 0 : i32
    %0 = arith.cmpi eq, %arg0, %c0_i32 : i32
    %1 = arith.extui %0 : i1 to i32
    %c0_i32_0 = arith.constant 0 : i32
    %2 = arith.cmpi ne, %1, %c0_i32_0 : i32
    scf.if %2 {
      %cst_18 = arith.constant 0.000000e+00 : f32
      %24 = vector.broadcast %cst_18 : f32 to vector<1x128xf32>
      %c0_19 = arith.constant 0 : index
      %c0_20 = arith.constant 0 : index
      %25 = vector.load %arg7[%c0_19, %c0_20] : memref<1x128xf32, #tpu.memory_space<vmem>>, vector<1x128xf32>
      tpu.vector_store %arg7[%c0_19, %c0_20], %24 {strides = array<i32>} : memref<1x128xf32, #tpu.memory_space<vmem>>, vector<1x128xf32>,
      %cst_21 = arith.constant 0.000000e+00 : f32
      %26 = vector.broadcast %cst_21 : f32 to vector<1x128xf32>
      %c0_22 = arith.constant 0 : index
      %c0_23 = arith.constant 0 : index
      %27 = vector.load %arg8[%c0_22, %c0_23] : memref<1x128xf32, #tpu.memory_space<vmem>>, vector<1x128xf32>
      tpu.vector_store %arg8[%c0_22, %c0_23], %26 {strides = array<i32>} : memref<1x128xf32, #tpu.memory_space<vmem>>, vector<1x128xf32>,
    } else {
    }
    %c0 = arith.constant 0 : index
    %c0_1 = arith.constant 0 : index
    %3 = vector.load %arg1[%c0, %c0_1] : memref<256x256xbf16, #tpu.memory_space<vmem>>, vector<256x256xbf16>
    %c0_2 = arith.constant 0 : index
    %c0_3 = arith.constant 0 : index
    %4 = vector.load %arg2[%c0_2, %c0_3] : memref<256x128xbf16, #tpu.memory_space<vmem>>, vector<256x128xbf16>
    %cst = arith.constant dense<0.000000e+00> : vector<256x128xf32>
    %5 = tpu.matmul %3, %4, %cst {dimension_numbers = #tpu.dot_dimension_numbers<[1], [0], [0], [1], [0, 0, 1, 1], [], []>} : vector<256x256xbf16>, vector<256x128xbf16>, vector<256x128xf32> -> vector<256x128xf32>
    %6 = arith.index_cast %arg0 : i32 to index
    %c0_4 = arith.constant 0 : index
    %c0_5 = arith.constant 0 : index
    %7 = vector.load %arg6[%6, %c0_4, %c0_5] : memref<1x256x128xf32, #tpu.memory_space<vmem>>, vector<1x256x128xf32>
    %8 = vector.shape_cast %7 : vector<1x256x128xf32> to vector<256x128xf32>
    %9 = vector.shape_cast %5 : vector<256x128xf32> to vector<1x256x128xf32>
    tpu.vector_store %arg6[%6, %c0_4, %c0_5], %9 {strides = array<i32>} : memref<1x256x128xf32, #tpu.memory_space<vmem>>, vector<1x256x128xf32>,
    %c0_6 = arith.constant 0 : index
    %c0_7 = arith.constant 0 : index
    %10 = vector.load %arg7[%c0_6, %c0_7] : memref<1x128xf32, #tpu.memory_space<vmem>>, vector<1x128xf32>
    %cst_8 = arith.constant dense<0.000000e+00> : vector<128xf32>
    %11 = vector.multi_reduction <add>, %5, %cst_8 [0] : vector<256x128xf32> to vector<128xf32>
    %12 = vector.shape_cast %11 : vector<128xf32> to vector<1x128xf32>
    %13 = arith.addf %10, %12 : vector<1x128xf32>
    %c0_9 = arith.constant 0 : index
    %c0_10 = arith.constant 0 : index
    %14 = vector.load %arg7[%c0_9, %c0_10] : memref<1x128xf32, #tpu.memory_space<vmem>>, vector<1x128xf32>
    tpu.vector_store %arg7[%c0_9, %c0_10], %13 {strides = array<i32>} : memref<1x128xf32, #tpu.memory_space<vmem>>, vector<1x128xf32>,
    %c0_11 = arith.constant 0 : index
    %c0_12 = arith.constant 0 : index
    %15 = vector.load %arg8[%c0_11, %c0_12] : memref<1x128xf32, #tpu.memory_space<vmem>>, vector<1x128xf32>
    %16 = arith.mulf %5, %5 : vector<256x128xf32>
    %cst_13 = arith.constant dense<0.000000e+00> : vector<128xf32>
    %17 = vector.multi_reduction <add>, %16, %cst_13 [0] : vector<256x128xf32> to vector<128xf32>
    %18 = vector.shape_cast %17 : vector<128xf32> to vector<1x128xf32>
    %19 = arith.addf %15, %18 : vector<1x128xf32>
    %c0_14 = arith.constant 0 : index
    %c0_15 = arith.constant 0 : index
    %20 = vector.load %arg8[%c0_14, %c0_15] : memref<1x128xf32, #tpu.memory_space<vmem>>, vector<1x128xf32>
    tpu.vector_store %arg8[%c0_14, %c0_15], %19 {strides = array<i32>} : memref<1x128xf32, #tpu.memory_space<vmem>>, vector<1x128xf32>,
    %c0_i32_16 = arith.constant 0 : i32
    %21 = arith.cmpi eq, %arg0, %c0_i32_16 : i32
    %22 = arith.extui %21 : i1 to i32
    %c0_i32_17 = arith.constant 0 : i32
    %23 = arith.cmpi ne, %22, %c0_i32_17 : i32
    scf.if %23 {
      %c0_18 = arith.constant 0 : index
      %c0_19 = arith.constant 0 : index
      %24 = vector.load %arg7[%c0_18, %c0_19] : memref<1x128xf32, #tpu.memory_space<vmem>>, vector<1x128xf32>
      %cst_20 = arith.constant 5.000000e-03 : f32
      %25 = vector.broadcast %cst_20 : f32 to vector<1x128xf32>
      %26 = arith.mulf %24, %25 : vector<1x128xf32>
      %c0_21 = arith.constant 0 : index
      %c0_22 = arith.constant 0 : index
      %27 = vector.load %arg8[%c0_21, %c0_22] : memref<1x128xf32, #tpu.memory_space<vmem>>, vector<1x128xf32>
      %cst_23 = arith.constant 5.000000e-03 : f32
      %28 = vector.broadcast %cst_23 : f32 to vector<1x128xf32>
      %29 = arith.mulf %27, %28 : vector<1x128xf32>
      %30 = arith.mulf %26, %26 : vector<1x128xf32>
      %31 = arith.subf %29, %30 : vector<1x128xf32>
      %cst_24 = arith.constant 0.000000e+00 : f32
      %32 = vector.broadcast %cst_24 : f32 to vector<1x128xf32>
      %33 = arith.maximumf %31, %32 : vector<1x128xf32>
      %c0_25 = arith.constant 0 : index
      %c0_26 = arith.constant 0 : index
      %34 = vector.load %arg3[%c0_25, %c0_26] : memref<1x128xf32, #tpu.memory_space<vmem>>, vector<1x128xf32>
      %cst_27 = arith.constant 9.99999974E-6 : f32
      %35 = vector.broadcast %cst_27 : f32 to vector<1x128xf32>
      %36 = arith.addf %33, %35 : vector<1x128xf32>
      %37 = math.rsqrt %36 : vector<1x128xf32>
      %38 = arith.mulf %34, %37 : vector<1x128xf32>
      %c0_28 = arith.constant 0 : index
      %c0_29 = arith.constant 0 : index
      %39 = vector.load %arg4[%c0_28, %c0_29] : memref<1x128xf32, #tpu.memory_space<vmem>>, vector<1x128xf32>
      %40 = arith.mulf %26, %38 : vector<1x128xf32>
      %41 = arith.subf %39, %40 : vector<1x128xf32>
      %c0_30 = arith.constant 0 : index
      %c0_31 = arith.constant 0 : index
      %c0_32 = arith.constant 0 : index
      %42 = vector.load %arg6[%c0_30, %c0_31, %c0_32] : memref<1x256x128xf32, #tpu.memory_space<vmem>>, vector<1x256x128xf32>
      %43 = vector.shape_cast %38 : vector<1x128xf32> to vector<1x1x128xf32>
      %44 = vector.broadcast %43 : vector<1x1x128xf32> to vector<1x256x128xf32>
      %45 = arith.mulf %42, %44 : vector<1x256x128xf32>
      %46 = vector.shape_cast %41 : vector<1x128xf32> to vector<1x1x128xf32>
      %47 = vector.broadcast %46 : vector<1x1x128xf32> to vector<1x256x128xf32>
      %48 = arith.addf %45, %47 : vector<1x256x128xf32>
      %cst_33 = arith.constant 0.000000e+00 : f32
      %49 = vector.broadcast %cst_33 : f32 to vector<1x256x128xf32>
      %50 = arith.maximumf %48, %49 : vector<1x256x128xf32>
      %51 = arith.truncf %50 : vector<1x256x128xf32> to vector<1x256x128xbf16>
      %c0_34 = arith.constant 0 : index
      %c0_35 = arith.constant 0 : index
      %c0_36 = arith.constant 0 : index
      %52 = vector.load %arg5[%c0_34, %c0_35, %c0_36] : memref<1x256x128xbf16, #tpu.memory_space<vmem>>, vector<1x256x128xbf16>
      tpu.vector_store %arg5[%c0_34, %c0_35, %c0_36], %51 {strides = array<i32>} : memref<1x256x128xbf16, #tpu.memory_space<vmem>>, vector<1x256x128xbf16>,
    } else {
    }
    return
  }
  func.func @transform_0(%arg0: i32) -> (i32, i32) {
    %c0_i32 = arith.constant 0 : i32
    %c0_i32_0 = arith.constant 0 : i32
    return %arg0, %c0_i32 : i32, i32
  }
  func.func @transform_1(%arg0: i32) -> (i32, i32) {
    %c0_i32 = arith.constant 0 : i32
    %c0_i32_0 = arith.constant 0 : i32
    %c0_i32_1 = arith.constant 0 : i32
    return %c0_i32, %c0_i32_0 : i32, i32
  }
  func.func @transform_2(%arg0: i32) -> (i32, i32) {
    %c0_i32 = arith.constant 0 : i32
    %c0_i32_0 = arith.constant 0 : i32
    %c0_i32_1 = arith.constant 0 : i32
    return %c0_i32, %c0_i32_0 : i32, i32
  }
  func.func @transform_3(%arg0: i32) -> (i32, i32) {
    %c0_i32 = arith.constant 0 : i32
    %c0_i32_0 = arith.constant 0 : i32
    %c0_i32_1 = arith.constant 0 : i32
    return %c0_i32, %c0_i32_0 : i32, i32
  }
  func.func @transform_4(%arg0: i32) -> (i32, i32, i32) {
    %c0_i32 = arith.constant 0 : i32
    %c0_i32_0 = arith.constant 0 : i32
    %c0_i32_1 = arith.constant 0 : i32
    %c0_i32_2 = arith.constant 0 : i32
    return %c0_i32, %c0_i32_0, %c0_i32_1 : i32, i32, i32
  }
}

module attributes {stable_mosaic.version = 11 : i64} {
  func.func @fused_conv_bn_relu_kernel(%arg0: i32, %arg1: memref<256x512xbf16, #tpu.memory_space<vmem>>, %arg2: memref<512x128xbf16, #tpu.memory_space<vmem>>, %arg3: memref<1x128xf32, #tpu.memory_space<vmem>>, %arg4: memref<1x128xf32, #tpu.memory_space<vmem>>, %arg5: memref<1x256x128xbf16, #tpu.memory_space<vmem>>, %arg6: memref<1x256x128xf32, #tpu.memory_space<vmem>>, %arg7: memref<1x128xf32, #tpu.memory_space<vmem>>, %arg8: memref<1x128xf32, #tpu.memory_space<vmem>>) attributes {dimension_semantics = [#tpu.dimension_semantics<arbitrary>], iteration_bounds = array<i64: 1>, scalar_prefetch = 0 : i64, scratch_operands = 3 : i64, tpu.core_type = #tpu.core_type<tc>, window_params = [{transform_indices = @transform_0, window_bounds = array<i64: 256, 512>}, {pipeline_mode = #tpu.pipeline_mode<synchronous>, transform_indices = @transform_1, window_bounds = array<i64: 512, 128>}, {pipeline_mode = #tpu.pipeline_mode<synchronous>, transform_indices = @transform_2, window_bounds = array<i64: 1, 128>}, {pipeline_mode = #tpu.pipeline_mode<synchronous>, transform_indices = @transform_3, window_bounds = array<i64: 1, 128>}, {pipeline_mode = #tpu.pipeline_mode<synchronous>, transform_indices = @transform_4, window_bounds = array<i64: 1, 256, 128>}]} {
    %c0_i32 = arith.constant 0 : i32
    %0 = arith.cmpi eq, %arg0, %c0_i32 : i32
    %1 = arith.extui %0 : i1 to i32
    %c0_i32_0 = arith.constant 0 : i32
    %2 = arith.cmpi ne, %1, %c0_i32_0 : i32
    scf.if %2 {
      %cst_18 = arith.constant 0.000000e+00 : f32
      %24 = vector.broadcast %cst_18 : f32 to vector<1x128xf32>
      %c0_19 = arith.constant 0 : index
      %c0_20 = arith.constant 0 : index
      %25 = vector.load %arg7[%c0_19, %c0_20] : memref<1x128xf32, #tpu.memory_space<vmem>>, vector<1x128xf32>
      tpu.vector_store %arg7[%c0_19, %c0_20], %24 {strides = array<i32>} : memref<1x128xf32, #tpu.memory_space<vmem>>, vector<1x128xf32>,
      %cst_21 = arith.constant 0.000000e+00 : f32
      %26 = vector.broadcast %cst_21 : f32 to vector<1x128xf32>
      %c0_22 = arith.constant 0 : index
      %c0_23 = arith.constant 0 : index
      %27 = vector.load %arg8[%c0_22, %c0_23] : memref<1x128xf32, #tpu.memory_space<vmem>>, vector<1x128xf32>
      tpu.vector_store %arg8[%c0_22, %c0_23], %26 {strides = array<i32>} : memref<1x128xf32, #tpu.memory_space<vmem>>, vector<1x128xf32>,
    } else {
    }
    %c0 = arith.constant 0 : index
    %c0_1 = arith.constant 0 : index
    %3 = vector.load %arg1[%c0, %c0_1] : memref<256x512xbf16, #tpu.memory_space<vmem>>, vector<256x512xbf16>
    %c0_2 = arith.constant 0 : index
    %c0_3 = arith.constant 0 : index
    %4 = vector.load %arg2[%c0_2, %c0_3] : memref<512x128xbf16, #tpu.memory_space<vmem>>, vector<512x128xbf16>
    %cst = arith.constant dense<0.000000e+00> : vector<256x128xf32>
    %5 = tpu.matmul %3, %4, %cst {dimension_numbers = #tpu.dot_dimension_numbers<[1], [0], [0], [1], [0, 0, 1, 1], [], []>} : vector<256x512xbf16>, vector<512x128xbf16>, vector<256x128xf32> -> vector<256x128xf32>
    %6 = arith.index_cast %arg0 : i32 to index
    %c0_4 = arith.constant 0 : index
    %c0_5 = arith.constant 0 : index
    %7 = vector.load %arg6[%6, %c0_4, %c0_5] : memref<1x256x128xf32, #tpu.memory_space<vmem>>, vector<1x256x128xf32>
    %8 = vector.shape_cast %7 : vector<1x256x128xf32> to vector<256x128xf32>
    %9 = vector.shape_cast %5 : vector<256x128xf32> to vector<1x256x128xf32>
    tpu.vector_store %arg6[%6, %c0_4, %c0_5], %9 {strides = array<i32>} : memref<1x256x128xf32, #tpu.memory_space<vmem>>, vector<1x256x128xf32>,
    %c0_6 = arith.constant 0 : index
    %c0_7 = arith.constant 0 : index
    %10 = vector.load %arg7[%c0_6, %c0_7] : memref<1x128xf32, #tpu.memory_space<vmem>>, vector<1x128xf32>
    %cst_8 = arith.constant dense<0.000000e+00> : vector<128xf32>
    %11 = vector.multi_reduction <add>, %5, %cst_8 [0] : vector<256x128xf32> to vector<128xf32>
    %12 = vector.shape_cast %11 : vector<128xf32> to vector<1x128xf32>
    %13 = arith.addf %10, %12 : vector<1x128xf32>
    %c0_9 = arith.constant 0 : index
    %c0_10 = arith.constant 0 : index
    %14 = vector.load %arg7[%c0_9, %c0_10] : memref<1x128xf32, #tpu.memory_space<vmem>>, vector<1x128xf32>
    tpu.vector_store %arg7[%c0_9, %c0_10], %13 {strides = array<i32>} : memref<1x128xf32, #tpu.memory_space<vmem>>, vector<1x128xf32>,
    %c0_11 = arith.constant 0 : index
    %c0_12 = arith.constant 0 : index
    %15 = vector.load %arg8[%c0_11, %c0_12] : memref<1x128xf32, #tpu.memory_space<vmem>>, vector<1x128xf32>
    %16 = arith.mulf %5, %5 : vector<256x128xf32>
    %cst_13 = arith.constant dense<0.000000e+00> : vector<128xf32>
    %17 = vector.multi_reduction <add>, %16, %cst_13 [0] : vector<256x128xf32> to vector<128xf32>
    %18 = vector.shape_cast %17 : vector<128xf32> to vector<1x128xf32>
    %19 = arith.addf %15, %18 : vector<1x128xf32>
    %c0_14 = arith.constant 0 : index
    %c0_15 = arith.constant 0 : index
    %20 = vector.load %arg8[%c0_14, %c0_15] : memref<1x128xf32, #tpu.memory_space<vmem>>, vector<1x128xf32>
    tpu.vector_store %arg8[%c0_14, %c0_15], %19 {strides = array<i32>} : memref<1x128xf32, #tpu.memory_space<vmem>>, vector<1x128xf32>,
    %c0_i32_16 = arith.constant 0 : i32
    %21 = arith.cmpi eq, %arg0, %c0_i32_16 : i32
    %22 = arith.extui %21 : i1 to i32
    %c0_i32_17 = arith.constant 0 : i32
    %23 = arith.cmpi ne, %22, %c0_i32_17 : i32
    scf.if %23 {
      %c0_18 = arith.constant 0 : index
      %c0_19 = arith.constant 0 : index
      %24 = vector.load %arg7[%c0_18, %c0_19] : memref<1x128xf32, #tpu.memory_space<vmem>>, vector<1x128xf32>
      %cst_20 = arith.constant 3.125000e-02 : f32
      %25 = vector.broadcast %cst_20 : f32 to vector<1x128xf32>
      %26 = arith.mulf %24, %25 : vector<1x128xf32>
      %c0_21 = arith.constant 0 : index
      %c0_22 = arith.constant 0 : index
      %27 = vector.load %arg8[%c0_21, %c0_22] : memref<1x128xf32, #tpu.memory_space<vmem>>, vector<1x128xf32>
      %cst_23 = arith.constant 3.125000e-02 : f32
      %28 = vector.broadcast %cst_23 : f32 to vector<1x128xf32>
      %29 = arith.mulf %27, %28 : vector<1x128xf32>
      %30 = arith.mulf %26, %26 : vector<1x128xf32>
      %31 = arith.subf %29, %30 : vector<1x128xf32>
      %cst_24 = arith.constant 0.000000e+00 : f32
      %32 = vector.broadcast %cst_24 : f32 to vector<1x128xf32>
      %33 = arith.maximumf %31, %32 : vector<1x128xf32>
      %c0_25 = arith.constant 0 : index
      %c0_26 = arith.constant 0 : index
      %34 = vector.load %arg3[%c0_25, %c0_26] : memref<1x128xf32, #tpu.memory_space<vmem>>, vector<1x128xf32>
      %cst_27 = arith.constant 9.99999974E-6 : f32
      %35 = vector.broadcast %cst_27 : f32 to vector<1x128xf32>
      %36 = arith.addf %33, %35 : vector<1x128xf32>
      %37 = math.rsqrt %36 : vector<1x128xf32>
      %38 = arith.mulf %34, %37 : vector<1x128xf32>
      %c0_28 = arith.constant 0 : index
      %c0_29 = arith.constant 0 : index
      %39 = vector.load %arg4[%c0_28, %c0_29] : memref<1x128xf32, #tpu.memory_space<vmem>>, vector<1x128xf32>
      %40 = arith.mulf %26, %38 : vector<1x128xf32>
      %41 = arith.subf %39, %40 : vector<1x128xf32>
      %c0_30 = arith.constant 0 : index
      %c0_31 = arith.constant 0 : index
      %c0_32 = arith.constant 0 : index
      %42 = vector.load %arg6[%c0_30, %c0_31, %c0_32] : memref<1x256x128xf32, #tpu.memory_space<vmem>>, vector<1x256x128xf32>
      %43 = vector.shape_cast %38 : vector<1x128xf32> to vector<1x1x128xf32>
      %44 = vector.broadcast %43 : vector<1x1x128xf32> to vector<1x256x128xf32>
      %45 = arith.mulf %42, %44 : vector<1x256x128xf32>
      %46 = vector.shape_cast %41 : vector<1x128xf32> to vector<1x1x128xf32>
      %47 = vector.broadcast %46 : vector<1x1x128xf32> to vector<1x256x128xf32>
      %48 = arith.addf %45, %47 : vector<1x256x128xf32>
      %cst_33 = arith.constant 0.000000e+00 : f32
      %49 = vector.broadcast %cst_33 : f32 to vector<1x256x128xf32>
      %50 = arith.maximumf %48, %49 : vector<1x256x128xf32>
      %51 = arith.truncf %50 : vector<1x256x128xf32> to vector<1x256x128xbf16>
      %c0_34 = arith.constant 0 : index
      %c0_35 = arith.constant 0 : index
      %c0_36 = arith.constant 0 : index
      %52 = vector.load %arg5[%c0_34, %c0_35, %c0_36] : memref<1x256x128xbf16, #tpu.memory_space<vmem>>, vector<1x256x128xbf16>
      tpu.vector_store %arg5[%c0_34, %c0_35, %c0_36], %51 {strides = array<i32>} : memref<1x256x128xbf16, #tpu.memory_space<vmem>>, vector<1x256x128xbf16>,
    } else {
    }
    return
  }
  func.func @transform_0(%arg0: i32) -> (i32, i32) {
    %c0_i32 = arith.constant 0 : i32
    %c0_i32_0 = arith.constant 0 : i32
    return %arg0, %c0_i32 : i32, i32
  }
  func.func @transform_1(%arg0: i32) -> (i32, i32) {
    %c0_i32 = arith.constant 0 : i32
    %c0_i32_0 = arith.constant 0 : i32
    %c0_i32_1 = arith.constant 0 : i32
    return %c0_i32, %c0_i32_0 : i32, i32
  }
  func.func @transform_2(%arg0: i32) -> (i32, i32) {
    %c0_i32 = arith.constant 0 : i32
    %c0_i32_0 = arith.constant 0 : i32
    %c0_i32_1 = arith.constant 0 : i32
    return %c0_i32, %c0_i32_0 : i32, i32
  }
  func.func @transform_3(%arg0: i32) -> (i32, i32) {
    %c0_i32 = arith.constant 0 : i32
    %c0_i32_0 = arith.constant 0 : i32
    %c0_i32_1 = arith.constant 0 : i32
    return %c0_i32, %c0_i32_0 : i32, i32
  }
  func.func @transform_4(%arg0: i32) -> (i32, i32, i32) {
    %c0_i32 = arith.constant 0 : i32
    %c0_i32_0 = arith.constant 0 : i32
    %c0_i32_1 = arith.constant 0 : i32
    %c0_i32_2 = arith.constant 0 : i32
    return %c0_i32, %c0_i32_0, %c0_i32_1 : i32, i32, i32
  }
}

module attributes {stable_mosaic.version = 11 : i64} {
  func.func @fused_conv_bn_relu_kernel(%arg0: i32, %arg1: memref<256x640xbf16, #tpu.memory_space<vmem>>, %arg2: memref<640x128xbf16, #tpu.memory_space<vmem>>, %arg3: memref<1x128xf32, #tpu.memory_space<vmem>>, %arg4: memref<1x128xf32, #tpu.memory_space<vmem>>, %arg5: memref<1x256x128xbf16, #tpu.memory_space<vmem>>, %arg6: memref<1x256x128xf32, #tpu.memory_space<vmem>>, %arg7: memref<1x128xf32, #tpu.memory_space<vmem>>, %arg8: memref<1x128xf32, #tpu.memory_space<vmem>>) attributes {dimension_semantics = [#tpu.dimension_semantics<arbitrary>], iteration_bounds = array<i64: 1>, scalar_prefetch = 0 : i64, scratch_operands = 3 : i64, tpu.core_type = #tpu.core_type<tc>, window_params = [{transform_indices = @transform_0, window_bounds = array<i64: 256, 640>}, {pipeline_mode = #tpu.pipeline_mode<synchronous>, transform_indices = @transform_1, window_bounds = array<i64: 640, 128>}, {pipeline_mode = #tpu.pipeline_mode<synchronous>, transform_indices = @transform_2, window_bounds = array<i64: 1, 128>}, {pipeline_mode = #tpu.pipeline_mode<synchronous>, transform_indices = @transform_3, window_bounds = array<i64: 1, 128>}, {pipeline_mode = #tpu.pipeline_mode<synchronous>, transform_indices = @transform_4, window_bounds = array<i64: 1, 256, 128>}]} {
    %c0_i32 = arith.constant 0 : i32
    %0 = arith.cmpi eq, %arg0, %c0_i32 : i32
    %1 = arith.extui %0 : i1 to i32
    %c0_i32_0 = arith.constant 0 : i32
    %2 = arith.cmpi ne, %1, %c0_i32_0 : i32
    scf.if %2 {
      %cst_18 = arith.constant 0.000000e+00 : f32
      %24 = vector.broadcast %cst_18 : f32 to vector<1x128xf32>
      %c0_19 = arith.constant 0 : index
      %c0_20 = arith.constant 0 : index
      %25 = vector.load %arg7[%c0_19, %c0_20] : memref<1x128xf32, #tpu.memory_space<vmem>>, vector<1x128xf32>
      tpu.vector_store %arg7[%c0_19, %c0_20], %24 {strides = array<i32>} : memref<1x128xf32, #tpu.memory_space<vmem>>, vector<1x128xf32>,
      %cst_21 = arith.constant 0.000000e+00 : f32
      %26 = vector.broadcast %cst_21 : f32 to vector<1x128xf32>
      %c0_22 = arith.constant 0 : index
      %c0_23 = arith.constant 0 : index
      %27 = vector.load %arg8[%c0_22, %c0_23] : memref<1x128xf32, #tpu.memory_space<vmem>>, vector<1x128xf32>
      tpu.vector_store %arg8[%c0_22, %c0_23], %26 {strides = array<i32>} : memref<1x128xf32, #tpu.memory_space<vmem>>, vector<1x128xf32>,
    } else {
    }
    %c0 = arith.constant 0 : index
    %c0_1 = arith.constant 0 : index
    %3 = vector.load %arg1[%c0, %c0_1] : memref<256x640xbf16, #tpu.memory_space<vmem>>, vector<256x640xbf16>
    %c0_2 = arith.constant 0 : index
    %c0_3 = arith.constant 0 : index
    %4 = vector.load %arg2[%c0_2, %c0_3] : memref<640x128xbf16, #tpu.memory_space<vmem>>, vector<640x128xbf16>
    %cst = arith.constant dense<0.000000e+00> : vector<256x128xf32>
    %5 = tpu.matmul %3, %4, %cst {dimension_numbers = #tpu.dot_dimension_numbers<[1], [0], [0], [1], [0, 0, 1, 1], [], []>} : vector<256x640xbf16>, vector<640x128xbf16>, vector<256x128xf32> -> vector<256x128xf32>
    %6 = arith.index_cast %arg0 : i32 to index
    %c0_4 = arith.constant 0 : index
    %c0_5 = arith.constant 0 : index
    %7 = vector.load %arg6[%6, %c0_4, %c0_5] : memref<1x256x128xf32, #tpu.memory_space<vmem>>, vector<1x256x128xf32>
    %8 = vector.shape_cast %7 : vector<1x256x128xf32> to vector<256x128xf32>
    %9 = vector.shape_cast %5 : vector<256x128xf32> to vector<1x256x128xf32>
    tpu.vector_store %arg6[%6, %c0_4, %c0_5], %9 {strides = array<i32>} : memref<1x256x128xf32, #tpu.memory_space<vmem>>, vector<1x256x128xf32>,
    %c0_6 = arith.constant 0 : index
    %c0_7 = arith.constant 0 : index
    %10 = vector.load %arg7[%c0_6, %c0_7] : memref<1x128xf32, #tpu.memory_space<vmem>>, vector<1x128xf32>
    %cst_8 = arith.constant dense<0.000000e+00> : vector<128xf32>
    %11 = vector.multi_reduction <add>, %5, %cst_8 [0] : vector<256x128xf32> to vector<128xf32>
    %12 = vector.shape_cast %11 : vector<128xf32> to vector<1x128xf32>
    %13 = arith.addf %10, %12 : vector<1x128xf32>
    %c0_9 = arith.constant 0 : index
    %c0_10 = arith.constant 0 : index
    %14 = vector.load %arg7[%c0_9, %c0_10] : memref<1x128xf32, #tpu.memory_space<vmem>>, vector<1x128xf32>
    tpu.vector_store %arg7[%c0_9, %c0_10], %13 {strides = array<i32>} : memref<1x128xf32, #tpu.memory_space<vmem>>, vector<1x128xf32>,
    %c0_11 = arith.constant 0 : index
    %c0_12 = arith.constant 0 : index
    %15 = vector.load %arg8[%c0_11, %c0_12] : memref<1x128xf32, #tpu.memory_space<vmem>>, vector<1x128xf32>
    %16 = arith.mulf %5, %5 : vector<256x128xf32>
    %cst_13 = arith.constant dense<0.000000e+00> : vector<128xf32>
    %17 = vector.multi_reduction <add>, %16, %cst_13 [0] : vector<256x128xf32> to vector<128xf32>
    %18 = vector.shape_cast %17 : vector<128xf32> to vector<1x128xf32>
    %19 = arith.addf %15, %18 : vector<1x128xf32>
    %c0_14 = arith.constant 0 : index
    %c0_15 = arith.constant 0 : index
    %20 = vector.load %arg8[%c0_14, %c0_15] : memref<1x128xf32, #tpu.memory_space<vmem>>, vector<1x128xf32>
    tpu.vector_store %arg8[%c0_14, %c0_15], %19 {strides = array<i32>} : memref<1x128xf32, #tpu.memory_space<vmem>>, vector<1x128xf32>,
    %c0_i32_16 = arith.constant 0 : i32
    %21 = arith.cmpi eq, %arg0, %c0_i32_16 : i32
    %22 = arith.extui %21 : i1 to i32
    %c0_i32_17 = arith.constant 0 : i32
    %23 = arith.cmpi ne, %22, %c0_i32_17 : i32
    scf.if %23 {
      %c0_18 = arith.constant 0 : index
      %c0_19 = arith.constant 0 : index
      %24 = vector.load %arg7[%c0_18, %c0_19] : memref<1x128xf32, #tpu.memory_space<vmem>>, vector<1x128xf32>
      %cst_20 = arith.constant 1.250000e-01 : f32
      %25 = vector.broadcast %cst_20 : f32 to vector<1x128xf32>
      %26 = arith.mulf %24, %25 : vector<1x128xf32>
      %c0_21 = arith.constant 0 : index
      %c0_22 = arith.constant 0 : index
      %27 = vector.load %arg8[%c0_21, %c0_22] : memref<1x128xf32, #tpu.memory_space<vmem>>, vector<1x128xf32>
      %cst_23 = arith.constant 1.250000e-01 : f32
      %28 = vector.broadcast %cst_23 : f32 to vector<1x128xf32>
      %29 = arith.mulf %27, %28 : vector<1x128xf32>
      %30 = arith.mulf %26, %26 : vector<1x128xf32>
      %31 = arith.subf %29, %30 : vector<1x128xf32>
      %cst_24 = arith.constant 0.000000e+00 : f32
      %32 = vector.broadcast %cst_24 : f32 to vector<1x128xf32>
      %33 = arith.maximumf %31, %32 : vector<1x128xf32>
      %c0_25 = arith.constant 0 : index
      %c0_26 = arith.constant 0 : index
      %34 = vector.load %arg3[%c0_25, %c0_26] : memref<1x128xf32, #tpu.memory_space<vmem>>, vector<1x128xf32>
      %cst_27 = arith.constant 9.99999974E-6 : f32
      %35 = vector.broadcast %cst_27 : f32 to vector<1x128xf32>
      %36 = arith.addf %33, %35 : vector<1x128xf32>
      %37 = math.rsqrt %36 : vector<1x128xf32>
      %38 = arith.mulf %34, %37 : vector<1x128xf32>
      %c0_28 = arith.constant 0 : index
      %c0_29 = arith.constant 0 : index
      %39 = vector.load %arg4[%c0_28, %c0_29] : memref<1x128xf32, #tpu.memory_space<vmem>>, vector<1x128xf32>
      %40 = arith.mulf %26, %38 : vector<1x128xf32>
      %41 = arith.subf %39, %40 : vector<1x128xf32>
      %c0_30 = arith.constant 0 : index
      %c0_31 = arith.constant 0 : index
      %c0_32 = arith.constant 0 : index
      %42 = vector.load %arg6[%c0_30, %c0_31, %c0_32] : memref<1x256x128xf32, #tpu.memory_space<vmem>>, vector<1x256x128xf32>
      %43 = vector.shape_cast %38 : vector<1x128xf32> to vector<1x1x128xf32>
      %44 = vector.broadcast %43 : vector<1x1x128xf32> to vector<1x256x128xf32>
      %45 = arith.mulf %42, %44 : vector<1x256x128xf32>
      %46 = vector.shape_cast %41 : vector<1x128xf32> to vector<1x1x128xf32>
      %47 = vector.broadcast %46 : vector<1x1x128xf32> to vector<1x256x128xf32>
      %48 = arith.addf %45, %47 : vector<1x256x128xf32>
      %cst_33 = arith.constant 0.000000e+00 : f32
      %49 = vector.broadcast %cst_33 : f32 to vector<1x256x128xf32>
      %50 = arith.maximumf %48, %49 : vector<1x256x128xf32>
      %51 = arith.truncf %50 : vector<1x256x128xf32> to vector<1x256x128xbf16>
      %c0_34 = arith.constant 0 : index
      %c0_35 = arith.constant 0 : index
      %c0_36 = arith.constant 0 : index
      %52 = vector.load %arg5[%c0_34, %c0_35, %c0_36] : memref<1x256x128xbf16, #tpu.memory_space<vmem>>, vector<1x256x128xbf16>
      tpu.vector_store %arg5[%c0_34, %c0_35, %c0_36], %51 {strides = array<i32>} : memref<1x256x128xbf16, #tpu.memory_space<vmem>>, vector<1x256x128xbf16>,
    } else {
    }
    return
  }
  func.func @transform_0(%arg0: i32) -> (i32, i32) {
    %c0_i32 = arith.constant 0 : i32
    %c0_i32_0 = arith.constant 0 : i32
    return %arg0, %c0_i32 : i32, i32
  }
  func.func @transform_1(%arg0: i32) -> (i32, i32) {
    %c0_i32 = arith.constant 0 : i32
    %c0_i32_0 = arith.constant 0 : i32
    %c0_i32_1 = arith.constant 0 : i32
    return %c0_i32, %c0_i32_0 : i32, i32
  }
  func.func @transform_2(%arg0: i32) -> (i32, i32) {
    %c0_i32 = arith.constant 0 : i32
    %c0_i32_0 = arith.constant 0 : i32
    %c0_i32_1 = arith.constant 0 : i32
    return %c0_i32, %c0_i32_0 : i32, i32
  }
  func.func @transform_3(%arg0: i32) -> (i32, i32) {
    %c0_i32 = arith.constant 0 : i32
    %c0_i32_0 = arith.constant 0 : i32
    %c0_i32_1 = arith.constant 0 : i32
    return %c0_i32, %c0_i32_0 : i32, i32
  }
  func.func @transform_4(%arg0: i32) -> (i32, i32, i32) {
    %c0_i32 = arith.constant 0 : i32
    %c0_i32_0 = arith.constant 0 : i32
    %c0_i32_1 = arith.constant 0 : i32
    %c0_i32_2 = arith.constant 0 : i32
    return %c0_i32, %c0_i32_0, %c0_i32_1 : i32, i32, i32
  }
}

module attributes {stable_mosaic.version = 11 : i64} {
  func.func @linear_kernel(%arg0: i32, %arg1: memref<8x256xbf16, #tpu.memory_space<vmem>>, %arg2: memref<256x128xbf16, #tpu.memory_space<vmem>>, %arg3: memref<1x128xf32, #tpu.memory_space<vmem>>, %arg4: memref<8x128xf32, #tpu.memory_space<vmem>>) attributes {dimension_semantics = [#tpu.dimension_semantics<parallel>], iteration_bounds = array<i64: 1>, scalar_prefetch = 0 : i64, scratch_operands = 0 : i64, tpu.core_type = #tpu.core_type<tc>, window_params = [{transform_indices = @transform_0, window_bounds = array<i64: 8, 256>}, {pipeline_mode = #tpu.pipeline_mode<synchronous>, transform_indices = @transform_1, window_bounds = array<i64: 256, 128>}, {pipeline_mode = #tpu.pipeline_mode<synchronous>, transform_indices = @transform_2, window_bounds = array<i64: 1, 128>}, {transform_indices = @transform_3, window_bounds = array<i64: 8, 128>}]} {
    %c0 = arith.constant 0 : index
    %c0_0 = arith.constant 0 : index
    %0 = vector.load %arg1[%c0, %c0_0] : memref<8x256xbf16, #tpu.memory_space<vmem>>, vector<8x256xbf16>
    %c0_1 = arith.constant 0 : index
    %c0_2 = arith.constant 0 : index
    %1 = vector.load %arg2[%c0_1, %c0_2] : memref<256x128xbf16, #tpu.memory_space<vmem>>, vector<256x128xbf16>
    %cst = arith.constant dense<0.000000e+00> : vector<8x128xf32>
    %2 = tpu.matmul %0, %1, %cst {dimension_numbers = #tpu.dot_dimension_numbers<[1], [0], [0], [1], [0, 0, 1, 1], [], []>} : vector<8x256xbf16>, vector<256x128xbf16>, vector<8x128xf32> -> vector<8x128xf32>
    %c0_3 = arith.constant 0 : index
    %c0_4 = arith.constant 0 : index
    %3 = vector.load %arg3[%c0_3, %c0_4] : memref<1x128xf32, #tpu.memory_space<vmem>>, vector<1x128xf32>
    %4 = vector.broadcast %3 : vector<1x128xf32> to vector<8x128xf32>
    %5 = arith.addf %2, %4 : vector<8x128xf32>
    %c0_5 = arith.constant 0 : index
    %c0_6 = arith.constant 0 : index
    %6 = vector.load %arg4[%c0_5, %c0_6] : memref<8x128xf32, #tpu.memory_space<vmem>>, vector<8x128xf32>
    tpu.vector_store %arg4[%c0_5, %c0_6], %5 {strides = array<i32>} : memref<8x128xf32, #tpu.memory_space<vmem>>, vector<8x128xf32>,
    return
  }
  func.func @transform_0(%arg0: i32) -> (i32, i32) {
    %c0_i32 = arith.constant 0 : i32
    %c0_i32_0 = arith.constant 0 : i32
    return %arg0, %c0_i32 : i32, i32
  }
  func.func @transform_1(%arg0: i32) -> (i32, i32) {
    %c0_i32 = arith.constant 0 : i32
    %c0_i32_0 = arith.constant 0 : i32
    %c0_i32_1 = arith.constant 0 : i32
    return %c0_i32, %c0_i32_0 : i32, i32
  }
  func.func @transform_2(%arg0: i32) -> (i32, i32) {
    %c0_i32 = arith.constant 0 : i32
    %c0_i32_0 = arith.constant 0 : i32
    %c0_i32_1 = arith.constant 0 : i32
    return %c0_i32, %c0_i32_0 : i32, i32
  }
  func.func @transform_3(%arg0: i32) -> (i32, i32) {
    %c0_i32 = arith.constant 0 : i32
    %c0_i32_0 = arith.constant 0 : i32
    return %arg0, %c0_i32 : i32, i32
  }
}

</mosaic_0001>

<bundles_post_ra>
// kernel: dqn_forward.4
= control target key start
LH: loop header
LB: loop body
LE: loop exit
PB: predicated region body
PF: predicated region fallthrough
CT: control target
= control target key end

     0   :  { %v1374_v48 = vmov 0.0   ;;  %s1883_s1 = inlined_call_operand.vmem [shape: bf16[256,128], index: 1, kind: input, shape index: {}]   ;;  %s1884_s0 = inlined_call_operand.vmem [shape: bf16[256,256], index: 0, kind: input, shape index: {}]   ;;  %s1885_s2 = inlined_call_operand.vmem [shape: f32[1,128], index: 2, kind: input, shape index: {}]   ;;  %s1886_s3 = inlined_call_operand.vmem [shape: f32[1,128], index: 3, kind: input, shape index: {}]   ;;  %s1887_s4 = inlined_call_operand.vmem [shape: bf16[1,256,128], index: 4, kind: output, shape index: {}]  }
   0x1   :  { %v1308_v0 = vld [vmem:[%s1883_s1 + $0x78] sm:$0xff]   ;;  %v1310_v2 = vld [vmem:[%s1883_s1 + $0x70] sm:$0xff]   ;;  %v1312_v4 = vld [vmem:[%s1883_s1 + $0x68] sm:$0xff]   ;;  %22 = vst [vmem:[#allocation3] sm:$0x1] %v1374_v48 }
   0x2   :  { %v1309_v1 = vld [vmem:[%s1883_s1 + $0x38] sm:$0xff]   ;;  %1179 = vmatprep.subr.bf16.mxu0 %v1308_v0  ;;  %1291 = vmatprep.subr.bf16.mxu1 %v1308_v0  ;;  %v1311_v3 = vld [vmem:[%s1883_s1 + $0x30] sm:$0xff]   ;;  %v1313_v5 = vld [vmem:[%s1883_s1 + $0x28] sm:$0xff]   ;;  %23 = vst [vmem:[#allocation4] sm:$0x1] %v1374_v48 }
   0x3   :  { %1180 = vmatpush3.bf16.msra.mxu0 %v1309_v1  ;;  %1299 = vmatpush3.bf16.msra.mxu1 %v1309_v1  ;;  %v1314_v6 = vld [vmem:[%s1883_s1 + $0x60] sm:$0xff]   ;;  %v1316_v8 = vld [vmem:[%s1883_s1 + $0x58] sm:$0xff]   ;;  %v1318_v10 = vld [vmem:[%s1883_s1 + $0x50] sm:$0xff]  }
   0x4   :  { %1181 = vmatprep.subr.bf16.mxu0 %v1310_v2  ;;  %1292 = vmatprep.subr.bf16.mxu1 %v1310_v2  ;;  %v1315_v7 = vld [vmem:[%s1883_s1 + $0x20] sm:$0xff]   ;;  %v1317_v9 = vld [vmem:[%s1883_s1 + $0x18] sm:$0xff]   ;;  %v1319_v12 = vld [vmem:[%s1883_s1 + $0x10] sm:$0xff]  }
   0x5   :  { %v1326_v11 = vld [vmem:[%s1884_s0 + $0x4] ss:$8 sps:$4 sm:$0xff]   ;;  %v1324_v18 = vld [vmem:[%s1884_s0] ss:$8 sps:$4 sm:$0xff]   ;;  %v1327_v19 = vld [vmem:[%s1884_s0 + $0x14] ss:$8 sps:$4 sm:$0xff]  }
   0x6   :  { %376 = vmatprep.mubr.bf16.mxu0 %v1326_v11  ;;  %v1320_v13 = vld [vmem:[%s1883_s1 + $0x48] sm:$0xff]   ;;  %v1322_v16 = vld [vmem:[%s1883_s1 + $0x40] sm:$0xff]   ;;  %v1342_v21 = vld [vmem:[%s1884_s0 + $0x94] ss:$8 sps:$4 sm:$0xff]  }
   0x7   :  { %1182 = vmatpush3.bf16.msra.mxu0 %v1311_v3  ;;  %1300 = vmatpush3.bf16.msra.mxu1 %v1311_v3  ;;  %v1338_v14 = vld [vmem:[%s1884_s0 + $0x84] ss:$8 sps:$4 sm:$0xff]   ;;  %v1336_v20 = vld [vmem:[%s1884_s0 + $0x80] ss:$8 sps:$4 sm:$0xff]   ;;  %v1329_v22 = vld [vmem:[%s1884_s0 + $0x10] ss:$8 sps:$4 sm:$0xff]  }
   0x8   :  { %1183 = vmatprep.subr.bf16.mxu0 %v1312_v4  ;;  %1293 = vmatprep.subr.bf16.mxu1 %v1312_v4  ;;  %v1321_v15 = vld [vmem:[%s1883_s1 + $0x8] sm:$0xff]   ;;  %v1323_v17 = vld [vmem:[%s1883_s1] sm:$0xff]   ;;  %v1344_v24 = vld [vmem:[%s1884_s0 + $0x90] ss:$8 sps:$4 sm:$0xff]  }
   0x9   :  { %440 = vmatprep.mubr.bf16.mxu1 %v1338_v14  ;;  %v1330_v23 = vld [vmem:[%s1884_s0 + $0x24] ss:$8 sps:$4 sm:$0xff]   ;;  %v1332_v26 = vld [vmem:[%s1884_s0 + $0x20] ss:$8 sps:$4 sm:$0xff]   ;;  %v1333_v27 = vld [vmem:[%s1884_s0 + $0x34] ss:$8 sps:$4 sm:$0xff]  }
   0xa   :  { %v1348_v25 = vld [vmem:[%s1884_s0 + $0xa4] ss:$8 sps:$4 sm:$0xff]   ;;  %v1350_v28 = vld [vmem:[%s1884_s0 + $0xa0] ss:$8 sps:$4 sm:$0xff]   ;;  %v1354_v29 = vld [vmem:[%s1884_s0 + $0xb4] ss:$8 sps:$4 sm:$0xff]  }
   0xb   :  { %1184 = vmatpush3.bf16.msra.mxu0 %v1313_v5  ;;  %1301 = vmatpush3.bf16.msra.mxu1 %v1313_v5  ;;  %v1335_v30 = vld [vmem:[%s1884_s0 + $0x30] ss:$8 sps:$4 sm:$0xff]   ;;  %v1339_v31 = vld [vmem:[%s1884_s0 + $0x44] ss:$8 sps:$4 sm:$0xff]   ;;  %v1341_v34 = vld [vmem:[%s1884_s0 + $0x40] ss:$8 sps:$4 sm:$0xff]  }
   0xc   :  { %1185 = vmatprep.subr.bf16.mxu0 %v1314_v6  ;;  %1294 = vmatprep.subr.bf16.mxu1 %v1314_v6  ;;  %v1356_v32 = vld [vmem:[%s1884_s0 + $0xb0] ss:$8 sps:$4 sm:$0xff]   ;;  %v1360_v33 = vld [vmem:[%s1884_s0 + $0xc4] ss:$8 sps:$4 sm:$0xff]   ;;  %v1345_v35 = vld [vmem:[%s1884_s0 + $0x54] ss:$8 sps:$4 sm:$0xff]  }
   0xd   :  { %v1362_v36 = vld [vmem:[%s1884_s0 + $0xc0] ss:$8 sps:$4 sm:$0xff]   ;;  %v1363_v37 = vld [vmem:[%s1884_s0 + $0xd4] ss:$8 sps:$4 sm:$0xff]   ;;  %v1347_v38 = vld [vmem:[%s1884_s0 + $0x50] ss:$8 sps:$4 sm:$0xff]  }
   0xe   :  { %v1351_v39 = vld [vmem:[%s1884_s0 + $0x64] ss:$8 sps:$4 sm:$0xff]   ;;  %v1365_v40 = vld [vmem:[%s1884_s0 + $0xd0] ss:$8 sps:$4 sm:$0xff]   ;;  %v1353_v42 = vld [vmem:[%s1884_s0 + $0x60] ss:$8 sps:$4 sm:$0xff]  }
   0xf   :  { %1186 = vmatpush3.bf16.msra.mxu0 %v1315_v7  ;;  %1302 = vmatpush3.bf16.msra.mxu1 %v1315_v7  ;;  %v1366_v41 = vld [vmem:[%s1884_s0 + $0xe4] ss:$8 sps:$4 sm:$0xff]   ;;  %v1357_v43 = vld [vmem:[%s1884_s0 + $0x74] ss:$8 sps:$4 sm:$0xff]   ;;  %v1368_v44 = vld [vmem:[%s1884_s0 + $0xe0] ss:$8 sps:$4 sm:$0xff]  }
  0x10   :  { %1187 = vmatprep.subr.bf16.mxu0 %v1316_v8  ;;  %1295 = vmatprep.subr.bf16.mxu1 %v1316_v8  ;;  %v1369_v45 = vld [vmem:[%s1884_s0 + $0xf4] ss:$8 sps:$4 sm:$0xff]   ;;  %v1359_v46 = vld [vmem:[%s1884_s0 + $0x70] ss:$8 sps:$4 sm:$0xff]  }
  0x11   :  { %v1371_v47 = vld [vmem:[%s1884_s0 + $0xf0] ss:$8 sps:$4 sm:$0xff]  }
  0x13   :  { %1188 = vmatpush3.bf16.msra.mxu0 %v1317_v9  ;;  %1303 = vmatpush3.bf16.msra.mxu1 %v1317_v9 }
  0x14   :  { %1189 = vmatprep.subr.bf16.mxu0 %v1318_v10  ;;  %1296 = vmatprep.subr.bf16.mxu1 %v1318_v10 }
  0x17   :  { %1190 = vmatpush3.bf16.msra.mxu0 %v1319_v12  ;;  %1304 = vmatpush3.bf16.msra.mxu1 %v1319_v12 }
  0x18   :  { %1191 = vmatprep.subr.bf16.mxu0 %v1320_v13  ;;  %1297 = vmatprep.subr.bf16.mxu1 %v1320_v13 }
  0x1b   :  { %1192 = vmatpush3.bf16.msra.mxu0 %v1321_v15  ;;  %1305 = vmatpush3.bf16.msra.mxu1 %v1321_v15 }
  0x1c   :  { %1193 = vmatprep.subr.bf16.mxu0 %v1322_v16  ;;  %1298 = vmatprep.subr.bf16.mxu1 %v1322_v16 }
  0x1f   :  { %1194 = vmatpush3.bf16.msra.mxu0 %v1323_v17  ;;  %1306 = vmatpush3.bf16.msra.mxu1 %v1323_v17 }
  0x22   :  { %377 = vmatmul.mubr.bf16.vlgmr.msra.gmra.mxu0 %v1324_v18  ;;  %441 = vmatmul.mubr.bf16.vlgmr.msra.gmra.mxu1 %v1336_v20 }
  0x23   :  { %384 = vmatprep.mubr.bf16.mxu0 %v1327_v19  ;;  %448 = vmatprep.mubr.bf16.mxu1 %v1342_v21 }
  0x2a   :  { %385 = vmatmul.mubr.bf16.gmra.mxu0 %v1329_v22  ;;  %449 = vmatmul.mubr.bf16.gmra.mxu1 %v1344_v24 }
  0x2b   :  { %392 = vmatprep.mubr.bf16.mxu0 %v1330_v23  ;;  %456 = vmatprep.mubr.bf16.mxu1 %v1348_v25 }
  0x32   :  { %393 = vmatmul.mubr.bf16.gmra.mxu0 %v1332_v26  ;;  %457 = vmatmul.mubr.bf16.gmra.mxu1 %v1350_v28 }
  0x33   :  { %400 = vmatprep.mubr.bf16.mxu0 %v1333_v27  ;;  %464 = vmatprep.mubr.bf16.mxu1 %v1354_v29 }
  0x3a   :  { %401 = vmatmul.mubr.bf16.gmra.mxu0 %v1335_v30  ;;  %465 = vmatmul.mubr.bf16.gmra.mxu1 %v1356_v32 }
  0x3b   :  { %408 = vmatprep.mubr.bf16.mxu0 %v1339_v31  ;;  %472 = vmatprep.mubr.bf16.mxu1 %v1360_v33 }
  0x42   :  { %409 = vmatmul.mubr.bf16.gmra.mxu0 %v1341_v34  ;;  %473 = vmatmul.mubr.bf16.gmra.mxu1 %v1362_v36 }
  0x43   :  { %416 = vmatprep.mubr.bf16.mxu0 %v1345_v35  ;;  %480 = vmatprep.mubr.bf16.mxu1 %v1363_v37 }
  0x4a   :  { %417 = vmatmul.mubr.bf16.gmra.mxu0 %v1347_v38  ;;  %481 = vmatmul.mubr.bf16.gmra.mxu1 %v1365_v40 }
  0x4b   :  { %424 = vmatprep.mubr.bf16.mxu0 %v1351_v39  ;;  %488 = vmatprep.mubr.bf16.mxu1 %v1366_v41 }
  0x52   :  { %425 = vmatmul.mubr.bf16.gmra.mxu0 %v1353_v42  ;;  %489 = vmatmul.mubr.bf16.gmra.mxu1 %v1368_v44 }
  0x53   :  { %432 = vmatprep.mubr.bf16.mxu0 %v1357_v43  ;;  %496 = vmatprep.mubr.bf16.mxu1 %v1369_v45 }
  0x5a   :  { %433 = vmatmul.mubr.bf16.gmra.mxu0 %v1359_v46  ;;  %497 = vmatmul.mubr.bf16.gmra.mxu1 %v1371_v47 }
  0xe2   :  { %v1195_v49 = vpop.f32.mrf.mxu0  ;;  %v1544_v50 = vpop.f32.mrf.mxu1 }
  0xe4   :  { %v1196_v51 = vpop.f32.mrf.mxu0  ;;  %v1546_v52 = vpop.f32.mrf.mxu1 }
  0xe5   :  { %v1578_v19 = vadd.f32 %v1196_v51, %v1195_v49 }
  0xe6   :  { %v1198_v53 = vpop.f32.mrf.mxu0  ;;  %v1548_v54 = vpop.f32.mrf.mxu1 }
  0xe7   :  { %v580_v27 = vmul.f32 %v1578_v19, %v1578_v19 }
  0xe8   :  { %v1199_v55 = vpop.f32.mrf.mxu0  ;;  %v1550_v56 = vpop.f32.mrf.mxu1 }
  0xe9   :  { %v1574_v16 = vadd.f32 %v1199_v55, %v1198_v53 }
  0xea   :  { %v1201_v57 = vpop.f32.mrf.mxu0  ;;  %v1552_v58 = vpop.f32.mrf.mxu1 }
  0xeb   :  { %v581_v23 = vmul.f32 %v1574_v16, %v1574_v16  ;;  %v540_v28 = vadd.f32 %v1574_v16, %v1578_v19 }
  0xec   :  { %v1202_v59 = vpop.f32.mrf.mxu0  ;;  %v1554_v60 = vpop.f32.mrf.mxu1 }
  0xed   :  { %v1580_v20 = vadd.f32 %v1202_v59, %v1201_v57  ;;  %v612_v33 = vadd.f32 %v581_v23, %v580_v27 }
  0xee   :  { %v1204_v61 = vpop.f32.mrf.mxu0  ;;  %v1556_v62 = vpop.f32.mrf.mxu1 }
  0xef   :  { %v582_v29 = vmul.f32 %v1580_v20, %v1580_v20  ;;  %v541_v34 = vadd.f32 %v1580_v20, %v540_v28 }
  0xf0   :  { %v1205_v63 = vpop.f32.mrf.mxu0  ;;  %v1558_v0 = vpop.f32.mrf.mxu1 }
  0xf1   :  { %v1586_v24 = vadd.f32 %v1205_v63, %v1204_v61  ;;  %v613_v38 = vadd.f32 %v612_v33, %v582_v29 }
  0xf2   :  { %v1207_v1 = vpop.f32.mrf.mxu0  ;;  %v1560_v2 = vpop.f32.mrf.mxu1 }
  0xf3   :  { %v583_v35 = vmul.f32 %v1586_v24, %v1586_v24  ;;  %v542_v39 = vadd.f32 %v1586_v24, %v541_v34 }
  0xf4   :  { %v1208_v3 = vpop.f32.mrf.mxu0  ;;  %v1562_v4 = vpop.f32.mrf.mxu1 }
  0xf5   :  { %v1596_v30 = vadd.f32 %v1208_v3, %v1207_v1  ;;  %v614_v44 = vadd.f32 %v613_v38, %v583_v35 }
  0xf6   :  { %v1210_v5 = vpop.f32.mrf.mxu0  ;;  %v1564_v6 = vpop.f32.mrf.mxu1 }
  0xf7   :  { %v584_v40 = vmul.f32 %v1596_v30, %v1596_v30  ;;  %v543_v45 = vadd.f32 %v1596_v30, %v542_v39 }
  0xf8   :  { %v1211_v7 = vpop.f32.mrf.mxu0  ;;  %v1566_v8 = vpop.f32.mrf.mxu1 }
  0xf9   :  { %v1603_v36 = vadd.f32 %v1211_v7, %v1210_v5  ;;  %v615_v49 = vadd.f32 %v614_v44, %v584_v40 }
  0xfa   :  { %v1213_v9 = vpop.f32.mrf.mxu0  ;;  %v1568_v10 = vpop.f32.mrf.mxu1 }
  0xfb   :  { %v585_v46 = vmul.f32 %v1603_v36, %v1603_v36  ;;  %v544_v51 = vadd.f32 %v1603_v36, %v543_v45 }
  0xfc   :  { %v1214_v11 = vpop.f32.mrf.mxu0  ;;  %v1570_v12 = vpop.f32.mrf.mxu1 }
  0xfd   :  { %v1608_v41 = vadd.f32 %v1214_v11, %v1213_v9  ;;  %v616_v61 = vadd.f32 %v615_v49, %v585_v46 }
  0xfe   :  { %v1216_v13 = vpop.f32.mrf.mxu0  ;;  %v1572_v14 = vpop.f32.mrf.mxu1 }
  0xff   :  { %v586_v53 = vmul.f32 %v1608_v41, %v1608_v41  ;;  %v545_v63 = vadd.f32 %v1608_v41, %v544_v51 }
 0x100   :  { %v1217_v15 = vpop.f32.mrf.mxu0  ;;  %v1576_v17 = vpop.f32.mrf.mxu1 }
 0x101   :  { %v1615_v47 = vadd.f32 %v1217_v15, %v1216_v13  ;;  %v617_v7 = vadd.f32 %v616_v61, %v586_v53 }
 0x102   :  { %v1219_v18 = vpop.f32.mrf.mxu0  ;;  %v1582_v21 = vpop.f32.mrf.mxu1 }
 0x103   :  { %v587_v1 = vmul.f32 %v1615_v47, %v1615_v47  ;;  %v546_v9 = vadd.f32 %v1615_v47, %v545_v63 }
 0x104   :  { %v1220_v22 = vpop.f32.mrf.mxu0  ;;  %v1588_v25 = vpop.f32.mrf.mxu1 }
 0x105   :  { %v1620_v55 = vadd.f32 %v1220_v22, %v1219_v18  ;;  %v618_v22 = vadd.f32 %v617_v7, %v587_v1 }
 0x106   :  { %v1222_v26 = vpop.f32.mrf.mxu0  ;;  %v1598_v32 = vpop.f32.mrf.mxu1 }
 0x107   :  { %v588_v11 = vmul.f32 %v1620_v55, %v1620_v55  ;;  %v547_v23 = vadd.f32 %v1620_v55, %v546_v9 }
 0x108   :  { %v1223_v31 = vpop.f32.mrf.mxu0  ;;  %v1610_v43 = vpop.f32.mrf.mxu1 }
 0x109   :  { %v1627_v3 = vadd.f32 %v1223_v31, %v1222_v26  ;;  %v619_v29 = vadd.f32 %v618_v22, %v588_v11  ;;  %v1668_v22 = vadd.f32 %v1546_v52, %v1544_v50  ;;  %v1684_v52 = vadd.f32 %v1554_v60, %v1552_v58 }
 0x10a   :  { %v1225_v37 = vpop.f32.mrf.mxu0  ;;  %v1622_v59 = vpop.f32.mrf.mxu1  ;;  %v1698_v58 = vadd.f32 %v1562_v4, %v1560_v2  ;;  %v1712_v2 = vadd.f32 %v1570_v12, %v1568_v10  ;;  %v1726_v10 = vadd.f32 %v1588_v25, %v1582_v21 }
 0x10b   :  { %v589_v27 = vmul.f32 %v1627_v3, %v1627_v3  ;;  %v548_v31 = vadd.f32 %v1627_v3, %v547_v23  ;;  %v596_v50 = vmul.f32 %v1668_v22, %v1668_v22 }
 0x10c   :  { %v1226_v42 = vpop.f32.mrf.mxu0  ;;  %v1634_v18 = vpop.f32.mrf.mxu1 }
 0x10d   :  { %v1632_v13 = vadd.f32 %v1226_v42, %v1225_v37  ;;  %v620_v38 = vadd.f32 %v619_v29, %v589_v27  ;;  %v1675_v29 = vadd.f32 %v1550_v56, %v1548_v54  ;;  %v1691_v56 = vadd.f32 %v1558_v0, %v1556_v62 }
 0x10e   :  { %v1228_v48 = vpop.f32.mrf.mxu0  ;;  %v1646_v37 = vpop.f32.mrf.mxu1  ;;  %v1705_v62 = vadd.f32 %v1566_v8, %v1564_v6  ;;  %v1719_v6 = vadd.f32 %v1576_v17, %v1572_v14  ;;  %v1733_v14 = vadd.f32 %v1610_v43, %v1598_v32 }
 0x10f   :  { %v590_v33 = vmul.f32 %v1632_v13, %v1632_v13  ;;  %v549_v39 = vadd.f32 %v1632_v13, %v548_v31  ;;  %v597_v54 = vmul.f32 %v1675_v29, %v1675_v29 }
 0x110   :  { %v1229_v57 = vpop.f32.mrf.mxu0  ;;  %v1656_v51 = vpop.f32.mrf.mxu1  ;;  %v605_v32 = vmul.f32 %v1733_v14, %v1733_v14 }
 0x111   :  { %v1639_v26 = vadd.f32 %v1229_v57, %v1228_v48  ;;  %v621_v45 = vadd.f32 %v620_v38, %v590_v33 }
 0x112   :  { %v1231_v5 = vpop.f32.mrf.mxu0 }
 0x113   :  { %v591_v40 = vmul.f32 %v1639_v26, %v1639_v26  ;;  %v550_v46 = vadd.f32 %v1639_v26, %v549_v39 }
 0x114   :  { %v1232_v15 = vpop.f32.mrf.mxu0 }
 0x115   :  { %v1644_v34 = vadd.f32 %v1232_v15, %v1231_v5  ;;  %v622_v53 = vadd.f32 %v621_v45, %v591_v40  ;;  %v1279_v15 = vpop.f32.mrf.mxu1 }
 0x116   :  { %v1234_v28 = vpop.f32.mrf.mxu0 }
 0x117   :  { %v592_v48 = vmul.f32 %v1644_v34, %v1644_v34  ;;  %v551_v57 = vadd.f32 %v1644_v34, %v550_v46  ;;  %v1280_v38 = vpop.f32.mrf.mxu1 }
 0x118   :  { %v1235_v35 = vpop.f32.mrf.mxu0 }
 0x119   :  { %v1651_v42 = vadd.f32 %v1235_v35, %v1234_v28  ;;  %v623_v5 = vadd.f32 %v622_v53, %v592_v48  ;;  %v1282_v46 = vpop.f32.mrf.mxu1  ;;  %v598_v48 = vmul.f32 %v1684_v52, %v1684_v52  ;;  %v599_v53 = vmul.f32 %v1691_v56, %v1691_v56 }
 0x11a   :  { %v1237_v44 = vpop.f32.mrf.mxu0 }
 0x11b   :  { %v593_v61 = vmul.f32 %v1651_v42, %v1651_v42  ;;  %v552_v7 = vadd.f32 %v1651_v42, %v551_v57 }
 0x11c   :  { %v1238_v49 = vpop.f32.mrf.mxu0 }
 0x11d   :  { %v1661_v63 = vadd.f32 %v1238_v49, %v1237_v44  ;;  %v624_v23 = vadd.f32 %v623_v5, %v593_v61  ;;  %v1283_v61 = vpop.f32.mrf.mxu1 }
 0x11e   :  { %v1240_v1 = vpop.f32.mrf.mxu0 }
 0x11f   :  { %v594_v9 = vmul.f32 %v1661_v63, %v1661_v63  ;;  %v553_v27 = vadd.f32 %v1661_v63, %v552_v7  ;;  %v601_v7 = vmul.f32 %v1705_v62, %v1705_v62 }
 0x120   :  { %v1241_v11 = vpop.f32.mrf.mxu0 }
 0x121   :  { %v1671_v28 = vadd.f32 %v1241_v11, %v1240_v1  ;;  %v625_v31 = vadd.f32 %v624_v23, %v594_v9  ;;  %v600_v1 = vmul.f32 %v1698_v58, %v1698_v58  ;;  %v1285_v11 = vpop.f32.mrf.mxu1  ;;  %v602_v23 = vmul.f32 %v1712_v2, %v1712_v2 }
 0x123   :  { %v554_v33 = vadd.f32 %v1671_v28, %v553_v27  ;;  %v595_v35 = vmul.f32 %v1671_v28, %v1671_v28 }
 0x125   :  { %v555_v39 = vadd.f32 %v1668_v22, %v554_v33  ;;  %v626_v40 = vadd.f32 %v625_v31, %v595_v35  ;;  %v603_v31 = vmul.f32 %v1719_v6, %v1719_v6  ;;  %v1286_v35 = vpop.f32.mrf.mxu1 }
 0x127   :  { %v556_v44 = vadd.f32 %v1675_v29, %v555_v39  ;;  %v627_v45 = vadd.f32 %v626_v40, %v596_v50  ;;  %v604_v50 = vmul.f32 %v1726_v10, %v1726_v10  ;;  %v1741_v39 = vadd.f32 %v1634_v18, %v1622_v59 }
 0x129   :  { %v557_v60 = vadd.f32 %v1684_v52, %v556_v44  ;;  %v628_v49 = vadd.f32 %v627_v45, %v597_v54  ;;  %v1748_v54 = vadd.f32 %v1656_v51, %v1646_v37  ;;  %v1288_v44 = vpop.f32.mrf.mxu1 }
 0x12b   :  { %v558_v0 = vadd.f32 %v1691_v56, %v557_v60  ;;  %v629_v57 = vadd.f32 %v628_v49, %v598_v48  ;;  %v606_v60 = vmul.f32 %v1741_v39, %v1741_v39  ;;  %v1753_v49 = vadd.f32 %v1280_v38, %v1279_v15 }
 0x12d   :  { %v630_v4 = vadd.f32 %v629_v57, %v599_v53  ;;  %v559_v5 = vadd.f32 %v1698_v58, %v558_v0  ;;  %v607_v53 = vmul.f32 %v1748_v54, %v1748_v54  ;;  %v1758_v0 = vadd.f32 %v1283_v61, %v1282_v46  ;;  %v1289_v57 = vpop.f32.mrf.mxu1 }
 0x12f   :  { %v560_v8 = vadd.f32 %v1705_v62, %v559_v5  ;;  %v631_v9 = vadd.f32 %v630_v4, %v600_v1  ;;  %v608_v1 = vmul.f32 %v1753_v49, %v1753_v49  ;;  %v1763_v4 = vadd.f32 %v1286_v35, %v1285_v11 }
 0x130   :  { %v609_v38 = vmul.f32 %v1758_v0, %v1758_v0 }
 0x131   :  { %v561_v12 = vadd.f32 %v1712_v2, %v560_v8  ;;  %v632_v27 = vadd.f32 %v631_v9, %v601_v7  ;;  %v1768_v7 = vadd.f32 %v1289_v57, %v1288_v44  ;;  %v610_v61 = vmul.f32 %v1763_v4, %v1763_v4 }
 0x133   :  { %v562_v17 = vadd.f32 %v1719_v6, %v561_v12  ;;  %v633_v33 = vadd.f32 %v632_v27, %v602_v23  ;;  %v611_v11 = vmul.f32 %v1768_v7, %v1768_v7 }
 0x135   :  { %v563_v21 = vadd.f32 %v1726_v10, %v562_v17  ;;  %v634_v25 = vadd.f32 %v633_v33, %v603_v31 }
 0x137   :  { %v564_v40 = vadd.f32 %v1733_v14, %v563_v21  ;;  %v635_v43 = vadd.f32 %v634_v25, %v604_v50 }
 0x139   :  { %v636_v45 = vadd.f32 %v635_v43, %v605_v32  ;;  %v565_v48 = vadd.f32 %v1741_v39, %v564_v40  ;;  %v539_v32 = vld [vmem:[#allocation3] sm:$0x1] }
 0x13b   :  { %v637_v59 = vadd.f32 %v636_v45, %v606_v60  ;;  %v566_v18 = vadd.f32 %v1748_v54, %v565_v48  ;;  %v579_v45 = vld [vmem:[#allocation4] sm:$0x1] }
 0x13d   :  { %v638_v37 = vadd.f32 %v637_v59, %v607_v53  ;;  %v567_v51 = vadd.f32 %v1753_v49, %v566_v18 }
 0x13f   :  { %v639_v5 = vadd.f32 %v638_v37, %v608_v1  ;;  %v568_v15 = vadd.f32 %v1758_v0, %v567_v51 }
 0x141   :  { %v640_v8 = vadd.f32 %v639_v5, %v609_v38  ;;  %v569_v46 = vadd.f32 %v1763_v4, %v568_v15  ;;  %v701_v38 = vlaneseq }
 0x143   :  { %v641_v9 = vadd.f32 %v640_v8, %v610_v61  ;;  %v570_v23 = vadd.f32 %v1768_v7, %v569_v46  ;;  %v702_v8 = vshrl.u32 %v701_v38, 7  ;;  %v661_v46 = vld [vmem:[%s1885_s2] sm:$0x1] }
 0x145   :  { %v571_v12 = vrot.slane %v570_v23, 4  ;;  %v642_v27 = vadd.f32 %v641_v9, %v611_v11  ;;  %v703_v61 = vsub.s32 0, %v702_v8  ;;  %v665_v11 = vld [vmem:[%s1886_s3] sm:$0x1] }
 0x147   :  { %v572_v31 = vadd.f32 %v571_v12, %v570_v23  ;;  %v643_v17 = vrot.slane %v642_v27, 4 }
 0x149   :  { %v573_v33 = vrot.slane %v572_v31, 2  ;;  %v644_v35 = vadd.f32 %v643_v17, %v642_v27 }
 0x14b   :  { %v574_v50 = vadd.f32 %v573_v33, %v572_v31  ;;  %v645_v21 = vrot.slane %v644_v35, 2 }
 0x14d   :  { %v575_v25 = vrot.slane %v574_v50, 1  ;;  %v646_v40 = vadd.f32 %v645_v21, %v644_v35 }
 0x14f   :  { %v576_v43 = vadd.f32 %v575_v25, %v574_v50  ;;  %v647_v44 = vrot.slane %v646_v40, 1 }
 0x151   :  { %v577_v48 = vadd.f32 %v576_v43, %v539_v32  ;;  %v648_v60 = vadd.f32 %v647_v44, %v646_v40 }
 0x153   :  { %578 = vst [vmem:[#allocation3] sm:$0x1] %v577_v48  ;;  %v649_v59 = vadd.f32 %v648_v60, %v579_v45 }
 0x155   :  { %650 = vst [vmem:[#allocation4] sm:$0x1] %v649_v59 }
 0x15a   :  { %v654_v18 = vld [vmem:[#allocation3] sm:$0x1] }
 0x15b   :  { %v655_v53 = vmul.f32 0.005, %v654_v18 }
 0x15c   :  { %v656_v57 = vld [vmem:[#allocation4] sm:$0x1] }
 0x15d   :  { %v657_v37 = vmul.f32 0.005, %v656_v57  ;;  %v658_v51 = vmul.f32 %v655_v53, %v655_v53 }
 0x15f   :  { %v659_v1 = vsub.f32 %v657_v37, %v658_v51 }
 0x161   :  { %v660_v5 = vmax.f32 %v659_v1, 0.0 }
 0x163   :  { %v662_v15 = vadd.f32 1e-05, %v660_v5 }
 0x165   :  { %1372 = vrsqrt.f32 %v662_v15 }
 0x172   :  { %v1373_v9 = vpop.eup %1372 }
 0x173   :  { %v664_v23 = vmul.f32 %v1373_v9, %v661_v46 }
 0x175   :  { %v666_v12 = vmul.f32 %v664_v23, %v655_v53  ;;  %v704_v27 = vrot.slane %v664_v23, %v703_v61 }
 0x177   :  { %v667_v31 = vsub.f32 %v665_v11, %v666_v12  ;;  %v706_v17 = vmul.f32 %v1578_v19, %v704_v27  ;;  %v707_v33 = vmul.f32 %v1574_v16, %v704_v27  ;;  %v708_v35 = vmul.f32 %v1580_v20, %v704_v27 }
 0x178   :  { %v709_v50 = vmul.f32 %v1586_v24, %v704_v27  ;;  %v710_v21 = vmul.f32 %v1596_v30, %v704_v27  ;;  %v711_v25 = vmul.f32 %v1603_v36, %v704_v27  ;;  %v712_v40 = vmul.f32 %v1608_v41, %v704_v27 }
 0x179   :  { %v713_v32 = vmul.f32 %v1615_v47, %v704_v27  ;;  %v714_v43 = vmul.f32 %v1620_v55, %v704_v27  ;;  %v715_v44 = vmul.f32 %v1627_v3, %v704_v27  ;;  %v716_v19 = vmul.f32 %v1632_v13, %v704_v27 }
 0x17a   :  { %v717_v16 = vmul.f32 %v1639_v26, %v704_v27  ;;  %v718_v20 = vmul.f32 %v1644_v34, %v704_v27  ;;  %v719_v24 = vmul.f32 %v1651_v42, %v704_v27  ;;  %v720_v30 = vmul.f32 %v1661_v63, %v704_v27 }
 0x17b   :  { %v721_v36 = vmul.f32 %v1671_v28, %v704_v27  ;;  %v722_v41 = vmul.f32 %v1668_v22, %v704_v27  ;;  %v723_v47 = vmul.f32 %v1675_v29, %v704_v27  ;;  %v724_v55 = vmul.f32 %v1684_v52, %v704_v27 }
 0x17c   :  { %v725_v3 = vmul.f32 %v1691_v56, %v704_v27  ;;  %v726_v13 = vmul.f32 %v1698_v58, %v704_v27  ;;  %v727_v26 = vmul.f32 %v1705_v62, %v704_v27  ;;  %v728_v34 = vmul.f32 %v1712_v2, %v704_v27 }
 0x17d   :  { %v729_v42 = vmul.f32 %v1719_v6, %v704_v27  ;;  %v730_v63 = vmul.f32 %v1726_v10, %v704_v27  ;;  %v731_v28 = vmul.f32 %v1733_v14, %v704_v27  ;;  %v732_v22 = vmul.f32 %v1741_v39, %v704_v27 }
 0x17e   :  { %v733_v29 = vmul.f32 %v1748_v54, %v704_v27  ;;  %v742_v45 = vrot.slane %v667_v31, %v703_v61  ;;  %v734_v52 = vmul.f32 %v1753_v49, %v704_v27  ;;  %v735_v56 = vmul.f32 %v1758_v0, %v704_v27 }
 0x17f   :  { %v736_v58 = vmul.f32 %v1763_v4, %v704_v27  ;;  %v737_v62 = vmul.f32 %v1768_v7, %v704_v27 }
 0x180   :  { %v1814_v2 = vadd.f32 %v742_v45, %v706_v17  ;;  %v1816_v6 = vadd.f32 %v742_v45, %v707_v33  ;;  %v1818_v10 = vadd.f32 %v742_v45, %v708_v35  ;;  %v1820_v14 = vadd.f32 %v742_v45, %v709_v50 }
 0x181   :  { %v1822_v39 = vadd.f32 %v742_v45, %v710_v21  ;;  %v1824_v54 = vadd.f32 %v742_v45, %v711_v25  ;;  %v1826_v48 = vadd.f32 %v742_v45, %v712_v40  ;;  %v751_v49 = vadd.f32 %v742_v45, %v713_v32 }
 0x182   :  { %v752_v0 = vadd.f32 %v742_v45, %v714_v43  ;;  %v753_v60 = vadd.f32 %v742_v45, %v715_v44  ;;  %v754_v4 = vadd.f32 %v742_v45, %v716_v19  ;;  %v755_v59 = vadd.f32 %v742_v45, %v717_v16 }
 0x183   :  { %v756_v7 = vadd.f32 %v742_v45, %v718_v20  ;;  %v757_v18 = vadd.f32 %v742_v45, %v719_v24  ;;  %v758_v53 = vadd.f32 %v742_v45, %v720_v30  ;;  %v759_v57 = vadd.f32 %v742_v45, %v721_v36 }
 0x184   :  { %v760_v37 = vadd.f32 %v742_v45, %v722_v41  ;;  %v761_v51 = vadd.f32 %v742_v45, %v723_v47  ;;  %v762_v1 = vadd.f32 %v742_v45, %v724_v55  ;;  %v763_v5 = vadd.f32 %v742_v45, %v725_v3 }
 0x185   :  { %v764_v15 = vadd.f32 %v742_v45, %v726_v13  ;;  %v765_v38 = vadd.f32 %v742_v45, %v727_v26  ;;  %v766_v8 = vadd.f32 %v742_v45, %v728_v34  ;;  %v767_v46 = vadd.f32 %v742_v45, %v729_v42 }
 0x186   :  { %v768_v61 = vadd.f32 %v742_v45, %v730_v63  ;;  %v769_v9 = vadd.f32 %v742_v45, %v731_v28  ;;  %v770_v23 = vadd.f32 %v742_v45, %v732_v22  ;;  %v771_v11 = vadd.f32 %v742_v45, %v733_v29 }
 0x187   :  { %v772_v12 = vadd.f32 %v742_v45, %v734_v52  ;;  %v773_v27 = vadd.f32 %v742_v45, %v735_v56  ;;  %v774_v31 = vadd.f32 %v742_v45, %v736_v58  ;;  %v775_v17 = vadd.f32 %v742_v45, %v737_v62 }
 0x188   :  { %v776_v33 = vmax.f32 %v1814_v2, 0.0  ;;  %v777_v35 = vmax.f32 %v1816_v6, 0.0  ;;  %v778_v50 = vmax.f32 %v1818_v10, 0.0  ;;  %v779_v21 = vmax.f32 %v1820_v14, 0.0 }
 0x189   :  { %v780_v25 = vmax.f32 %v1822_v39, 0.0  ;;  %v781_v40 = vmax.f32 %v1824_v54, 0.0  ;;  %v782_v32 = vmax.f32 %v1826_v48, 0.0  ;;  %v783_v43 = vmax.f32 %v751_v49, 0.0 }
 0x18a   :  { %v784_v44 = vmax.f32 %v752_v0, 0.0  ;;  %v785_v19 = vmax.f32 %v753_v60, 0.0  ;;  %v786_v16 = vmax.f32 %v754_v4, 0.0  ;;  %v787_v20 = vmax.f32 %v755_v59, 0.0 }
 0x18b   :  { %v788_v24 = vmax.f32 %v756_v7, 0.0  ;;  %v789_v30 = vmax.f32 %v757_v18, 0.0  ;;  %v790_v36 = vmax.f32 %v758_v53, 0.0  ;;  %v791_v41 = vmax.f32 %v759_v57, 0.0 }
 0x18c   :  { %v792_v47 = vmax.f32 %v760_v37, 0.0  ;;  %v793_v55 = vmax.f32 %v761_v51, 0.0  ;;  %v794_v3 = vmax.f32 %v762_v1, 0.0  ;;  %v795_v13 = vmax.f32 %v763_v5, 0.0 }
 0x18d   :  { %v796_v26 = vmax.f32 %v764_v15, 0.0  ;;  %v797_v34 = vmax.f32 %v765_v38, 0.0  ;;  %v798_v42 = vmax.f32 %v766_v8, 0.0  ;;  %v799_v63 = vmax.f32 %v767_v46, 0.0 }
 0x18e   :  { %v800_v28 = vmax.f32 %v768_v61, 0.0  ;;  %v801_v22 = vmax.f32 %v769_v9, 0.0  ;;  %v802_v29 = vmax.f32 %v770_v23, 0.0  ;;  %v803_v45 = vmax.f32 %v771_v11, 0.0 }
 0x18f   :  { %v804_v52 = vmax.f32 %v772_v12, 0.0  ;;  %v805_v56 = vmax.f32 %v773_v27, 0.0  ;;  %v806_v58 = vmax.f32 %v774_v31, 0.0  ;;  %v807_v62 = vmax.f32 %v775_v17, 0.0 }
 0x190   :  { %v1087_v2 = vpack.c.bf16 %v777_v35, %v776_v33  ;;  %v1092_v6 = vpack.c.bf16 %v779_v21, %v778_v50  ;;  %v1097_v10 = vpack.c.bf16 %v781_v40, %v780_v25  ;;  %v1102_v14 = vpack.c.bf16 %v783_v43, %v782_v32 }
 0x191   :  { %v1107_v39 = vpack.c.bf16 %v785_v19, %v784_v44  ;;  %v1112_v54 = vpack.c.bf16 %v787_v20, %v786_v16  ;;  %v1117_v48 = vpack.c.bf16 %v789_v30, %v788_v24  ;;  %v1122_v49 = vpack.c.bf16 %v791_v41, %v790_v36 }
 0x192   :  { %1088 = vst [vmem:[%s1887_s4] sm:$0xff] %v1087_v2   ;;  %1164 = vst [vmem:[%s1887_s4 + $0x8] sm:$0xff] %v1092_v6   ;;  %v1127_v0 = vpack.c.bf16 %v793_v55, %v792_v47  ;;  %v1132_v60 = vpack.c.bf16 %v795_v13, %v794_v3  ;;  %v1137_v4 = vpack.c.bf16 %v797_v34, %v796_v26 }
 0x193   :  { %1165 = vst [vmem:[%s1887_s4 + $0x10] sm:$0xff] %v1097_v10   ;;  %1166 = vst [vmem:[%s1887_s4 + $0x18] sm:$0xff] %v1102_v14   ;;  %v1142_v59 = vpack.c.bf16 %v799_v63, %v798_v42  ;;  %v1147_v7 = vpack.c.bf16 %v801_v22, %v800_v28  ;;  %v1152_v18 = vpack.c.bf16 %v803_v45, %v802_v29 }
 0x194   :  { %1167 = vst [vmem:[%s1887_s4 + $0x20] sm:$0xff] %v1107_v39   ;;  %1168 = vst [vmem:[%s1887_s4 + $0x28] sm:$0xff] %v1112_v54   ;;  %v1157_v53 = vpack.c.bf16 %v805_v56, %v804_v52  ;;  %v1162_v57 = vpack.c.bf16 %v807_v62, %v806_v58 }
 0x195   :  { %1169 = vst [vmem:[%s1887_s4 + $0x30] sm:$0xff] %v1117_v48   ;;  %1170 = vst [vmem:[%s1887_s4 + $0x38] sm:$0xff] %v1122_v49  }
 0x196   :  { %1171 = vst [vmem:[%s1887_s4 + $0x40] sm:$0xff] %v1127_v0   ;;  %1172 = vst [vmem:[%s1887_s4 + $0x48] sm:$0xff] %v1132_v60  }
 0x197   :  { %1173 = vst [vmem:[%s1887_s4 + $0x50] sm:$0xff] %v1137_v4   ;;  %1174 = vst [vmem:[%s1887_s4 + $0x58] sm:$0xff] %v1142_v59  }
 0x198   :  { %1175 = vst [vmem:[%s1887_s4 + $0x60] sm:$0xff] %v1147_v7   ;;  %1176 = vst [vmem:[%s1887_s4 + $0x68] sm:$0xff] %v1152_v18  }
 0x199   :  { %1177 = vst [vmem:[%s1887_s4 + $0x70] sm:$0xff] %v1157_v53   ;;  %1178 = vst [vmem:[%s1887_s4 + $0x78] sm:$0xff] %v1162_v57  }

// kernel: dqn_forward.5
= control target key start
LH: loop header
LB: loop body
LE: loop exit
PB: predicated region body
PF: predicated region fallthrough
CT: control target
= control target key end

     0   :  { %s2812_s1 = inlined_call_operand.vmem [shape: bf16[512,128], index: 1, kind: input, shape index: {}]   ;;  %s2813_s0 = inlined_call_operand.vmem [shape: bf16[256,512], index: 0, kind: input, shape index: {}]   ;;  %s2814_s2 = inlined_call_operand.vmem [shape: f32[1,128], index: 2, kind: input, shape index: {}]   ;;  %s2815_s3 = inlined_call_operand.vmem [shape: f32[1,128], index: 3, kind: input, shape index: {}]   ;;  %s2816_s4 = inlined_call_operand.vmem [shape: bf16[1,256,128], index: 4, kind: output, shape index: {}]  }
   0x1   :  { %v1933_v0 = vld [vmem:[%s2812_s1 + $0x78] sm:$0xff]   ;;  %v1937_v4 = vld [vmem:[%s2812_s1 + $0x70] sm:$0xff]   ;;  %v1941_v8 = vld [vmem:[%s2812_s1 + $0x68] sm:$0xff]  }
   0x2   :  { %v1934_v1 = vld [vmem:[%s2812_s1 + $0xf8] sm:$0xff]   ;;  %1708 = vmatprep.subr.bf16.mxu0 %v1933_v0  ;;  %v1938_v5 = vld [vmem:[%s2812_s1 + $0xf0] sm:$0xff]   ;;  %v1942_v9 = vld [vmem:[%s2812_s1 + $0xe8] sm:$0xff]  }
   0x3   :  { %v1935_v2 = vld [vmem:[%s2812_s1 + $0x38] sm:$0xff]   ;;  %1820 = vmatprep.subr.bf16.mxu1 %v1934_v1  ;;  %v1939_v6 = vld [vmem:[%s2812_s1 + $0x30] sm:$0xff]   ;;  %v1943_v10 = vld [vmem:[%s2812_s1 + $0x28] sm:$0xff]  }
   0x4   :  { %v1936_v3 = vld [vmem:[%s2812_s1 + $0xb8] sm:$0xff]   ;;  %1709 = vmatpush3.bf16.msra.mxu0 %v1935_v2  ;;  %v1940_v7 = vld [vmem:[%s2812_s1 + $0xb0] sm:$0xff]   ;;  %v1944_v11 = vld [vmem:[%s2812_s1 + $0xa8] sm:$0xff]  }
   0x5   :  { %1821 = vmatpush3.bf16.msra.mxu1 %v1936_v3  ;;  %1710 = vmatprep.subr.bf16.mxu0 %v1937_v4  ;;  %v1945_v12 = vld [vmem:[%s2812_s1 + $0x60] sm:$0xff]   ;;  %v1949_v16 = vld [vmem:[%s2812_s1 + $0x58] sm:$0xff]   ;;  %v1953_v20 = vld [vmem:[%s2812_s1 + $0x50] sm:$0xff]  }
   0x6   :  { %1822 = vmatprep.subr.bf16.mxu1 %v1938_v5  ;;  %v1946_v13 = vld [vmem:[%s2812_s1 + $0xe0] sm:$0xff]   ;;  %v1950_v17 = vld [vmem:[%s2812_s1 + $0xd8] sm:$0xff]   ;;  %v1954_v21 = vld [vmem:[%s2812_s1 + $0xd0] sm:$0xff]  }
   0x7   :  { %v1947_v14 = vld [vmem:[%s2812_s1 + $0x20] sm:$0xff]   ;;  %v1951_v18 = vld [vmem:[%s2812_s1 + $0x18] sm:$0xff]   ;;  %v1955_v22 = vld [vmem:[%s2812_s1 + $0x10] sm:$0xff]  }
   0x8   :  { %1711 = vmatpush3.bf16.msra.mxu0 %v1939_v6  ;;  %v1948_v15 = vld [vmem:[%s2812_s1 + $0xa0] sm:$0xff]   ;;  %v1952_v19 = vld [vmem:[%s2812_s1 + $0x98] sm:$0xff]   ;;  %v1956_v23 = vld [vmem:[%s2812_s1 + $0x90] sm:$0xff]  }
   0x9   :  { %1823 = vmatpush3.bf16.msra.mxu1 %v1940_v7  ;;  %1712 = vmatprep.subr.bf16.mxu0 %v1941_v8  ;;  %v1957_v24 = vld [vmem:[%s2812_s1 + $0x48] sm:$0xff]   ;;  %v1961_v28 = vld [vmem:[%s2812_s1 + $0x40] sm:$0xff]  }
   0xa   :  { %1824 = vmatprep.subr.bf16.mxu1 %v1942_v9  ;;  %v1958_v25 = vld [vmem:[%s2812_s1 + $0xc8] sm:$0xff]   ;;  %v1962_v29 = vld [vmem:[%s2812_s1 + $0xc0] sm:$0xff]  }
   0xb   :  { %v1959_v26 = vld [vmem:[%s2812_s1 + $0x8] sm:$0xff]   ;;  %v1963_v30 = vld [vmem:[%s2812_s1] sm:$0xff]  }
   0xc   :  { %1713 = vmatpush3.bf16.msra.mxu0 %v1943_v10  ;;  %v1960_v27 = vld [vmem:[%s2812_s1 + $0x88] sm:$0xff]   ;;  %v1964_v31 = vld [vmem:[%s2812_s1 + $0x80] sm:$0xff]  }
   0xd   :  { %1825 = vmatpush3.bf16.msra.mxu1 %v1944_v11  ;;  %1714 = vmatprep.subr.bf16.mxu0 %v1945_v12  ;;  %v1965_v32 = vld [vmem:[%s2813_s0] ss:$16 sps:$4 sm:$0xff]   ;;  %v1967_v33 = vld [vmem:[%s2813_s0 + $0x4] ss:$16 sps:$4 sm:$0xff]   ;;  %v1968_v34 = vld [vmem:[%s2813_s0 + $0x8] ss:$16 sps:$4 sm:$0xff]  }
   0xe   :  { %1826 = vmatprep.subr.bf16.mxu1 %v1946_v13  ;;  %v1970_v35 = vld [vmem:[%s2813_s0 + $0xc] ss:$16 sps:$4 sm:$0xff]   ;;  %696 = vmatprep.mubr.bf16.mxu0 %v1967_v33  ;;  %v1971_v36 = vld [vmem:[%s2813_s0 + $0x24] ss:$16 sps:$4 sm:$0xff]   ;;  %v1975_v38 = vld [vmem:[%s2813_s0 + $0x20] ss:$16 sps:$4 sm:$0xff]  }
   0xf   :  { %857 = vmatprep.mubr.bf16.mxu1 %v1970_v35  ;;  %v1973_v37 = vld [vmem:[%s2813_s0 + $0x2c] ss:$16 sps:$4 sm:$0xff]   ;;  %v1976_v39 = vld [vmem:[%s2813_s0 + $0x28] ss:$16 sps:$4 sm:$0xff]   ;;  %v1977_v40 = vld [vmem:[%s2813_s0 + $0x44] ss:$16 sps:$4 sm:$0xff]  }
  0x10   :  { %1715 = vmatpush3.bf16.msra.mxu0 %v1947_v14  ;;  %v1979_v41 = vld [vmem:[%s2813_s0 + $0x4c] ss:$16 sps:$4 sm:$0xff]   ;;  %v1981_v42 = vld [vmem:[%s2813_s0 + $0x40] ss:$16 sps:$4 sm:$0xff]   ;;  %v1982_v43 = vld [vmem:[%s2813_s0 + $0x48] ss:$16 sps:$4 sm:$0xff]  }
  0x11   :  { %1827 = vmatpush3.bf16.msra.mxu1 %v1948_v15  ;;  %1716 = vmatprep.subr.bf16.mxu0 %v1949_v16  ;;  %v1983_v44 = vld [vmem:[%s2813_s0 + $0x64] ss:$16 sps:$4 sm:$0xff]   ;;  %v1985_v45 = vld [vmem:[%s2813_s0 + $0x6c] ss:$16 sps:$4 sm:$0xff]   ;;  %v1987_v46 = vld [vmem:[%s2813_s0 + $0x60] ss:$16 sps:$4 sm:$0xff]  }
  0x12   :  { %1828 = vmatprep.subr.bf16.mxu1 %v1950_v17  ;;  %v1988_v47 = vld [vmem:[%s2813_s0 + $0x68] ss:$16 sps:$4 sm:$0xff]   ;;  %v1989_v48 = vld [vmem:[%s2813_s0 + $0x84] ss:$16 sps:$4 sm:$0xff]   ;;  %v1991_v49 = vld [vmem:[%s2813_s0 + $0x8c] ss:$16 sps:$4 sm:$0xff]  }
  0x13   :  { %v1993_v50 = vld [vmem:[%s2813_s0 + $0x80] ss:$16 sps:$4 sm:$0xff]   ;;  %v1994_v51 = vld [vmem:[%s2813_s0 + $0x88] ss:$16 sps:$4 sm:$0xff]   ;;  %v1995_v52 = vld [vmem:[%s2813_s0 + $0xa4] ss:$16 sps:$4 sm:$0xff]  }
  0x14   :  { %1717 = vmatpush3.bf16.msra.mxu0 %v1951_v18  ;;  %v1997_v53 = vld [vmem:[%s2813_s0 + $0xac] ss:$16 sps:$4 sm:$0xff]   ;;  %v1999_v54 = vld [vmem:[%s2813_s0 + $0xa0] ss:$16 sps:$4 sm:$0xff]   ;;  %v2000_v55 = vld [vmem:[%s2813_s0 + $0xa8] ss:$16 sps:$4 sm:$0xff]  }
  0x15   :  { %1829 = vmatpush3.bf16.msra.mxu1 %v1952_v19  ;;  %1718 = vmatprep.subr.bf16.mxu0 %v1953_v20  ;;  %v2001_v56 = vld [vmem:[%s2813_s0 + $0xc4] ss:$16 sps:$4 sm:$0xff]   ;;  %v2003_v57 = vld [vmem:[%s2813_s0 + $0xcc] ss:$16 sps:$4 sm:$0xff]   ;;  %v2005_v58 = vld [vmem:[%s2813_s0 + $0xc0] ss:$16 sps:$4 sm:$0xff]  }
  0x16   :  { %1830 = vmatprep.subr.bf16.mxu1 %v1954_v21  ;;  %v2006_v59 = vld [vmem:[%s2813_s0 + $0xc8] ss:$16 sps:$4 sm:$0xff]   ;;  %v2007_v60 = vld [vmem:[%s2813_s0 + $0xe4] ss:$16 sps:$4 sm:$0xff]   ;;  %v2009_v61 = vld [vmem:[%s2813_s0 + $0xec] ss:$16 sps:$4 sm:$0xff]  }
  0x17   :  { %v2011_v62 = vld [vmem:[%s2813_s0 + $0xe0] ss:$16 sps:$4 sm:$0xff]   ;;  %v2012_v63 = vld [vmem:[%s2813_s0 + $0xe8] ss:$16 sps:$4 sm:$0xff]   ;;  %v2013_v0 = vld [vmem:[%s2813_s0 + $0x104] ss:$16 sps:$4 sm:$0xff]  }
  0x18   :  { %1719 = vmatpush3.bf16.msra.mxu0 %v1955_v22  ;;  %v2015_v1 = vld [vmem:[%s2813_s0 + $0x10c] ss:$16 sps:$4 sm:$0xff]   ;;  %v2017_v2 = vld [vmem:[%s2813_s0 + $0x100] ss:$16 sps:$4 sm:$0xff]   ;;  %v2018_v3 = vld [vmem:[%s2813_s0 + $0x108] ss:$16 sps:$4 sm:$0xff]  }
  0x19   :  { %1831 = vmatpush3.bf16.msra.mxu1 %v1956_v23  ;;  %1720 = vmatprep.subr.bf16.mxu0 %v1957_v24  ;;  %v2019_v4 = vld [vmem:[%s2813_s0 + $0x124] ss:$16 sps:$4 sm:$0xff]   ;;  %v2021_v5 = vld [vmem:[%s2813_s0 + $0x12c] ss:$16 sps:$4 sm:$0xff]   ;;  %v2023_v6 = vld [vmem:[%s2813_s0 + $0x120] ss:$16 sps:$4 sm:$0xff]  }
  0x1a   :  { %1832 = vmatprep.subr.bf16.mxu1 %v1958_v25  ;;  %v2024_v7 = vld [vmem:[%s2813_s0 + $0x128] ss:$16 sps:$4 sm:$0xff]   ;;  %v2025_v8 = vld [vmem:[%s2813_s0 + $0x144] ss:$16 sps:$4 sm:$0xff]   ;;  %v2027_v9 = vld [vmem:[%s2813_s0 + $0x14c] ss:$16 sps:$4 sm:$0xff]  }
  0x1b   :  { %v2029_v10 = vld [vmem:[%s2813_s0 + $0x140] ss:$16 sps:$4 sm:$0xff]   ;;  %v2030_v11 = vld [vmem:[%s2813_s0 + $0x148] ss:$16 sps:$4 sm:$0xff]   ;;  %v2031_v12 = vld [vmem:[%s2813_s0 + $0x164] ss:$16 sps:$4 sm:$0xff]  }
  0x1c   :  { %1721 = vmatpush3.bf16.msra.mxu0 %v1959_v26  ;;  %v2033_v13 = vld [vmem:[%s2813_s0 + $0x16c] ss:$16 sps:$4 sm:$0xff]   ;;  %v2035_v14 = vld [vmem:[%s2813_s0 + $0x160] ss:$16 sps:$4 sm:$0xff]   ;;  %v2036_v15 = vld [vmem:[%s2813_s0 + $0x168] ss:$16 sps:$4 sm:$0xff]  }
  0x1d   :  { %1833 = vmatpush3.bf16.msra.mxu1 %v1960_v27  ;;  %1722 = vmatprep.subr.bf16.mxu0 %v1961_v28  ;;  %v2037_v16 = vld [vmem:[%s2813_s0 + $0x184] ss:$16 sps:$4 sm:$0xff]   ;;  %v2039_v17 = vld [vmem:[%s2813_s0 + $0x18c] ss:$16 sps:$4 sm:$0xff]   ;;  %v2041_v18 = vld [vmem:[%s2813_s0 + $0x180] ss:$16 sps:$4 sm:$0xff]  }
  0x1e   :  { %1834 = vmatprep.subr.bf16.mxu1 %v1962_v29  ;;  %v2042_v19 = vld [vmem:[%s2813_s0 + $0x188] ss:$16 sps:$4 sm:$0xff]   ;;  %v2043_v20 = vld [vmem:[%s2813_s0 + $0x1a4] ss:$16 sps:$4 sm:$0xff]   ;;  %v2045_v21 = vld [vmem:[%s2813_s0 + $0x1ac] ss:$16 sps:$4 sm:$0xff]  }
  0x1f   :  { %v2047_v22 = vld [vmem:[%s2813_s0 + $0x1a0] ss:$16 sps:$4 sm:$0xff]   ;;  %v2048_v23 = vld [vmem:[%s2813_s0 + $0x1a8] ss:$16 sps:$4 sm:$0xff]   ;;  %v2049_v24 = vld [vmem:[%s2813_s0 + $0x1c4] ss:$16 sps:$4 sm:$0xff]  }
  0x20   :  { %1723 = vmatpush3.bf16.msra.mxu0 %v1963_v30  ;;  %v2051_v25 = vld [vmem:[%s2813_s0 + $0x1cc] ss:$16 sps:$4 sm:$0xff]   ;;  %v2053_v26 = vld [vmem:[%s2813_s0 + $0x1c0] ss:$16 sps:$4 sm:$0xff]   ;;  %v2054_v27 = vld [vmem:[%s2813_s0 + $0x1c8] ss:$16 sps:$4 sm:$0xff]  }
  0x21   :  { %1835 = vmatpush3.bf16.msra.mxu1 %v1964_v31  ;;  %v2055_v28 = vld [vmem:[%s2813_s0 + $0x1e4] ss:$16 sps:$4 sm:$0xff]   ;;  %v2057_v29 = vld [vmem:[%s2813_s0 + $0x1ec] ss:$16 sps:$4 sm:$0xff]   ;;  %v2059_v30 = vld [vmem:[%s2813_s0 + $0x1e0] ss:$16 sps:$4 sm:$0xff]  }
  0x22   :  { %v2060_v31 = vld [vmem:[%s2813_s0 + $0x1e8] ss:$16 sps:$4 sm:$0xff]  }
  0x23   :  { %697 = vmatmul.mubr.bf16.vlgmr.msra.gmra.mxu0 %v1965_v32 }
  0x24   :  { %858 = vmatmul.mubr.bf16.vlgmr.msra.gmra.mxu1 %v1968_v34  ;;  %704 = vmatprep.mubr.bf16.mxu0 %v1971_v36 }
  0x25   :  { %865 = vmatprep.mubr.bf16.mxu1 %v1973_v37  ;;  %v2063_v37 = vmov 0.0  }
  0x26   :  { %22 = vst [vmem:[#allocation3] sm:$0x1] %v2063_v37  ;;  %23 = vst [vmem:[#allocation4] sm:$0x1] %v2063_v37 }
  0x2b   :  { %705 = vmatmul.mubr.bf16.gmra.mxu0 %v1975_v38 }
  0x2c   :  { %866 = vmatmul.mubr.bf16.gmra.mxu1 %v1976_v39  ;;  %712 = vmatprep.mubr.bf16.mxu0 %v1977_v40 }
  0x2d   :  { %873 = vmatprep.mubr.bf16.mxu1 %v1979_v41 }
  0x33   :  { %713 = vmatmul.mubr.bf16.gmra.mxu0 %v1981_v42 }
  0x34   :  { %874 = vmatmul.mubr.bf16.gmra.mxu1 %v1982_v43  ;;  %720 = vmatprep.mubr.bf16.mxu0 %v1983_v44 }
  0x35   :  { %881 = vmatprep.mubr.bf16.mxu1 %v1985_v45 }
  0x3b   :  { %721 = vmatmul.mubr.bf16.gmra.mxu0 %v1987_v46 }
  0x3c   :  { %882 = vmatmul.mubr.bf16.gmra.mxu1 %v1988_v47  ;;  %728 = vmatprep.mubr.bf16.mxu0 %v1989_v48 }
  0x3d   :  { %889 = vmatprep.mubr.bf16.mxu1 %v1991_v49 }
  0x43   :  { %729 = vmatmul.mubr.bf16.gmra.mxu0 %v1993_v50 }
  0x44   :  { %890 = vmatmul.mubr.bf16.gmra.mxu1 %v1994_v51  ;;  %736 = vmatprep.mubr.bf16.mxu0 %v1995_v52 }
  0x45   :  { %897 = vmatprep.mubr.bf16.mxu1 %v1997_v53 }
  0x4b   :  { %737 = vmatmul.mubr.bf16.gmra.mxu0 %v1999_v54 }
  0x4c   :  { %898 = vmatmul.mubr.bf16.gmra.mxu1 %v2000_v55  ;;  %744 = vmatprep.mubr.bf16.mxu0 %v2001_v56 }
  0x4d   :  { %905 = vmatprep.mubr.bf16.mxu1 %v2003_v57 }
  0x53   :  { %745 = vmatmul.mubr.bf16.gmra.mxu0 %v2005_v58 }
  0x54   :  { %906 = vmatmul.mubr.bf16.gmra.mxu1 %v2006_v59  ;;  %752 = vmatprep.mubr.bf16.mxu0 %v2007_v60 }
  0x55   :  { %913 = vmatprep.mubr.bf16.mxu1 %v2009_v61 }
  0x5b   :  { %753 = vmatmul.mubr.bf16.gmra.mxu0 %v2011_v62 }
  0x5c   :  { %914 = vmatmul.mubr.bf16.gmra.mxu1 %v2012_v63  ;;  %760 = vmatprep.mubr.bf16.mxu0 %v2013_v0 }
  0x5d   :  { %921 = vmatprep.mubr.bf16.mxu1 %v2015_v1 }
  0x63   :  { %761 = vmatmul.mubr.bf16.gmra.mxu0 %v2017_v2 }
  0x64   :  { %922 = vmatmul.mubr.bf16.gmra.mxu1 %v2018_v3  ;;  %768 = vmatprep.mubr.bf16.mxu0 %v2019_v4 }
  0x65   :  { %929 = vmatprep.mubr.bf16.mxu1 %v2021_v5 }
  0x6b   :  { %769 = vmatmul.mubr.bf16.gmra.mxu0 %v2023_v6 }
  0x6c   :  { %930 = vmatmul.mubr.bf16.gmra.mxu1 %v2024_v7  ;;  %776 = vmatprep.mubr.bf16.mxu0 %v2025_v8 }
  0x6d   :  { %937 = vmatprep.mubr.bf16.mxu1 %v2027_v9 }
  0x73   :  { %777 = vmatmul.mubr.bf16.gmra.mxu0 %v2029_v10 }
  0x74   :  { %938 = vmatmul.mubr.bf16.gmra.mxu1 %v2030_v11  ;;  %784 = vmatprep.mubr.bf16.mxu0 %v2031_v12 }
  0x75   :  { %945 = vmatprep.mubr.bf16.mxu1 %v2033_v13 }
  0x7b   :  { %785 = vmatmul.mubr.bf16.gmra.mxu0 %v2035_v14 }
  0x7c   :  { %946 = vmatmul.mubr.bf16.gmra.mxu1 %v2036_v15  ;;  %792 = vmatprep.mubr.bf16.mxu0 %v2037_v16 }
  0x7d   :  { %953 = vmatprep.mubr.bf16.mxu1 %v2039_v17 }
  0x83   :  { %793 = vmatmul.mubr.bf16.gmra.mxu0 %v2041_v18 }
  0x84   :  { %954 = vmatmul.mubr.bf16.gmra.mxu1 %v2042_v19  ;;  %800 = vmatprep.mubr.bf16.mxu0 %v2043_v20 }
  0x85   :  { %961 = vmatprep.mubr.bf16.mxu1 %v2045_v21 }
  0x8b   :  { %801 = vmatmul.mubr.bf16.gmra.mxu0 %v2047_v22 }
  0x8c   :  { %962 = vmatmul.mubr.bf16.gmra.mxu1 %v2048_v23  ;;  %808 = vmatprep.mubr.bf16.mxu0 %v2049_v24 }
  0x8d   :  { %969 = vmatprep.mubr.bf16.mxu1 %v2051_v25 }
  0x93   :  { %809 = vmatmul.mubr.bf16.gmra.mxu0 %v2053_v26 }
  0x94   :  { %970 = vmatmul.mubr.bf16.gmra.mxu1 %v2054_v27  ;;  %816 = vmatprep.mubr.bf16.mxu0 %v2055_v28 }
  0x95   :  { %977 = vmatprep.mubr.bf16.mxu1 %v2057_v29 }
  0x9b   :  { %817 = vmatmul.mubr.bf16.gmra.mxu0 %v2059_v30 }
  0x9c   :  { %978 = vmatmul.mubr.bf16.gmra.mxu1 %v2060_v31 }
  0xe3   :  { %v1724_v32 = vpop.f32.mrf.mxu0 }
  0xe4   :  { %v1836_v33 = vpop.f32.mrf.mxu1 }
  0xe5   :  { %v1725_v34 = vpop.f32.mrf.mxu0 }
  0xe6   :  { %v1726_v35 = vadd.f32 %v1725_v34, %v1724_v32  ;;  %v1837_v36 = vpop.f32.mrf.mxu1 }
  0xe7   :  { %v1838_v38 = vadd.f32 %v1837_v36, %v1836_v33  ;;  %v1727_v39 = vpop.f32.mrf.mxu0 }
  0xe8   :  { %v1839_v40 = vpop.f32.mrf.mxu1 }
  0xe9   :  { %v2377_v41 = vadd.f32 %v1838_v38, %v1726_v35  ;;  %v1728_v42 = vpop.f32.mrf.mxu0 }
  0xea   :  { %v1840_v43 = vpop.f32.mrf.mxu1  ;;  %v1729_v30 = vadd.f32 %v1728_v42, %v1727_v39 }
  0xeb   :  { %v1730_v44 = vpop.f32.mrf.mxu0  ;;  %v1841_v31 = vadd.f32 %v1840_v43, %v1839_v40 }
  0xec   :  { %v1842_v45 = vpop.f32.mrf.mxu1 }
  0xed   :  { %v1731_v46 = vpop.f32.mrf.mxu0  ;;  %v2447_v38 = vadd.f32 %v1841_v31, %v1729_v30 }
  0xee   :  { %v1843_v47 = vpop.f32.mrf.mxu1  ;;  %v1732_v34 = vadd.f32 %v1731_v46, %v1730_v44 }
  0xef   :  { %v1733_v48 = vpop.f32.mrf.mxu0  ;;  %v1844_v35 = vadd.f32 %v1843_v47, %v1842_v45  ;;  %v1062_v45 = vmul.f32 %v2447_v38, %v2447_v38 }
  0xf0   :  { %v1845_v49 = vpop.f32.mrf.mxu1 }
  0xf1   :  { %v1734_v50 = vpop.f32.mrf.mxu0  ;;  %v2453_v39 = vadd.f32 %v1844_v35, %v1732_v34 }
  0xf2   :  { %v1846_v51 = vpop.f32.mrf.mxu1 }
  0xf3   :  { %v1736_v52 = vpop.f32.mrf.mxu0 }
  0xf4   :  { %v1848_v53 = vpop.f32.mrf.mxu1 }
  0xf5   :  { %v1737_v54 = vpop.f32.mrf.mxu0 }
  0xf6   :  { %v1849_v55 = vpop.f32.mrf.mxu1  ;;  %v1738_v40 = vadd.f32 %v1737_v54, %v1736_v52  ;;  %v1063_v52 = vmul.f32 %v2453_v39, %v2453_v39 }
  0xf7   :  { %v1739_v56 = vpop.f32.mrf.mxu0  ;;  %v1850_v42 = vadd.f32 %v1849_v55, %v1848_v53 }
  0xf8   :  { %v1851_v57 = vpop.f32.mrf.mxu1 }
  0xf9   :  { %v1740_v58 = vpop.f32.mrf.mxu0  ;;  %v2471_v53 = vadd.f32 %v1850_v42, %v1738_v40 }
  0xfa   :  { %v1852_v59 = vpop.f32.mrf.mxu1  ;;  %v1741_v47 = vadd.f32 %v1740_v58, %v1739_v56  ;;  %v1021_v56 = vadd.f32 %v2447_v38, %v2377_v41 }
  0xfb   :  { %v1742_v60 = vpop.f32.mrf.mxu0  ;;  %v1065_v34 = vmul.f32 %v2471_v53, %v2471_v53 }
  0xfc   :  { %v1854_v61 = vpop.f32.mrf.mxu1 }
  0xfd   :  { %v1743_v62 = vpop.f32.mrf.mxu0 }
  0xfe   :  { %v1855_v63 = vpop.f32.mrf.mxu1  ;;  %v1744_v54 = vadd.f32 %v1743_v62, %v1742_v60  ;;  %v1022_v62 = vadd.f32 %v1021_v56, %v2453_v39 }
  0xff   :  { %v2379_v0 = vpop.f32.mrf.mxu0  ;;  %v1856_v55 = vadd.f32 %v1855_v63, %v1854_v61 }
 0x100   :  { %v2381_v1 = vpop.f32.mrf.mxu1 }
 0x101   :  { %v2383_v2 = vpop.f32.mrf.mxu0  ;;  %v2494_v35 = vadd.f32 %v1856_v55, %v1744_v54 }
 0x102   :  { %v2385_v3 = vpop.f32.mrf.mxu1  ;;  %v1747_v31 = vadd.f32 %v2383_v2, %v2379_v0 }
 0x103   :  { %v2387_v4 = vpop.f32.mrf.mxu0  ;;  %v1859_v60 = vadd.f32 %v2385_v3, %v2381_v1 }
 0x104   :  { %v2389_v5 = vpop.f32.mrf.mxu1 }
 0x105   :  { %v2391_v6 = vpop.f32.mrf.mxu0 }
 0x106   :  { %v2393_v7 = vpop.f32.mrf.mxu1  ;;  %v1750_v42 = vadd.f32 %v2391_v6, %v2387_v4 }
 0x107   :  { %v2395_v8 = vpop.f32.mrf.mxu0  ;;  %v1862_v0 = vadd.f32 %v2393_v7, %v2389_v5 }
 0x108   :  { %v2397_v9 = vpop.f32.mrf.mxu1 }
 0x109   :  { %v2399_v10 = vpop.f32.mrf.mxu0  ;;  %v2522_v55 = vadd.f32 %v1862_v0, %v1750_v42 }
 0x10a   :  { %v2401_v11 = vpop.f32.mrf.mxu1 }
 0x10b   :  { %v2403_v12 = vpop.f32.mrf.mxu0  ;;  %v1865_v4 = vadd.f32 %v2401_v11, %v2397_v9 }
 0x10c   :  { %v2405_v13 = vpop.f32.mrf.mxu1 }
 0x10d   :  { %v2407_v14 = vpop.f32.mrf.mxu0 }
 0x10e   :  { %v2409_v15 = vpop.f32.mrf.mxu1  ;;  %v1756_v56 = vadd.f32 %v2407_v14, %v2403_v12 }
 0x10f   :  { %v2411_v16 = vpop.f32.mrf.mxu0 }
 0x110   :  { %v2413_v17 = vpop.f32.mrf.mxu1 }
 0x111   :  { %v2415_v18 = vpop.f32.mrf.mxu0 }
 0x112   :  { %v2417_v19 = vpop.f32.mrf.mxu1 }
 0x113   :  { %v2419_v20 = vpop.f32.mrf.mxu0  ;;  %v1871_v12 = vadd.f32 %v2417_v19, %v2413_v17 }
 0x114   :  { %v2421_v21 = vpop.f32.mrf.mxu1 }
 0x115   :  { %v2423_v22 = vpop.f32.mrf.mxu0 }
 0x116   :  { %v2425_v23 = vpop.f32.mrf.mxu1  ;;  %v1762_v42 = vadd.f32 %v2423_v22, %v2419_v20 }
 0x117   :  { %v2427_v24 = vpop.f32.mrf.mxu0 }
 0x118   :  { %v2429_v25 = vpop.f32.mrf.mxu1 }
 0x119   :  { %2817 = vst [vmem:[#allocation5_spill] sm:$0xff] %v2429_v25  ;;  %v2431_v26 = vpop.f32.mrf.mxu0  ;;  %v1735_v25 = vadd.f32 %v1734_v50, %v1733_v48  ;;  %v1853_v48 = vadd.f32 %v1852_v59, %v1851_v57  ;;  %v1061_v50 = vmul.f32 %v2377_v41, %v2377_v41 }
 0x11a   :  { %2818 = vst [vmem:[#allocation6_spill] sm:$0xff] %v2431_v26  ;;  %v2433_v27 = vpop.f32.mrf.mxu1 }
 0x11b   :  { %2819 = vst [vmem:[#allocation7_spill] sm:$0xff] %v2433_v27  ;;  %v2435_v28 = vpop.f32.mrf.mxu0  ;;  %v1847_v27 = vadd.f32 %v1846_v51, %v1845_v49  ;;  %v1093_v57 = vadd.f32 %v1062_v45, %v1061_v50  ;;  %v2481_v59 = vadd.f32 %v1853_v48, %v1741_v47  ;;  %v2509_v48 = vadd.f32 %v1859_v60, %v1747_v31 }
 0x11c   :  { %2820 = vst [vmem:[#allocation8_spill] sm:$0xff] %v2435_v28  ;;  %v2437_v29 = vpop.f32.mrf.mxu1  ;;  %v1753_v50 = vadd.f32 %v2399_v10, %v2395_v8  ;;  %v1868_v8 = vadd.f32 %v2409_v15, %v2405_v13  ;;  %v1759_v60 = vadd.f32 %v2415_v18, %v2411_v16  ;;  %v1874_v16 = vadd.f32 %v2425_v23, %v2421_v21 }
 0x11d   :  { %v2439_v32 = vpop.f32.mrf.mxu0  ;;  %v2461_v46 = vadd.f32 %v1847_v27, %v1735_v25  ;;  %v1094_v63 = vadd.f32 %v1093_v57, %v1063_v52  ;;  %v1066_v45 = vmul.f32 %v2481_v59, %v2481_v59  ;;  %v1067_v52 = vmul.f32 %v2494_v35, %v2494_v35 }
 0x11e   :  { %v2441_v33 = vpop.f32.mrf.mxu1  ;;  %v2535_v31 = vadd.f32 %v1865_v4, %v1753_v50 }
 0x11f   :  { %v2443_v36 = vpop.f32.mrf.mxu0  ;;  %v1064_v58 = vmul.f32 %v2461_v46, %v2461_v46  ;;  %v1023_v1 = vadd.f32 %v1022_v62, %v2461_v46 }
 0x120   :  { %v2445_v37 = vpop.f32.mrf.mxu1  ;;  %v2822_v20 = vld [vmem:[#allocation5_spill] sm:$0xff] }
 0x121   :  { %v2449_v26 = vpop.f32.mrf.mxu0  ;;  %v1095_v3 = vadd.f32 %v1094_v63, %v1064_v58  ;;  %v1024_v5 = vadd.f32 %v1023_v1, %v2471_v53  ;;  %v1068_v58 = vmul.f32 %v2509_v48, %v2509_v48  ;;  %v1069_v63 = vmul.f32 %v2522_v55, %v2522_v55  ;;  %v2821_v50 = vld [vmem:[#allocation6_spill] sm:$0xff] }
 0x122   :  { %v2451_v28 = vpop.f32.mrf.mxu1  ;;  %v1070_v1 = vmul.f32 %v2535_v31, %v2535_v31  ;;  %v1765_v4 = vadd.f32 %v2821_v50, %v2427_v24  ;;  %v2823_v22 = vld [vmem:[#allocation7_spill] sm:$0xff]  ;;  %v1880_v24 = vadd.f32 %v2441_v33, %v2437_v29 }
 0x123   :  { %v2455_v43 = vpop.f32.mrf.mxu0  ;;  %v1096_v7 = vadd.f32 %v1095_v3, %v1065_v34  ;;  %v1025_v9 = vadd.f32 %v1024_v5, %v2481_v59  ;;  %v2548_v34 = vadd.f32 %v1868_v8, %v1756_v56  ;;  %v2561_v3 = vadd.f32 %v1871_v12, %v1759_v60 }
 0x124   :  { %v2457_v44 = vpop.f32.mrf.mxu1  ;;  %v1877_v5 = vadd.f32 %v2823_v22, %v2822_v20  ;;  %v2572_v56 = vadd.f32 %v1874_v16, %v1762_v42  ;;  %v1771_v42 = vadd.f32 %v2449_v26, %v2443_v36  ;;  %v1883_v16 = vadd.f32 %v2451_v28, %v2445_v37 }
 0x125   :  { %v2463_v49 = vpop.f32.mrf.mxu0  ;;  %v1097_v11 = vadd.f32 %v1096_v7, %v1066_v45  ;;  %v1026_v13 = vadd.f32 %v1025_v9, %v2494_v35  ;;  %v2824_v9 = vld [vmem:[#allocation8_spill] sm:$0xff] }
 0x126   :  { %v2467_v51 = vpop.f32.mrf.mxu1  ;;  %v1073_v33 = vmul.f32 %v2572_v56, %v2572_v56  ;;  %v1774_v50 = vadd.f32 %v2463_v49, %v2455_v43  ;;  %v2599_v22 = vadd.f32 %v1883_v16, %v1771_v42 }
 0x127   :  { %v2473_v30 = vpop.f32.mrf.mxu0  ;;  %v1098_v15 = vadd.f32 %v1097_v11, %v1067_v52  ;;  %v1027_v19 = vadd.f32 %v1026_v13, %v2509_v48  ;;  %v1071_v52 = vmul.f32 %v2548_v34, %v2548_v34  ;;  %v1768_v11 = vadd.f32 %v2439_v32, %v2824_v9 }
 0x128   :  { %v2475_v25 = vpop.f32.mrf.mxu1  ;;  %v1072_v13 = vmul.f32 %v2561_v3, %v2561_v3 }
 0x129   :  { %v2483_v27 = vpop.f32.mrf.mxu0  ;;  %v1099_v0 = vadd.f32 %v1098_v15, %v1068_v58  ;;  %v1028_v23 = vadd.f32 %v1027_v19, %v2522_v55 }
 0x12a   :  { %v2489_v61 = vpop.f32.mrf.mxu1 }
 0x12b   :  { %v2496_v40 = vpop.f32.mrf.mxu0  ;;  %v1100_v7 = vadd.f32 %v1099_v0, %v1069_v63  ;;  %v1029_v60 = vadd.f32 %v1028_v23, %v2535_v31  ;;  %v2581_v63 = vadd.f32 %v1877_v5, %v1765_v4  ;;  %v1886_v4 = vadd.f32 %v2467_v51, %v2457_v44 }
 0x12c   :  { %v2502_v2 = vpop.f32.mrf.mxu1  ;;  %v1777_v5 = vadd.f32 %v2483_v27, %v2473_v30  ;;  %v1889_v23 = vadd.f32 %v2489_v61, %v2475_v25 }
 0x12d   :  { %v2507_v47 = vpop.f32.mrf.mxu0  ;;  %v1101_v12 = vadd.f32 %v1100_v7, %v1070_v1  ;;  %v1030_v19 = vadd.f32 %v1029_v60, %v2548_v34  ;;  %v2590_v1 = vadd.f32 %v1880_v24, %v1768_v11  ;;  %v1074_v20 = vmul.f32 %v2581_v63, %v2581_v63 }
 0x12e   :  { %v2515_v6 = vpop.f32.mrf.mxu1  ;;  %v1780_v9 = vadd.f32 %v2507_v47, %v2496_v40  ;;  %v1076_v24 = vmul.f32 %v2599_v22, %v2599_v22  ;;  %v2617_v60 = vadd.f32 %v1889_v23, %v1777_v5 }
 0x12f   :  { %v2520_v54 = vpop.f32.mrf.mxu0  ;;  %v1102_v29 = vadd.f32 %v1101_v12, %v1071_v52  ;;  %v1031_v36 = vadd.f32 %v1030_v19, %v2561_v3  ;;  %v1075_v7 = vmul.f32 %v2590_v1, %v2590_v1  ;;  %v2608_v52 = vadd.f32 %v1886_v4, %v1774_v50 }
 0x130   :  { %v2528_v10 = vpop.f32.mrf.mxu1  ;;  %v1892_v11 = vadd.f32 %v2515_v6, %v2502_v2 }
 0x131   :  { %v2531_v57 = vpop.f32.mrf.mxu0  ;;  %v1103_v28 = vadd.f32 %v1102_v29, %v1072_v13  ;;  %v1032_v49 = vadd.f32 %v1031_v36, %v2572_v56  ;;  %v1077_v42 = vmul.f32 %v2608_v52, %v2608_v52 }
 0x132   :  { %v2541_v14 = vpop.f32.mrf.mxu1  ;;  %v1783_v13 = vadd.f32 %v2531_v57, %v2520_v54  ;;  %v2626_v16 = vadd.f32 %v1892_v11, %v1780_v9 }
 0x133   :  { %v2544_v62 = vpop.f32.mrf.mxu0  ;;  %v1104_v44 = vadd.f32 %v1103_v28, %v1073_v33  ;;  %v1033_v25 = vadd.f32 %v1032_v49, %v2581_v63  ;;  %v1895_v40 = vadd.f32 %v2541_v14, %v2528_v10  ;;  %v1078_v10 = vmul.f32 %v2617_v60, %v2617_v60 }
 0x134   :  { %v2554_v18 = vpop.f32.mrf.mxu1 }
 0x135   :  { %v2556_v17 = vpop.f32.mrf.mxu0  ;;  %v1105_v61 = vadd.f32 %v1104_v44, %v1074_v20  ;;  %v1034_v2 = vadd.f32 %v1033_v25, %v2590_v1  ;;  %v2634_v4 = vadd.f32 %v1895_v40, %v1783_v13 }
 0x136   :  { %v1897_v45 = vpop.f32.mrf.mxu1  ;;  %v1786_v29 = vadd.f32 %v2556_v17, %v2544_v62  ;;  %v1079_v62 = vmul.f32 %v2626_v16, %v2626_v16 }
 0x137   :  { %v2567_v21 = vpop.f32.mrf.mxu0  ;;  %v1106_v6 = vadd.f32 %v1105_v61, %v1075_v7  ;;  %v1898_v33 = vadd.f32 %v1897_v45, %v2554_v18  ;;  %v1035_v54 = vadd.f32 %v1034_v2, %v2599_v22 }
 0x138   :  { %v1899_v8 = vpop.f32.mrf.mxu1 }
 0x139   :  { %v1788_v58 = vpop.f32.mrf.mxu0  ;;  %v1107_v57 = vadd.f32 %v1106_v6, %v1076_v24  ;;  %v1036_v5 = vadd.f32 %v1035_v54, %v2608_v52  ;;  %v2640_v17 = vadd.f32 %v1898_v33, %v1786_v29 }
 0x13a   :  { %v1900_v15 = vpop.f32.mrf.mxu1  ;;  %v1789_v36 = vadd.f32 %v1788_v58, %v2567_v21  ;;  %v1080_v21 = vmul.f32 %v2634_v4, %v2634_v4 }
 0x13b   :  { %v1790_v32 = vpop.f32.mrf.mxu0  ;;  %v1901_v28 = vadd.f32 %v1900_v15, %v1899_v8  ;;  %v1108_v23 = vadd.f32 %v1107_v57, %v1077_v42  ;;  %v1037_v7 = vadd.f32 %v1036_v5, %v2617_v60 }
 0x13c   :  { %v1902_v0 = vpop.f32.mrf.mxu1 }
 0x13d   :  { %v1791_v26 = vpop.f32.mrf.mxu0  ;;  %v1109_v9 = vadd.f32 %v1108_v23, %v1078_v10  ;;  %v2645_v8 = vadd.f32 %v1901_v28, %v1789_v36  ;;  %v1038_v61 = vadd.f32 %v1037_v7, %v2626_v16 }
 0x13e   :  { %v1903_v37 = vpop.f32.mrf.mxu1  ;;  %v1792_v45 = vadd.f32 %v1791_v26, %v1790_v32  ;;  %v1081_v32 = vmul.f32 %v2640_v17, %v2640_v17 }
 0x13f   :  { %v1793_v43 = vpop.f32.mrf.mxu0  ;;  %v1904_v49 = vadd.f32 %v1903_v37, %v1902_v0  ;;  %v1110_v24 = vadd.f32 %v1109_v9, %v1079_v62  ;;  %v1039_v2 = vadd.f32 %v1038_v61, %v2634_v4 }
 0x140   :  { %v1905_v51 = vpop.f32.mrf.mxu1 }
 0x141   :  { %v1794_v30 = vpop.f32.mrf.mxu0  ;;  %v2650_v0 = vadd.f32 %v1904_v49, %v1792_v45  ;;  %v1111_v42 = vadd.f32 %v1110_v24, %v1080_v21 }
 0x142   :  { %v1906_v27 = vpop.f32.mrf.mxu1  ;;  %v1795_v58 = vadd.f32 %v1794_v30, %v1793_v43  ;;  %v1082_v43 = vmul.f32 %v2645_v8, %v2645_v8 }
 0x143   :  { %v1796_v12 = vpop.f32.mrf.mxu0  ;;  %v1907_v15 = vadd.f32 %v1906_v27, %v1905_v51  ;;  %v1040_v27 = vadd.f32 %v1039_v2, %v2640_v17  ;;  %v1112_v57 = vadd.f32 %v1111_v42, %v1081_v32 }
 0x144   :  { %v1908_v47 = vpop.f32.mrf.mxu1 }
 0x145   :  { %v1797_v19 = vpop.f32.mrf.mxu0  ;;  %v2655_v51 = vadd.f32 %v1907_v15, %v1795_v58  ;;  %v1113_v5 = vadd.f32 %v1112_v57, %v1082_v43 }
 0x146   :  { %v1909_v50 = vpop.f32.mrf.mxu1  ;;  %v1798_v26 = vadd.f32 %v1797_v19, %v1796_v12  ;;  %v1083_v12 = vmul.f32 %v2650_v0, %v2650_v0 }
 0x147   :  { %v1799_v14 = vpop.f32.mrf.mxu0  ;;  %v1910_v37 = vadd.f32 %v1909_v50, %v1908_v47  ;;  %v1041_v50 = vadd.f32 %v1040_v27, %v2645_v8  ;;  %v1084_v23 = vmul.f32 %v2655_v51, %v2655_v51 }
 0x148   :  { %v1911_v20 = vpop.f32.mrf.mxu1 }
 0x149   :  { %v1800_v18 = vpop.f32.mrf.mxu0  ;;  %v2660_v47 = vadd.f32 %v1910_v37, %v1798_v26 }
 0x14a   :  { %v1912_v44 = vpop.f32.mrf.mxu1  ;;  %v1801_v29 = vadd.f32 %v1800_v18, %v1799_v14  ;;  %v1042_v14 = vadd.f32 %v1041_v50, %v2650_v0 }
 0x14b   :  { %v1802_v11 = vpop.f32.mrf.mxu0  ;;  %v1913_v33 = vadd.f32 %v1912_v44, %v1911_v20  ;;  %v1114_v44 = vadd.f32 %v1113_v5, %v1083_v12  ;;  %v1085_v7 = vmul.f32 %v2660_v47, %v2660_v47 }
 0x14c   :  { %v1914_v25 = vpop.f32.mrf.mxu1 }
 0x14d   :  { %v1803_v13 = vpop.f32.mrf.mxu0  ;;  %v2666_v20 = vadd.f32 %v1913_v33, %v1801_v29  ;;  %v1115_v61 = vadd.f32 %v1114_v44, %v1084_v23 }
 0x14e   :  { %v1915_v40 = vpop.f32.mrf.mxu1  ;;  %v1804_v10 = vadd.f32 %v1803_v13, %v1802_v11  ;;  %v1043_v11 = vadd.f32 %v1042_v14, %v2655_v51 }
 0x14f   :  { %v1805_v6 = vpop.f32.mrf.mxu0  ;;  %v1916_v36 = vadd.f32 %v1915_v40, %v1914_v25  ;;  %v1086_v32 = vmul.f32 %v2666_v20, %v2666_v20  ;;  %v1116_v40 = vadd.f32 %v1115_v61, %v1085_v7 }
 0x150   :  { %v1917_v30 = vpop.f32.mrf.mxu1  ;;  %v1044_v13 = vadd.f32 %v1043_v11, %v2660_v47 }
 0x151   :  { %v1806_v54 = vpop.f32.mrf.mxu0  ;;  %v2671_v21 = vadd.f32 %v1916_v36, %v1804_v10 }
 0x152   :  { %v1918_v19 = vpop.f32.mrf.mxu1  ;;  %v1807_v18 = vadd.f32 %v1806_v54, %v1805_v6  ;;  %v1045_v42 = vadd.f32 %v1044_v13, %v2666_v20  ;;  %v1117_v54 = vadd.f32 %v1116_v40, %v1086_v32 }
 0x153   :  { %v1808_v28 = vpop.f32.mrf.mxu0  ;;  %v1919_v45 = vadd.f32 %v1918_v19, %v1917_v30  ;;  %v1087_v43 = vmul.f32 %v2671_v21, %v2671_v21 }
 0x154   :  { %v1920_v62 = vpop.f32.mrf.mxu1  ;;  %v1046_v57 = vadd.f32 %v1045_v42, %v2671_v21 }
 0x155   :  { %v1809_v49 = vpop.f32.mrf.mxu0  ;;  %v2676_v26 = vadd.f32 %v1919_v45, %v1807_v18 }
 0x156   :  { %v1921_v9 = vpop.f32.mrf.mxu1  ;;  %v1810_v58 = vadd.f32 %v1809_v49, %v1808_v28  ;;  %v1118_v28 = vadd.f32 %v1117_v54, %v1087_v43 }
 0x157   :  { %v1922_v15 = vadd.f32 %v1921_v9, %v1920_v62  ;;  %v1811_v25 = vpop.f32.mrf.mxu0  ;;  %v1088_v12 = vmul.f32 %v2676_v26, %v2676_v26  ;;  %v1047_v5 = vadd.f32 %v1046_v57, %v2676_v26 }
 0x158   :  { %v1923_v24 = vpop.f32.mrf.mxu1 }
 0x159   :  { %v1812_v37 = vpop.f32.mrf.mxu0  ;;  %v2681_v30 = vadd.f32 %v1922_v15, %v1810_v58  ;;  %v1119_v45 = vadd.f32 %v1118_v28, %v1088_v12 }
 0x15a   :  { %v1813_v2 = vadd.f32 %v1812_v37, %v1811_v25  ;;  %v1924_v6 = vpop.f32.mrf.mxu1 }
 0x15b   :  { %v1925_v27 = vadd.f32 %v1924_v6, %v1923_v24  ;;  %v1814_v29 = vpop.f32.mrf.mxu0  ;;  %v1089_v23 = vmul.f32 %v2681_v30, %v2681_v30  ;;  %v1048_v49 = vadd.f32 %v1047_v5, %v2681_v30 }
 0x15c   :  { %v1926_v33 = vpop.f32.mrf.mxu1 }
 0x15d   :  { %v2686_v19 = vadd.f32 %v1925_v27, %v1813_v2  ;;  %v1815_v50 = vpop.f32.mrf.mxu0  ;;  %v1120_v15 = vadd.f32 %v1119_v45, %v1089_v23  ;;  %v1060_v23 = vld [vmem:[#allocation4] sm:$0x1] }
 0x15e   :  { %v1816_v10 = vadd.f32 %v1815_v50, %v1814_v29  ;;  %v1927_v36 = vpop.f32.mrf.mxu1 }
 0x15f   :  { %v1928_v62 = vadd.f32 %v1927_v36, %v1926_v33  ;;  %v1817_v14 = vpop.f32.mrf.mxu0  ;;  %v1090_v44 = vmul.f32 %v2686_v19, %v2686_v19  ;;  %v1049_v25 = vadd.f32 %v1048_v49, %v2686_v19  ;;  %v1020_v36 = vld [vmem:[#allocation3] sm:$0x1] }
 0x160   :  { %v1929_v18 = vpop.f32.mrf.mxu1 }
 0x161   :  { %v2694_v7 = vadd.f32 %v1928_v62, %v1816_v10  ;;  %v1818_v9 = vpop.f32.mrf.mxu0  ;;  %v1121_v13 = vadd.f32 %v1120_v15, %v1090_v44 }
 0x162   :  { %v1819_v11 = vadd.f32 %v1818_v9, %v1817_v14  ;;  %v1930_v58 = vpop.f32.mrf.mxu1 }
 0x163   :  { %v1091_v61 = vmul.f32 %v2694_v7, %v2694_v7  ;;  %v1931_v24 = vadd.f32 %v1930_v58, %v1929_v18  ;;  %v1050_v32 = vadd.f32 %v1049_v25, %v2694_v7 }
 0x165   :  { %v2700_v37 = vadd.f32 %v1931_v24, %v1819_v11  ;;  %v1122_v40 = vadd.f32 %v1121_v13, %v1091_v61  ;;  %v1182_v61 = vlaneseq  ;;  %v1142_v13 = vld [vmem:[%s2814_s2] sm:$0x1] }
 0x167   :  { %v1051_v2 = vadd.f32 %v1050_v32, %v2700_v37  ;;  %v1092_v6 = vmul.f32 %v2700_v37, %v2700_v37  ;;  %v1183_v24 = vshrl.u32 %v1182_v61, 7 }
 0x169   :  { %v1052_v42 = vrot.slane %v1051_v2, 4  ;;  %v1123_v43 = vadd.f32 %v1122_v40, %v1092_v6  ;;  %v1184_v32 = vsub.s32 0, %v1183_v24  ;;  %v1146_v6 = vld [vmem:[%s2815_s3] sm:$0x1] }
 0x16b   :  { %v1053_v27 = vadd.f32 %v1052_v42, %v1051_v2  ;;  %v1124_v29 = vrot.slane %v1123_v43, 4 }
 0x16d   :  { %v1054_v33 = vrot.slane %v1053_v27, 2  ;;  %v1125_v54 = vadd.f32 %v1124_v29, %v1123_v43 }
 0x16f   :  { %v1055_v57 = vadd.f32 %v1054_v33, %v1053_v27  ;;  %v1126_v12 = vrot.slane %v1125_v54, 2 }
 0x171   :  { %v1056_v50 = vrot.slane %v1055_v57, 1  ;;  %v1127_v10 = vadd.f32 %v1126_v12, %v1125_v54 }
 0x173   :  { %v1057_v28 = vadd.f32 %v1056_v50, %v1055_v57  ;;  %v1128_v5 = vrot.slane %v1127_v10, 1 }
 0x175   :  { %v1058_v62 = vadd.f32 %v1057_v28, %v1020_v36  ;;  %v1129_v14 = vadd.f32 %v1128_v5, %v1127_v10 }
 0x177   :  { %1059 = vst [vmem:[#allocation3] sm:$0x1] %v1058_v62  ;;  %v1130_v18 = vadd.f32 %v1129_v14, %v1060_v23 }
 0x179   :  { %1131 = vst [vmem:[#allocation4] sm:$0x1] %v1130_v18 }
 0x17e   :  { %v1135_v45 = vld [vmem:[#allocation3] sm:$0x1] }
 0x17f   :  { %v1136_v49 = vmul.f32 0.03125, %v1135_v45 }
 0x180   :  { %v1137_v44 = vld [vmem:[#allocation4] sm:$0x1] }
 0x181   :  { %v1138_v9 = vmul.f32 0.03125, %v1137_v44  ;;  %v1139_v11 = vmul.f32 %v1136_v49, %v1136_v49 }
 0x183   :  { %v1140_v58 = vsub.f32 %v1138_v9, %v1139_v11 }
 0x185   :  { %v1141_v15 = vmax.f32 %v1140_v58, 0.0 }
 0x187   :  { %v1143_v25 = vadd.f32 1e-05, %v1141_v15 }
 0x189   :  { %2061 = vrsqrt.f32 %v1143_v25 }
 0x196   :  { %v2062_v40 = vpop.eup %2061 }
 0x197   :  { %v1145_v2 = vmul.f32 %v2062_v40, %v1142_v13 }
 0x199   :  { %v1147_v42 = vmul.f32 %v1145_v2, %v1136_v49  ;;  %v1185_v43 = vrot.slane %v1145_v2, %v1184_v32 }
 0x19b   :  { %v1148_v27 = vsub.f32 %v1146_v6, %v1147_v42  ;;  %v1187_v29 = vmul.f32 %v1185_v43, %v2377_v41  ;;  %v1188_v33 = vmul.f32 %v1185_v43, %v2447_v38  ;;  %v1189_v54 = vmul.f32 %v1185_v43, %v2453_v39 }
 0x19c   :  { %v1190_v57 = vmul.f32 %v1185_v43, %v2461_v46  ;;  %v1191_v12 = vmul.f32 %v1185_v43, %v2471_v53  ;;  %v1192_v50 = vmul.f32 %v1185_v43, %v2481_v59  ;;  %v1193_v10 = vmul.f32 %v1185_v43, %v2494_v35 }
 0x19d   :  { %v1194_v36 = vmul.f32 %v1185_v43, %v2509_v48  ;;  %v1195_v28 = vmul.f32 %v1185_v43, %v2522_v55  ;;  %v1196_v5 = vmul.f32 %v1185_v43, %v2535_v31  ;;  %v1197_v41 = vmul.f32 %v1185_v43, %v2548_v34 }
 0x19e   :  { %v1198_v38 = vmul.f32 %v1185_v43, %v2561_v3  ;;  %v1199_v39 = vmul.f32 %v1185_v43, %v2572_v56  ;;  %v1200_v46 = vmul.f32 %v1185_v43, %v2581_v63  ;;  %v1201_v53 = vmul.f32 %v1185_v43, %v2590_v1 }
 0x19f   :  { %v1202_v59 = vmul.f32 %v1185_v43, %v2599_v22  ;;  %v1203_v35 = vmul.f32 %v1185_v43, %v2608_v52  ;;  %v1204_v48 = vmul.f32 %v1185_v43, %v2617_v60  ;;  %v1205_v55 = vmul.f32 %v1185_v43, %v2626_v16 }
 0x1a0   :  { %v1206_v31 = vmul.f32 %v1185_v43, %v2634_v4  ;;  %v1207_v34 = vmul.f32 %v1185_v43, %v2640_v17  ;;  %v1208_v3 = vmul.f32 %v1185_v43, %v2645_v8  ;;  %v1209_v56 = vmul.f32 %v1185_v43, %v2650_v0 }
 0x1a1   :  { %v1210_v63 = vmul.f32 %v1185_v43, %v2655_v51  ;;  %v1211_v1 = vmul.f32 %v1185_v43, %v2660_v47  ;;  %v1212_v22 = vmul.f32 %v1185_v43, %v2666_v20  ;;  %v1213_v52 = vmul.f32 %v1185_v43, %v2671_v21 }
 0x1a2   :  { %v1214_v60 = vmul.f32 %v1185_v43, %v2676_v26  ;;  %v1223_v23 = vrot.slane %v1148_v27, %v1184_v32  ;;  %v1215_v16 = vmul.f32 %v1185_v43, %v2681_v30  ;;  %v1216_v4 = vmul.f32 %v1185_v43, %v2686_v19 }
 0x1a3   :  { %v1217_v17 = vmul.f32 %v1185_v43, %v2694_v7  ;;  %v1218_v8 = vmul.f32 %v1185_v43, %v2700_v37 }
 0x1a4   :  { %v2743_v0 = vadd.f32 %v1223_v23, %v1187_v29  ;;  %v2745_v51 = vadd.f32 %v1223_v23, %v1188_v33  ;;  %v2747_v47 = vadd.f32 %v1223_v23, %v1189_v54  ;;  %v2749_v20 = vadd.f32 %v1223_v23, %v1190_v57 }
 0x1a5   :  { %v2751_v21 = vadd.f32 %v1223_v23, %v1191_v12  ;;  %v2753_v26 = vadd.f32 %v1223_v23, %v1192_v50  ;;  %v2755_v62 = vadd.f32 %v1223_v23, %v1193_v10  ;;  %v1232_v30 = vadd.f32 %v1223_v23, %v1194_v36 }
 0x1a6   :  { %v1233_v19 = vadd.f32 %v1223_v23, %v1195_v28  ;;  %v1234_v14 = vadd.f32 %v1223_v23, %v1196_v5  ;;  %v1235_v7 = vadd.f32 %v1223_v23, %v1197_v41  ;;  %v1236_v18 = vadd.f32 %v1223_v23, %v1198_v38 }
 0x1a7   :  { %v1237_v37 = vadd.f32 %v1223_v23, %v1199_v39  ;;  %v1238_v45 = vadd.f32 %v1223_v23, %v1200_v46  ;;  %v1239_v49 = vadd.f32 %v1223_v23, %v1201_v53  ;;  %v1240_v44 = vadd.f32 %v1223_v23, %v1202_v59 }
 0x1a8   :  { %v1241_v9 = vadd.f32 %v1223_v23, %v1203_v35  ;;  %v1242_v11 = vadd.f32 %v1223_v23, %v1204_v48  ;;  %v1243_v58 = vadd.f32 %v1223_v23, %v1205_v55  ;;  %v1244_v15 = vadd.f32 %v1223_v23, %v1206_v31 }
 0x1a9   :  { %v1245_v25 = vadd.f32 %v1223_v23, %v1207_v34  ;;  %v1246_v61 = vadd.f32 %v1223_v23, %v1208_v3  ;;  %v1247_v24 = vadd.f32 %v1223_v23, %v1209_v56  ;;  %v1248_v13 = vadd.f32 %v1223_v23, %v1210_v63 }
 0x1aa   :  { %v1249_v32 = vadd.f32 %v1223_v23, %v1211_v1  ;;  %v1250_v40 = vadd.f32 %v1223_v23, %v1212_v22  ;;  %v1251_v2 = vadd.f32 %v1223_v23, %v1213_v52  ;;  %v1252_v6 = vadd.f32 %v1223_v23, %v1214_v60 }
 0x1ab   :  { %v1253_v42 = vadd.f32 %v1223_v23, %v1215_v16  ;;  %v1254_v43 = vadd.f32 %v1223_v23, %v1216_v4  ;;  %v1255_v27 = vadd.f32 %v1223_v23, %v1217_v17  ;;  %v1256_v29 = vadd.f32 %v1223_v23, %v1218_v8 }
 0x1ac   :  { %v1257_v33 = vmax.f32 %v2743_v0, 0.0  ;;  %v1258_v54 = vmax.f32 %v2745_v51, 0.0  ;;  %v1259_v57 = vmax.f32 %v2747_v47, 0.0  ;;  %v1260_v12 = vmax.f32 %v2749_v20, 0.0 }
 0x1ad   :  { %v1261_v50 = vmax.f32 %v2751_v21, 0.0  ;;  %v1262_v10 = vmax.f32 %v2753_v26, 0.0  ;;  %v1263_v36 = vmax.f32 %v2755_v62, 0.0  ;;  %v1264_v28 = vmax.f32 %v1232_v30, 0.0 }
 0x1ae   :  { %v1265_v5 = vmax.f32 %v1233_v19, 0.0  ;;  %v1266_v41 = vmax.f32 %v1234_v14, 0.0  ;;  %v1267_v38 = vmax.f32 %v1235_v7, 0.0  ;;  %v1268_v39 = vmax.f32 %v1236_v18, 0.0 }
 0x1af   :  { %v1269_v46 = vmax.f32 %v1237_v37, 0.0  ;;  %v1270_v53 = vmax.f32 %v1238_v45, 0.0  ;;  %v1271_v59 = vmax.f32 %v1239_v49, 0.0  ;;  %v1272_v35 = vmax.f32 %v1240_v44, 0.0 }
 0x1b0   :  { %v1273_v48 = vmax.f32 %v1241_v9, 0.0  ;;  %v1274_v55 = vmax.f32 %v1242_v11, 0.0  ;;  %v1275_v31 = vmax.f32 %v1243_v58, 0.0  ;;  %v1276_v34 = vmax.f32 %v1244_v15, 0.0 }
 0x1b1   :  { %v1277_v3 = vmax.f32 %v1245_v25, 0.0  ;;  %v1278_v56 = vmax.f32 %v1246_v61, 0.0  ;;  %v1279_v63 = vmax.f32 %v1247_v24, 0.0  ;;  %v1280_v1 = vmax.f32 %v1248_v13, 0.0 }
 0x1b2   :  { %v1281_v22 = vmax.f32 %v1249_v32, 0.0  ;;  %v1282_v52 = vmax.f32 %v1250_v40, 0.0  ;;  %v1283_v60 = vmax.f32 %v1251_v2, 0.0  ;;  %v1284_v23 = vmax.f32 %v1252_v6, 0.0 }
 0x1b3   :  { %v1285_v16 = vmax.f32 %v1253_v42, 0.0  ;;  %v1286_v4 = vmax.f32 %v1254_v43, 0.0  ;;  %v1287_v17 = vmax.f32 %v1255_v27, 0.0  ;;  %v1288_v8 = vmax.f32 %v1256_v29, 0.0 }
 0x1b4   :  { %v1616_v0 = vpack.c.bf16 %v1258_v54, %v1257_v33  ;;  %v1621_v51 = vpack.c.bf16 %v1260_v12, %v1259_v57  ;;  %v1626_v47 = vpack.c.bf16 %v1262_v10, %v1261_v50  ;;  %v1631_v20 = vpack.c.bf16 %v1264_v28, %v1263_v36 }
 0x1b5   :  { %v1636_v21 = vpack.c.bf16 %v1266_v41, %v1265_v5  ;;  %v1641_v26 = vpack.c.bf16 %v1268_v39, %v1267_v38  ;;  %v1646_v62 = vpack.c.bf16 %v1270_v53, %v1269_v46  ;;  %v1651_v30 = vpack.c.bf16 %v1272_v35, %v1271_v59 }
 0x1b6   :  { %1617 = vst [vmem:[%s2816_s4] sm:$0xff] %v1616_v0   ;;  %1693 = vst [vmem:[%s2816_s4 + $0x8] sm:$0xff] %v1621_v51   ;;  %v1656_v19 = vpack.c.bf16 %v1274_v55, %v1273_v48  ;;  %v1661_v14 = vpack.c.bf16 %v1276_v34, %v1275_v31  ;;  %v1666_v7 = vpack.c.bf16 %v1278_v56, %v1277_v3 }
 0x1b7   :  { %1694 = vst [vmem:[%s2816_s4 + $0x10] sm:$0xff] %v1626_v47   ;;  %1695 = vst [vmem:[%s2816_s4 + $0x18] sm:$0xff] %v1631_v20   ;;  %v1671_v18 = vpack.c.bf16 %v1280_v1, %v1279_v63  ;;  %v1676_v37 = vpack.c.bf16 %v1282_v52, %v1281_v22  ;;  %v1681_v45 = vpack.c.bf16 %v1284_v23, %v1283_v60 }
 0x1b8   :  { %1696 = vst [vmem:[%s2816_s4 + $0x20] sm:$0xff] %v1636_v21   ;;  %1697 = vst [vmem:[%s2816_s4 + $0x28] sm:$0xff] %v1641_v26   ;;  %v1686_v49 = vpack.c.bf16 %v1286_v4, %v1285_v16  ;;  %v1691_v44 = vpack.c.bf16 %v1288_v8, %v1287_v17 }
 0x1b9   :  { %1698 = vst [vmem:[%s2816_s4 + $0x30] sm:$0xff] %v1646_v62   ;;  %1699 = vst [vmem:[%s2816_s4 + $0x38] sm:$0xff] %v1651_v30  }
 0x1ba   :  { %1700 = vst [vmem:[%s2816_s4 + $0x40] sm:$0xff] %v1656_v19   ;;  %1701 = vst [vmem:[%s2816_s4 + $0x48] sm:$0xff] %v1661_v14  }
 0x1bb   :  { %1702 = vst [vmem:[%s2816_s4 + $0x50] sm:$0xff] %v1666_v7   ;;  %1703 = vst [vmem:[%s2816_s4 + $0x58] sm:$0xff] %v1671_v18  }
 0x1bc   :  { %1704 = vst [vmem:[%s2816_s4 + $0x60] sm:$0xff] %v1676_v37   ;;  %1705 = vst [vmem:[%s2816_s4 + $0x68] sm:$0xff] %v1681_v45  }
 0x1bd   :  { %1706 = vst [vmem:[%s2816_s4 + $0x70] sm:$0xff] %v1686_v49   ;;  %1707 = vst [vmem:[%s2816_s4 + $0x78] sm:$0xff] %v1691_v44  }

// kernel: dqn_forward.7
= control target key start
LH: loop header
LB: loop body
LE: loop exit
PB: predicated region body
PF: predicated region fallthrough
CT: control target
= control target key end

     0   :  { %s339_s1 = inlined_call_operand.vmem [shape: bf16[256,128], index: 1, kind: input, shape index: {}]   ;;  %s340_s0 = inlined_call_operand.vmem [shape: bf16[8,256], index: 0, kind: input, shape index: {}]   ;;  %s341_s2 = inlined_call_operand.vmem [shape: f32[1,128], index: 2, kind: input, shape index: {}]   ;;  %s342_s3 = inlined_call_operand.vmem [shape: f32[8,128], index: 3, kind: output, shape index: {}]  }
   0x1   :  { %v244_v0 = vld [vmem:[%s339_s1 + $0x78] sm:$0xff]   ;;  %v246_v2 = vld [vmem:[%s339_s1 + $0x70] sm:$0xff]   ;;  %v248_v4 = vld [vmem:[%s339_s1 + $0x68] sm:$0xff]  }
   0x2   :  { %v245_v1 = vld [vmem:[%s339_s1 + $0x38] sm:$0xff]   ;;  %222 = vmatprep.subr.bf16.mxu0 %v244_v0  ;;  %v247_v3 = vld [vmem:[%s339_s1 + $0x30] sm:$0xff]   ;;  %v249_v5 = vld [vmem:[%s339_s1 + $0x28] sm:$0xff]  }
   0x3   :  { %223 = vmatpush3.bf16.msra.mxu0 %v245_v1  ;;  %v250_v6 = vld [vmem:[%s339_s1 + $0x60] sm:$0xff]   ;;  %v252_v8 = vld [vmem:[%s339_s1 + $0x58] sm:$0xff]   ;;  %v254_v10 = vld [vmem:[%s339_s1 + $0x50] sm:$0xff]  }
   0x4   :  { %224 = vmatprep.subr.bf16.mxu0 %v246_v2  ;;  %v251_v7 = vld [vmem:[%s339_s1 + $0x20] sm:$0xff]   ;;  %v253_v9 = vld [vmem:[%s339_s1 + $0x18] sm:$0xff]   ;;  %v255_v13 = vld [vmem:[%s339_s1 + $0x10] sm:$0xff]  }
   0x5   :  { %v15_v11 = vld [vmem:[%s340_s0] sm:$0xff]  ;;  %v256_v14 = vld [vmem:[%s339_s1 + $0x48] sm:$0xff]  }
   0x6   :  { %v205_v12 = vcombine.high %v15_v11, %v15_v11  ;;  %v257_v15 = vld [vmem:[%s339_s1 + $0x8] sm:$0xff]   ;;  %v258_v16 = vld [vmem:[%s339_s1 + $0x40] sm:$0xff]   ;;  %v204_v18 = vcombine.low %v15_v11, %v15_v11 }
   0x7   :  { %225 = vmatpush3.bf16.msra.mxu0 %v247_v3  ;;  %v259_v17 = vld [vmem:[%s339_s1] sm:$0xff]  }
   0x8   :  { %226 = vmatprep.subr.bf16.mxu0 %v248_v4  ;;  %190 = vmatprep.mubr.bf16.mxu0 %v205_v12  ;;  %v203_v20 = vld [vmem:[%s341_s2] ss:$0 sm:$0xff] }
   0xb   :  { %227 = vmatpush3.bf16.msra.mxu0 %v249_v5 }
   0xc   :  { %228 = vmatprep.subr.bf16.mxu0 %v250_v6 }
   0xf   :  { %229 = vmatpush3.bf16.msra.mxu0 %v251_v7 }
  0x10   :  { %230 = vmatprep.subr.bf16.mxu0 %v252_v8 }
  0x13   :  { %231 = vmatpush3.bf16.msra.mxu0 %v253_v9 }
  0x14   :  { %232 = vmatprep.subr.bf16.mxu0 %v254_v10 }
  0x17   :  { %233 = vmatpush3.bf16.msra.mxu0 %v255_v13 }
  0x18   :  { %234 = vmatprep.subr.bf16.mxu0 %v256_v14 }
  0x1b   :  { %235 = vmatpush3.bf16.msra.mxu0 %v257_v15 }
  0x1c   :  { %236 = vmatprep.subr.bf16.mxu0 %v258_v16 }
  0x1f   :  { %237 = vmatpush3.bf16.msra.mxu0 %v259_v17 }
  0x22   :  { %191 = vmatmul.mubr.bf16.vlgmr.msra.gmra.mxu0 %v204_v18 }
  0xe2   :  { %v238_v19 = vpop.f32.mrf.mxu0 }
  0xe4   :  { %v239_v21 = vpop.f32.mrf.mxu0 }
  0xe5   :  { %v240_v22 = vadd.f32 %v239_v21, %v238_v19 }
  0xe6   :  { %v241_v23 = vpop.f32.mrf.mxu0 }
  0xe7   :  { %v193_v24 = vadd.f32 %v240_v22, %v203_v20 }
  0xe8   :  { %v242_v25 = vpop.f32.mrf.mxu0 }
  0xe9   :  { %198 = vst [vmem:[%s342_s3] sm:$0xff] %v193_v24 }

// kernel: dqn_forward.6
= control target key start
LH: loop header
LB: loop body
LE: loop exit
PB: predicated region body
PF: predicated region fallthrough
CT: control target
= control target key end

     0   :  { %s3448_s1 = inlined_call_operand.vmem [shape: bf16[640,128], index: 1, kind: input, shape index: {}]   ;;  %s3449_s0 = inlined_call_operand.vmem [shape: bf16[256,640], index: 0, kind: input, shape index: {}]   ;;  %s3450_s2 = inlined_call_operand.vmem [shape: f32[1,128], index: 2, kind: input, shape index: {}]   ;;  %s3451_s3 = inlined_call_operand.vmem [shape: f32[1,128], index: 3, kind: input, shape index: {}]   ;;  %s3452_s4 = inlined_call_operand.vmem [shape: bf16[1,256,128], index: 4, kind: output, shape index: {}]  }
   0x1   :  { %v2398_v0 = vld [vmem:[%s3448_s1 + $0x78] sm:$0xff]   ;;  %v2400_v2 = vld [vmem:[%s3448_s1 + $0x70] sm:$0xff]   ;;  %v2402_v4 = vld [vmem:[%s3448_s1 + $0x68] sm:$0xff]  }
   0x2   :  { %v2399_v1 = vld [vmem:[%s3448_s1 + $0x38] sm:$0xff]   ;;  %2085 = vmatprep.subr.bf16.mxu0 %v2398_v0  ;;  %2381 = vmatprep.subr.bf16.mxu1 %v2398_v0  ;;  %v2401_v3 = vld [vmem:[%s3448_s1 + $0x30] sm:$0xff]   ;;  %v2403_v5 = vld [vmem:[%s3448_s1 + $0x28] sm:$0xff]  }
   0x3   :  { %2086 = vmatpush3.bf16.msra.mxu0 %v2399_v1  ;;  %2389 = vmatpush3.bf16.msra.mxu1 %v2399_v1  ;;  %v2404_v6 = vld [vmem:[%s3448_s1 + $0x60] sm:$0xff]   ;;  %v2406_v8 = vld [vmem:[%s3448_s1 + $0x58] sm:$0xff]   ;;  %v2408_v10 = vld [vmem:[%s3448_s1 + $0x50] sm:$0xff]  }
   0x4   :  { %2087 = vmatprep.subr.bf16.mxu0 %v2400_v2  ;;  %2382 = vmatprep.subr.bf16.mxu1 %v2400_v2  ;;  %v2405_v7 = vld [vmem:[%s3448_s1 + $0x20] sm:$0xff]   ;;  %v2407_v9 = vld [vmem:[%s3448_s1 + $0x18] sm:$0xff]   ;;  %v2409_v13 = vld [vmem:[%s3448_s1 + $0x10] sm:$0xff]  }
   0x5   :  { %v2416_v11 = vld [vmem:[%s3449_s0 + $0x4] ss:$20 sps:$4 sm:$0xff]   ;;  %v2410_v14 = vld [vmem:[%s3448_s1 + $0x48] sm:$0xff]   ;;  %v2414_v19 = vld [vmem:[%s3449_s0] ss:$20 sps:$4 sm:$0xff]  }
   0x6   :  { %v2419_v12 = vld [vmem:[%s3449_s0 + $0x1e4] ss:$20 sps:$4 sm:$0xff]   ;;  %888 = vmatprep.mubr.bf16.mxu0 %v2416_v11  ;;  %v2411_v15 = vld [vmem:[%s3448_s1 + $0x8] sm:$0xff]   ;;  %v2417_v21 = vld [vmem:[%s3449_s0 + $0x1e0] ss:$20 sps:$4 sm:$0xff]  }
   0x7   :  { %2088 = vmatpush3.bf16.msra.mxu0 %v2401_v3  ;;  %2390 = vmatpush3.bf16.msra.mxu1 %v2401_v3  ;;  %v2412_v16 = vld [vmem:[%s3448_s1 + $0x40] sm:$0xff]   ;;  %v2420_v18 = vld [vmem:[%s3448_s1 + $0xf8] sm:$0xff]   ;;  %v2423_v23 = vld [vmem:[%s3448_s1 + $0xf0] sm:$0xff]  }
   0x8   :  { %2089 = vmatprep.subr.bf16.mxu0 %v2402_v4  ;;  %2383 = vmatprep.subr.bf16.mxu1 %v2402_v4  ;;  %v2413_v17 = vld [vmem:[%s3448_s1] sm:$0xff]   ;;  %v2421_v20 = vld [vmem:[%s3448_s1 + $0x138] sm:$0xff]   ;;  %v2434_v26 = vld [vmem:[%s3448_s1 + $0x130] sm:$0xff]  }
   0x9   :  { %984 = vmatprep.mubr.bf16.mxu1 %v2419_v12  ;;  %v2422_v22 = vld [vmem:[%s3448_s1 + $0xb8] sm:$0xff]   ;;  %v2425_v24 = vld [vmem:[%s3449_s0 + $0x2c] ss:$20 sps:$4 sm:$0xff]   ;;  %v2424_v27 = vld [vmem:[%s3448_s1 + $0xb0] sm:$0xff]  }
   0xa   :  { %v2427_v25 = vld [vmem:[%s3449_s0 + $0x20c] ss:$20 sps:$4 sm:$0xff]   ;;  %v2429_v28 = vld [vmem:[%s3449_s0 + $0x28] ss:$20 sps:$4 sm:$0xff]   ;;  %v2440_v37 = vld [vmem:[%s3449_s0 + $0x50] ss:$20 sps:$4 sm:$0xff]  }
   0xb   :  { %2090 = vmatpush3.bf16.msra.mxu0 %v2403_v5  ;;  %2391 = vmatpush3.bf16.msra.mxu1 %v2403_v5  ;;  %v2431_v29 = vld [vmem:[%s3448_s1 + $0xe8] sm:$0xff]   ;;  %v2433_v33 = vld [vmem:[%s3448_s1 + $0xe0] sm:$0xff]   ;;  %v2442_v38 = vld [vmem:[%s3448_s1 + $0xd8] sm:$0xff]  }
   0xc   :  { %2091 = vmatprep.subr.bf16.mxu0 %v2404_v6  ;;  %2384 = vmatprep.subr.bf16.mxu1 %v2404_v6  ;;  %v2430_v30 = vld [vmem:[%s3449_s0 + $0x208] ss:$20 sps:$4 sm:$0xff]   ;;  %v2435_v36 = vld [vmem:[%s3448_s1 + $0xa0] sm:$0xff]   ;;  %v2444_v41 = vld [vmem:[%s3448_s1 + $0xd0] sm:$0xff]  }
   0xd   :  { %v2432_v31 = vld [vmem:[%s3448_s1 + $0xa8] sm:$0xff]   ;;  %v2441_v39 = vld [vmem:[%s3449_s0 + $0x230] ss:$20 sps:$4 sm:$0xff]   ;;  %v2443_v40 = vld [vmem:[%s3448_s1 + $0x98] sm:$0xff]  }
   0xe   :  { %v2436_v32 = vld [vmem:[%s3449_s0 + $0x54] ss:$20 sps:$4 sm:$0xff]   ;;  %v2446_v42 = vld [vmem:[%s3449_s0 + $0x7c] ss:$20 sps:$4 sm:$0xff]   ;;  %v2463_v44 = vld [vmem:[%s3448_s1 + $0x120] sm:$0xff]  }
   0xf   :  { %2092 = vmatpush3.bf16.msra.mxu0 %v2405_v7  ;;  %2392 = vmatpush3.bf16.msra.mxu1 %v2405_v7  ;;  %v2438_v34 = vld [vmem:[%s3449_s0 + $0x234] ss:$20 sps:$4 sm:$0xff]   ;;  %v2448_v43 = vld [vmem:[%s3449_s0 + $0x25c] ss:$20 sps:$4 sm:$0xff]   ;;  %v2450_v46 = vld [vmem:[%s3449_s0 + $0x78] ss:$20 sps:$4 sm:$0xff]  }
  0x10   :  { %2093 = vmatprep.subr.bf16.mxu0 %v2406_v8  ;;  %2385 = vmatprep.subr.bf16.mxu1 %v2406_v8  ;;  %v2453_v35 = vld [vmem:[%s3448_s1 + $0x128] sm:$0xff]   ;;  %v2445_v45 = vld [vmem:[%s3448_s1 + $0x90] sm:$0xff]   ;;  %v2455_v50 = vld [vmem:[%s3448_s1 + $0xc0] sm:$0xff]  }
  0x11   :  { %v2451_v47 = vld [vmem:[%s3449_s0 + $0x258] ss:$20 sps:$4 sm:$0xff]   ;;  %v2456_v54 = vld [vmem:[%s3448_s1 + $0x80] sm:$0xff]   ;;  %v2483_v55 = vld [vmem:[%s3448_s1 + $0x110] sm:$0xff]  }
  0x12   :  { %v2452_v48 = vld [vmem:[%s3448_s1 + $0xc8] sm:$0xff]   ;;  %v2457_v51 = vld [vmem:[%s3449_s0 + $0xa4] ss:$20 sps:$4 sm:$0xff]   ;;  %v2462_v57 = vld [vmem:[%s3449_s0 + $0xa0] ss:$20 sps:$4 sm:$0xff]  }
  0x13   :  { %2094 = vmatpush3.bf16.msra.mxu0 %v2407_v9  ;;  %2393 = vmatpush3.bf16.msra.mxu1 %v2407_v9  ;;  %v2454_v49 = vld [vmem:[%s3448_s1 + $0x88] sm:$0xff]   ;;  %v2476_v52 = vld [vmem:[%s3448_s1 + $0x118] sm:$0xff]   ;;  %v2503_v62 = vld [vmem:[%s3448_s1 + $0x100] sm:$0xff]  }
  0x14   :  { %2095 = vmatprep.subr.bf16.mxu0 %v2408_v10  ;;  %2386 = vmatprep.subr.bf16.mxu1 %v2408_v10  ;;  %v2461_v53 = vld [vmem:[%s3449_s0 + $0xc] ss:$20 sps:$4 sm:$0xff]   ;;  %v2459_v56 = vld [vmem:[%s3449_s0 + $0x8] ss:$20 sps:$4 sm:$0xff]   ;;  %v2469_v63 = vld [vmem:[%s3449_s0 + $0x30] ss:$20 sps:$4 sm:$0xff]  }
  0x15   :  { %v2464_v58 = vld [vmem:[%s3449_s0 + $0xcc] ss:$20 sps:$4 sm:$0xff]   ;;  %v2466_v59 = vld [vmem:[%s3449_s0 + $0x34] ss:$20 sps:$4 sm:$0xff]   ;;  %v2472_v1 = vld [vmem:[%s3449_s0 + $0x5c] ss:$20 sps:$4 sm:$0xff]  }
  0x16   :  { %v2496_v60 = vld [vmem:[%s3448_s1 + $0x108] sm:$0xff]   ;;  %v2474_v2 = vld [vmem:[%s3449_s0 + $0xf0] ss:$20 sps:$4 sm:$0xff]   ;;  %v2482_v7 = vld [vmem:[%s3449_s0 + $0x80] ss:$20 sps:$4 sm:$0xff]  }
  0x17   :  { %2096 = vmatpush3.bf16.msra.mxu0 %v2409_v13  ;;  %2394 = vmatpush3.bf16.msra.mxu1 %v2409_v13  ;;  %v2468_v61 = vld [vmem:[%s3449_s0 + $0xc8] ss:$20 sps:$4 sm:$0xff]   ;;  %v2475_v3 = vld [vmem:[%s3449_s0 + $0x58] ss:$20 sps:$4 sm:$0xff]   ;;  %v2488_v10 = vld [vmem:[%s3449_s0 + $0x140] ss:$20 sps:$4 sm:$0xff]  }
  0x18   :  { %2097 = vmatprep.subr.bf16.mxu0 %v2410_v14  ;;  %2387 = vmatprep.subr.bf16.mxu1 %v2410_v14  ;;  %v2470_v0 = vld [vmem:[%s3449_s0 + $0xf4] ss:$20 sps:$4 sm:$0xff]   ;;  %v2477_v4 = vld [vmem:[%s3449_s0 + $0x11c] ss:$20 sps:$4 sm:$0xff]   ;;  %v2479_v5 = vld [vmem:[%s3449_s0 + $0x84] ss:$20 sps:$4 sm:$0xff]  }
  0x19   :  { %v2481_v6 = vld [vmem:[%s3449_s0 + $0x118] ss:$20 sps:$4 sm:$0xff]   ;;  %v2489_v11 = vld [vmem:[%s3449_s0 + $0xa8] ss:$20 sps:$4 sm:$0xff]  }
  0x1a   :  { %v2484_v8 = vld [vmem:[%s3449_s0 + $0x144] ss:$20 sps:$4 sm:$0xff]   ;;  %v2486_v9 = vld [vmem:[%s3449_s0 + $0xac] ss:$20 sps:$4 sm:$0xff]   ;;  %v2492_v13 = vld [vmem:[%s3449_s0 + $0xd4] ss:$20 sps:$4 sm:$0xff]  }
  0x1b   :  { %2098 = vmatpush3.bf16.msra.mxu0 %v2411_v15  ;;  %2395 = vmatpush3.bf16.msra.mxu1 %v2411_v15  ;;  %v2490_v12 = vld [vmem:[%s3449_s0 + $0x16c] ss:$20 sps:$4 sm:$0xff]   ;;  %v2494_v14 = vld [vmem:[%s3449_s0 + $0x168] ss:$20 sps:$4 sm:$0xff]   ;;  %v2495_v15 = vld [vmem:[%s3449_s0 + $0xd0] ss:$20 sps:$4 sm:$0xff]  }
  0x1c   :  { %2099 = vmatprep.subr.bf16.mxu0 %v2412_v16  ;;  %2388 = vmatprep.subr.bf16.mxu1 %v2412_v16  ;;  %v2497_v16 = vld [vmem:[%s3449_s0 + $0x194] ss:$20 sps:$4 sm:$0xff]  }
  0x1f   :  { %2100 = vmatpush3.bf16.msra.mxu0 %v2413_v17  ;;  %2396 = vmatpush3.bf16.msra.mxu1 %v2413_v17  ;;  %v2499_v17 = vld [vmem:[%s3449_s0 + $0xfc] ss:$20 sps:$4 sm:$0xff]  }
  0x20   :  { %2197 = vmatprep.subr.bf16.mxu1 %v2420_v18  ;;  %2333 = vmatprep.subr.bf16.mxu0 %v2421_v20  ;;  %v2501_v18 = vld [vmem:[%s3449_s0 + $0x190] ss:$20 sps:$4 sm:$0xff]  }
  0x22   :  { %889 = vmatmul.mubr.bf16.vlgmr.msra.gmra.mxu0 %v2414_v19  ;;  %985 = vmatmul.mubr.bf16.vlgmr.msra.gmra.mxu1 %v2417_v21  ;;  %v2502_v19 = vld [vmem:[%s3449_s0 + $0xf8] ss:$20 sps:$4 sm:$0xff]  }
  0x23   :  { %2198 = vmatpush3.bf16.msra.mxu1 %v2422_v22  ;;  %2334 = vmatpush3.bf16.msra.mxu0 %v2421_v20  ;;  %v2504_v20 = vld [vmem:[%s3449_s0 + $0x1bc] ss:$20 sps:$4 sm:$0xff]   ;;  %v2506_v21 = vld [vmem:[%s3449_s0 + $0x124] ss:$20 sps:$4 sm:$0xff]  }
  0x24   :  { %2199 = vmatprep.subr.bf16.mxu1 %v2423_v23  ;;  %896 = vmatprep.mubr.bf16.mxu0 %v2425_v24  ;;  %v2508_v22 = vld [vmem:[%s3449_s0 + $0x1b8] ss:$20 sps:$4 sm:$0xff]   ;;  %v2509_v23 = vld [vmem:[%s3449_s0 + $0x120] ss:$20 sps:$4 sm:$0xff]  }
  0x25   :  { %992 = vmatprep.mubr.bf16.mxu1 %v2427_v25  ;;  %2335 = vmatprep.subr.bf16.mxu0 %v2434_v26  ;;  %v2510_v24 = vld [vmem:[%s3449_s0 + $0x14c] ss:$20 sps:$4 sm:$0xff]   ;;  %v2512_v25 = vld [vmem:[%s3449_s0 + $0x10] ss:$20 sps:$4 sm:$0xff]  }
  0x27   :  { %2200 = vmatpush3.bf16.msra.mxu1 %v2424_v27  ;;  %2336 = vmatpush3.bf16.msra.mxu0 %v2434_v26  ;;  %v2513_v26 = vld [vmem:[%s3449_s0 + $0x148] ss:$20 sps:$4 sm:$0xff]   ;;  %v2514_v27 = vld [vmem:[%s3449_s0 + $0x38] ss:$20 sps:$4 sm:$0xff]  }
  0x28   :  { %2201 = vmatprep.subr.bf16.mxu1 %v2431_v29  ;;  %2337 = vmatprep.subr.bf16.mxu0 %v2453_v35  ;;  %v2517_v29 = vld [vmem:[%s3449_s0 + $0x60] ss:$20 sps:$4 sm:$0xff]  }
  0x2a   :  { %897 = vmatmul.mubr.bf16.gmra.mxu0 %v2429_v28  ;;  %993 = vmatmul.mubr.bf16.gmra.mxu1 %v2430_v30  ;;  %v2515_v28 = vld [vmem:[%s3449_s0 + $0x174] ss:$20 sps:$4 sm:$0xff]   ;;  %v2518_v30 = vld [vmem:[%s3449_s0 + $0x170] ss:$20 sps:$4 sm:$0xff]  }
  0x2b   :  { %2202 = vmatpush3.bf16.msra.mxu1 %v2432_v31  ;;  %904 = vmatprep.mubr.bf16.mxu0 %v2436_v32  ;;  %v2519_v31 = vld [vmem:[%s3449_s0 + $0x88] ss:$20 sps:$4 sm:$0xff]  }
  0x2c   :  { %2203 = vmatprep.subr.bf16.mxu1 %v2433_v33  ;;  %1000 = vmatprep.mubr.bf16.mxu1 %v2438_v34  ;;  %v2520_v32 = vld [vmem:[%s3449_s0 + $0x19c] ss:$20 sps:$4 sm:$0xff]   ;;  %v2523_v34 = vld [vmem:[%s3449_s0 + $0x198] ss:$20 sps:$4 sm:$0xff]  }
  0x2d   :  { %2338 = vmatpush3.bf16.msra.mxu0 %v2453_v35  ;;  %v2522_v33 = vld [vmem:[%s3449_s0 + $0xb0] ss:$20 sps:$4 sm:$0xff]   ;;  %v2524_v35 = vld [vmem:[%s3449_s0 + $0xd8] ss:$20 sps:$4 sm:$0xff]  }
  0x2e   :  { %2339 = vmatprep.subr.bf16.mxu0 %v2463_v44 }
  0x2f   :  { %2204 = vmatpush3.bf16.msra.mxu1 %v2435_v36  ;;  %v2525_v36 = vld [vmem:[%s3449_s0 + $0x1c4] ss:$20 sps:$4 sm:$0xff]  }
  0x30   :  { %2205 = vmatprep.subr.bf16.mxu1 %v2442_v38  ;;  %v2528_v38 = vld [vmem:[%s3449_s0 + $0x1c0] ss:$20 sps:$4 sm:$0xff]  }
  0x31   :  { %2340 = vmatpush3.bf16.msra.mxu0 %v2463_v44  ;;  %v2535_v44 = vld [vmem:[%s3449_s0 + $0x214] ss:$20 sps:$4 sm:$0xff]  }
  0x32   :  { %905 = vmatmul.mubr.bf16.gmra.mxu0 %v2440_v37  ;;  %1001 = vmatmul.mubr.bf16.gmra.mxu1 %v2441_v39  ;;  %v2527_v37 = vld [vmem:[%s3449_s0 + $0x100] ss:$20 sps:$4 sm:$0xff]   ;;  %v2529_v39 = vld [vmem:[%s3449_s0 + $0x128] ss:$20 sps:$4 sm:$0xff]  }
  0x33   :  { %2206 = vmatpush3.bf16.msra.mxu1 %v2443_v40  ;;  %912 = vmatprep.mubr.bf16.mxu0 %v2446_v42  ;;  %v2530_v40 = vld [vmem:[%s3449_s0 + $0x1ec] ss:$20 sps:$4 sm:$0xff]   ;;  %v2533_v42 = vld [vmem:[%s3449_s0 + $0x1e8] ss:$20 sps:$4 sm:$0xff]  }
  0x34   :  { %2207 = vmatprep.subr.bf16.mxu1 %v2444_v41  ;;  %1008 = vmatprep.mubr.bf16.mxu1 %v2448_v43  ;;  %v2532_v41 = vld [vmem:[%s3449_s0 + $0x150] ss:$20 sps:$4 sm:$0xff]   ;;  %v2534_v43 = vld [vmem:[%s3449_s0 + $0x178] ss:$20 sps:$4 sm:$0xff]  }
  0x35   :  { %2341 = vmatprep.subr.bf16.mxu0 %v2476_v52 }
  0x36   :  { %2342 = vmatpush3.bf16.msra.mxu0 %v2476_v52  ;;  %v2545_v52 = vld [vmem:[%s3449_s0 + $0x264] ss:$20 sps:$4 sm:$0xff]  }
  0x37   :  { %2208 = vmatpush3.bf16.msra.mxu1 %v2445_v45  ;;  %2343 = vmatprep.subr.bf16.mxu0 %v2483_v55  ;;  %v2537_v45 = vld [vmem:[%s3449_s0 + $0x1a0] ss:$20 sps:$4 sm:$0xff]  }
  0x38   :  { %2209 = vmatprep.subr.bf16.mxu1 %v2452_v48  ;;  %v2540_v48 = vld [vmem:[%s3449_s0 + $0x23c] ss:$20 sps:$4 sm:$0xff]  }
  0x3a   :  { %913 = vmatmul.mubr.bf16.gmra.mxu0 %v2450_v46  ;;  %1009 = vmatmul.mubr.bf16.gmra.mxu1 %v2451_v47  ;;  %v2538_v46 = vld [vmem:[%s3449_s0 + $0x210] ss:$20 sps:$4 sm:$0xff]   ;;  %v2539_v47 = vld [vmem:[%s3449_s0 + $0x1c8] ss:$20 sps:$4 sm:$0xff]  }
  0x3b   :  { %2210 = vmatpush3.bf16.msra.mxu1 %v2454_v49  ;;  %920 = vmatprep.mubr.bf16.mxu0 %v2457_v51  ;;  %v2542_v49 = vld [vmem:[%s3449_s0 + $0x1f0] ss:$20 sps:$4 sm:$0xff]   ;;  %v2544_v51 = vld [vmem:[%s3449_s0 + $0x218] ss:$20 sps:$4 sm:$0xff]  }
  0x3c   :  { %2211 = vmatprep.subr.bf16.mxu1 %v2455_v50  ;;  %1049 = vmatprep.mubr.bf16.mxu1 %v2461_v53  ;;  %v2543_v50 = vld [vmem:[%s3449_s0 + $0x238] ss:$20 sps:$4 sm:$0xff]   ;;  %v2547_v53 = vld [vmem:[%s3449_s0 + $0x240] ss:$20 sps:$4 sm:$0xff]  }
  0x3d   :  { %2344 = vmatpush3.bf16.msra.mxu0 %v2483_v55  ;;  %v2549_v55 = vld [vmem:[%s3449_s0 + $0x268] ss:$20 sps:$4 sm:$0xff]  }
  0x3e   :  { %2345 = vmatprep.subr.bf16.mxu0 %v2496_v60 }
  0x3f   :  { %2212 = vmatpush3.bf16.msra.mxu1 %v2456_v54  ;;  %v2548_v54 = vld [vmem:[%s3449_s0 + $0x260] ss:$20 sps:$4 sm:$0xff]  }
  0x41   :  { %2346 = vmatpush3.bf16.msra.mxu0 %v2496_v60 }
  0x42   :  { %921 = vmatmul.mubr.bf16.gmra.mxu0 %v2462_v57  ;;  %1050 = vmatmul.mubr.bf16.vlgmr.msra.gmra.mxu1 %v2459_v56 }
  0x43   :  { %928 = vmatprep.mubr.bf16.mxu0 %v2464_v58  ;;  %1057 = vmatprep.mubr.bf16.mxu1 %v2466_v59 }
  0x44   :  { %2347 = vmatprep.subr.bf16.mxu0 %v2503_v62 }
  0x45   :  { %2348 = vmatpush3.bf16.msra.mxu0 %v2503_v62 }
  0x4a   :  { %929 = vmatmul.mubr.bf16.gmra.mxu0 %v2468_v61  ;;  %1058 = vmatmul.mubr.bf16.gmra.mxu1 %v2469_v63 }
  0x4b   :  { %936 = vmatprep.mubr.bf16.mxu0 %v2470_v0  ;;  %1065 = vmatprep.mubr.bf16.mxu1 %v2472_v1 }
  0x52   :  { %937 = vmatmul.mubr.bf16.gmra.mxu0 %v2474_v2  ;;  %1066 = vmatmul.mubr.bf16.gmra.mxu1 %v2475_v3 }
  0x53   :  { %944 = vmatprep.mubr.bf16.mxu0 %v2477_v4  ;;  %1073 = vmatprep.mubr.bf16.mxu1 %v2479_v5 }
  0x5a   :  { %945 = vmatmul.mubr.bf16.gmra.mxu0 %v2481_v6  ;;  %1074 = vmatmul.mubr.bf16.gmra.mxu1 %v2482_v7 }
  0x5b   :  { %952 = vmatprep.mubr.bf16.mxu0 %v2484_v8  ;;  %1081 = vmatprep.mubr.bf16.mxu1 %v2486_v9 }
  0x62   :  { %953 = vmatmul.mubr.bf16.gmra.mxu0 %v2488_v10  ;;  %1082 = vmatmul.mubr.bf16.gmra.mxu1 %v2489_v11 }
  0x63   :  { %960 = vmatprep.mubr.bf16.mxu0 %v2490_v12  ;;  %1089 = vmatprep.mubr.bf16.mxu1 %v2492_v13 }
  0x6a   :  { %961 = vmatmul.mubr.bf16.gmra.mxu0 %v2494_v14  ;;  %1090 = vmatmul.mubr.bf16.gmra.mxu1 %v2495_v15 }
  0x6b   :  { %968 = vmatprep.mubr.bf16.mxu0 %v2497_v16  ;;  %1097 = vmatprep.mubr.bf16.mxu1 %v2499_v17 }
  0x72   :  { %969 = vmatmul.mubr.bf16.gmra.mxu0 %v2501_v18  ;;  %1098 = vmatmul.mubr.bf16.gmra.mxu1 %v2502_v19 }
  0x73   :  { %976 = vmatprep.mubr.bf16.mxu0 %v2504_v20  ;;  %1105 = vmatprep.mubr.bf16.mxu1 %v2506_v21 }
  0x7a   :  { %977 = vmatmul.mubr.bf16.gmra.mxu0 %v2508_v22  ;;  %1106 = vmatmul.mubr.bf16.gmra.mxu1 %v2509_v23 }
  0x7b   :  { %1113 = vmatprep.mubr.bf16.mxu1 %v2510_v24  ;;  %2349 = vmatprep.mubr.bf16.mxu0 %v2512_v25 }
  0x82   :  { %1114 = vmatmul.mubr.bf16.gmra.mxu1 %v2513_v26  ;;  %2350 = vmatmul.mubr.bf16.vlgmr.msra.gmra.mxu0 %v2514_v27 }
  0x83   :  { %1121 = vmatprep.mubr.bf16.mxu1 %v2515_v28  ;;  %2353 = vmatprep.mubr.bf16.mxu0 %v2517_v29 }
  0x8a   :  { %1122 = vmatmul.mubr.bf16.gmra.mxu1 %v2518_v30  ;;  %2354 = vmatmul.mubr.bf16.gmra.mxu0 %v2519_v31 }
  0x8b   :  { %1129 = vmatprep.mubr.bf16.mxu1 %v2520_v32  ;;  %2357 = vmatprep.mubr.bf16.mxu0 %v2522_v33 }
  0x92   :  { %1130 = vmatmul.mubr.bf16.gmra.mxu1 %v2523_v34  ;;  %2358 = vmatmul.mubr.bf16.gmra.mxu0 %v2524_v35 }
  0x93   :  { %1137 = vmatprep.mubr.bf16.mxu1 %v2525_v36  ;;  %2361 = vmatprep.mubr.bf16.mxu0 %v2527_v37 }
  0x9a   :  { %1138 = vmatmul.mubr.bf16.gmra.mxu1 %v2528_v38  ;;  %2362 = vmatmul.mubr.bf16.gmra.mxu0 %v2529_v39 }
  0x9b   :  { %1145 = vmatprep.mubr.bf16.mxu1 %v2530_v40  ;;  %2365 = vmatprep.mubr.bf16.mxu0 %v2532_v41 }
  0xa2   :  { %1146 = vmatmul.mubr.bf16.gmra.mxu1 %v2533_v42  ;;  %2366 = vmatmul.mubr.bf16.gmra.mxu0 %v2534_v43 }
  0xa3   :  { %1153 = vmatprep.mubr.bf16.mxu1 %v2535_v44  ;;  %2369 = vmatprep.mubr.bf16.mxu0 %v2537_v45 }
  0xaa   :  { %1154 = vmatmul.mubr.bf16.gmra.mxu1 %v2538_v46  ;;  %2370 = vmatmul.mubr.bf16.gmra.mxu0 %v2539_v47 }
  0xab   :  { %1161 = vmatprep.mubr.bf16.mxu1 %v2540_v48  ;;  %2373 = vmatprep.mubr.bf16.mxu0 %v2542_v49 }
  0xb2   :  { %1162 = vmatmul.mubr.bf16.gmra.mxu1 %v2543_v50  ;;  %2374 = vmatmul.mubr.bf16.gmra.mxu0 %v2544_v51  ;;  %v2552_v51 = vmov 0.0  }
  0xb3   :  { %1169 = vmatprep.mubr.bf16.mxu1 %v2545_v52  ;;  %2377 = vmatprep.mubr.bf16.mxu0 %v2547_v53  ;;  %22 = vst [vmem:[#allocation3] sm:$0x1] %v2552_v51  ;;  %23 = vst [vmem:[#allocation4] sm:$0x1] %v2552_v51 }
  0xba   :  { %1170 = vmatmul.mubr.bf16.gmra.mxu1 %v2548_v54  ;;  %2378 = vmatmul.mubr.bf16.gmra.mxu0 %v2549_v55 }
  0xe2   :  { %v2101_v56 = vpop.f32.mrf.mxu0  ;;  %v2173_v57 = vpop.f32.mrf.mxu1 }
  0xe4   :  { %v2102_v58 = vpop.f32.mrf.mxu0  ;;  %v2174_v59 = vpop.f32.mrf.mxu1 }
  0xe5   :  { %v2103_v60 = vadd.f32 %v2102_v58, %v2101_v56  ;;  %v2938_v61 = vadd.f32 %v2174_v59, %v2173_v57 }
  0xe6   :  { %v2104_v62 = vpop.f32.mrf.mxu0  ;;  %v2176_v63 = vpop.f32.mrf.mxu1 }
  0xe7   :  { %3453 = vst [vmem:[#allocation5_spill] sm:$0xff] %v2938_v61 }
  0xe8   :  { %v2105_v0 = vpop.f32.mrf.mxu0  ;;  %v2177_v1 = vpop.f32.mrf.mxu1 }
  0xe9   :  { %v2940_v2 = vadd.f32 %v2105_v0, %v2104_v62  ;;  %v2942_v3 = vadd.f32 %v2177_v1, %v2176_v63 }
  0xea   :  { %v2107_v4 = vpop.f32.mrf.mxu0  ;;  %v2179_v5 = vpop.f32.mrf.mxu1 }
  0xeb   :  { %3454 = vst [vmem:[#allocation6_spill] sm:$0xff] %v2942_v3 }
  0xec   :  { %v2108_v6 = vpop.f32.mrf.mxu0  ;;  %v2180_v7 = vpop.f32.mrf.mxu1 }
  0xed   :  { %v2944_v8 = vadd.f32 %v2108_v6, %v2107_v4  ;;  %v2946_v9 = vadd.f32 %v2180_v7, %v2179_v5 }
  0xee   :  { %v2110_v10 = vpop.f32.mrf.mxu0  ;;  %v2182_v11 = vpop.f32.mrf.mxu1 }
  0xef   :  { %3455 = vst [vmem:[#allocation7_spill] sm:$0xff] %v2946_v9 }
  0xf0   :  { %v2111_v12 = vpop.f32.mrf.mxu0  ;;  %v2183_v13 = vpop.f32.mrf.mxu1 }
  0xf1   :  { %v2948_v14 = vadd.f32 %v2111_v12, %v2110_v10  ;;  %v2950_v15 = vadd.f32 %v2183_v13, %v2182_v11 }
  0xf2   :  { %v2113_v16 = vpop.f32.mrf.mxu0  ;;  %v2185_v17 = vpop.f32.mrf.mxu1 }
  0xf3   :  { %3456 = vst [vmem:[#allocation8_spill] sm:$0xff] %v2950_v15 }
  0xf4   :  { %v2114_v18 = vpop.f32.mrf.mxu0  ;;  %v2186_v19 = vpop.f32.mrf.mxu1 }
  0xf5   :  { %v2952_v20 = vadd.f32 %v2114_v18, %v2113_v16  ;;  %v2954_v21 = vadd.f32 %v2186_v19, %v2185_v17 }
  0xf6   :  { %v2116_v22 = vpop.f32.mrf.mxu0  ;;  %v2188_v23 = vpop.f32.mrf.mxu1 }
  0xf7   :  { %3457 = vst [vmem:[#allocation9_spill] sm:$0xff] %v2954_v21 }
  0xf8   :  { %v2117_v24 = vpop.f32.mrf.mxu0  ;;  %v2189_v25 = vpop.f32.mrf.mxu1 }
  0xf9   :  { %v2956_v26 = vadd.f32 %v2117_v24, %v2116_v22  ;;  %v2958_v27 = vadd.f32 %v2189_v25, %v2188_v23 }
  0xfa   :  { %v2119_v28 = vpop.f32.mrf.mxu0  ;;  %v2191_v29 = vpop.f32.mrf.mxu1 }
  0xfb   :  { %3458 = vst [vmem:[#allocation10_spill] sm:$0xff] %v2958_v27 }
  0xfc   :  { %v2120_v30 = vpop.f32.mrf.mxu0  ;;  %v2192_v31 = vpop.f32.mrf.mxu1 }
  0xfd   :  { %v2960_v32 = vadd.f32 %v2120_v30, %v2119_v28  ;;  %v2962_v33 = vadd.f32 %v2192_v31, %v2191_v29 }
  0xfe   :  { %v2122_v34 = vpop.f32.mrf.mxu0  ;;  %v2194_v35 = vpop.f32.mrf.mxu1 }
  0xff   :  { %3459 = vst [vmem:[#allocation11_spill] sm:$0xff] %v2962_v33 }
 0x100   :  { %v2123_v36 = vpop.f32.mrf.mxu0  ;;  %v2195_v37 = vpop.f32.mrf.mxu1 }
 0x101   :  { %v2964_v38 = vadd.f32 %v2123_v36, %v2122_v34  ;;  %v2966_v39 = vadd.f32 %v2195_v37, %v2194_v35 }
 0x102   :  { %v2125_v40 = vpop.f32.mrf.mxu0  ;;  %v2213_v41 = vpop.f32.mrf.mxu1 }
 0x103   :  { %3460 = vst [vmem:[#allocation12_spill] sm:$0xff] %v2966_v39 }
 0x104   :  { %v2126_v42 = vpop.f32.mrf.mxu0  ;;  %v2214_v43 = vpop.f32.mrf.mxu1 }
 0x105   :  { %v2968_v44 = vadd.f32 %v2126_v42, %v2125_v40  ;;  %v2215_v45 = vadd.f32 %v2214_v43, %v2213_v41 }
 0x106   :  { %v2128_v46 = vpop.f32.mrf.mxu0  ;;  %v2970_v47 = vpop.f32.mrf.mxu1 }
 0x107   :  { %v2972_v48 = vadd.f32 %v2215_v45, %v2103_v60 }
 0x108   :  { %v2129_v49 = vpop.f32.mrf.mxu0  ;;  %v2974_v50 = vpop.f32.mrf.mxu1 }
 0x109   :  { %v2976_v52 = vadd.f32 %v2129_v49, %v2128_v46 }
 0x10a   :  { %v2131_v53 = vpop.f32.mrf.mxu0  ;;  %v2978_v54 = vpop.f32.mrf.mxu1 }
 0x10c   :  { %v2132_v55 = vpop.f32.mrf.mxu0  ;;  %v2220_v56 = vpop.f32.mrf.mxu1 }
 0x10d   :  { %v2980_v57 = vadd.f32 %v2132_v55, %v2131_v53 }
 0x10e   :  { %v2134_v58 = vpop.f32.mrf.mxu0  ;;  %v2222_v59 = vpop.f32.mrf.mxu1 }
 0x110   :  { %v2135_v62 = vpop.f32.mrf.mxu0  ;;  %v2223_v60 = vpop.f32.mrf.mxu1 }
 0x111   :  { %v2982_v63 = vadd.f32 %v2135_v62, %v2134_v58 }
 0x112   :  { %v2137_v0 = vpop.f32.mrf.mxu0  ;;  %v2984_v1 = vpop.f32.mrf.mxu1 }
 0x114   :  { %v2138_v4 = vpop.f32.mrf.mxu0  ;;  %v2226_v5 = vpop.f32.mrf.mxu1 }
 0x115   :  { %v2986_v6 = vadd.f32 %v2138_v4, %v2137_v0 }
 0x116   :  { %v2140_v7 = vpop.f32.mrf.mxu0  ;;  %v2988_v10 = vpop.f32.mrf.mxu1 }
 0x118   :  { %v2141_v11 = vpop.f32.mrf.mxu0  ;;  %v2990_v12 = vpop.f32.mrf.mxu1 }
 0x119   :  { %v2992_v13 = vadd.f32 %v2141_v11, %v2140_v7 }
 0x11a   :  { %v2143_v16 = vpop.f32.mrf.mxu0  ;;  %v2994_v17 = vpop.f32.mrf.mxu1 }
 0x11c   :  { %v2144_v18 = vpop.f32.mrf.mxu0  ;;  %v2996_v19 = vpop.f32.mrf.mxu1 }
 0x11d   :  { %v2998_v22 = vadd.f32 %v2144_v18, %v2143_v16 }
 0x11e   :  { %v2146_v23 = vpop.f32.mrf.mxu0  ;;  %v3000_v24 = vpop.f32.mrf.mxu1 }
 0x120   :  { %v2147_v25 = vpop.f32.mrf.mxu0  ;;  %v3002_v28 = vpop.f32.mrf.mxu1 }
 0x121   :  { %v3004_v29 = vadd.f32 %v2147_v25, %v2146_v23 }
 0x122   :  { %v3006_v30 = vpop.f32.mrf.mxu0  ;;  %v3008_v31 = vpop.f32.mrf.mxu1 }
 0x124   :  { %v3010_v34 = vpop.f32.mrf.mxu0  ;;  %v3012_v35 = vpop.f32.mrf.mxu1 }
 0x126   :  { %v3014_v36 = vpop.f32.mrf.mxu0  ;;  %v3016_v37 = vpop.f32.mrf.mxu1 }
 0x128   :  { %v3018_v40 = vpop.f32.mrf.mxu0  ;;  %v3020_v41 = vpop.f32.mrf.mxu1 }
 0x12a   :  { %v3022_v42 = vpop.f32.mrf.mxu0  ;;  %v3024_v43 = vpop.f32.mrf.mxu1 }
 0x12b   :  { %3461 = vst [vmem:[#allocation13_spill] sm:$0xff] %v3022_v42 }
 0x12c   :  { %v3026_v45 = vpop.f32.mrf.mxu0  ;;  %v3028_v46 = vpop.f32.mrf.mxu1 }
 0x12d   :  { %3462 = vst [vmem:[#allocation14_spill] sm:$0xff] %v3026_v45  ;;  %v2227_v45 = vadd.f32 %v2226_v5, %v2984_v1 }
 0x12e   :  { %v3030_v49 = vpop.f32.mrf.mxu0  ;;  %v3032_v51 = vpop.f32.mrf.mxu1 }
 0x12f   :  { %3463 = vst [vmem:[#allocation15_spill] sm:$0xff] %v3030_v49  ;;  %v1068_v5 = vadd.f32 %v2227_v45, %v2952_v20  ;;  %v2239_v45 = vadd.f32 %v3012_v35, %v3008_v31  ;;  %v2242_v35 = vadd.f32 %v3020_v41, %v3016_v37 }
 0x130   :  { %v3034_v53 = vpop.f32.mrf.mxu0  ;;  %v3036_v55 = vpop.f32.mrf.mxu1 }
 0x131   :  { %3464 = vst [vmem:[#allocation16_spill] sm:$0xff] %v3034_v53 }
 0x132   :  { %v3038_v58 = vpop.f32.mrf.mxu0  ;;  %v3040_v62 = vpop.f32.mrf.mxu1 }
 0x133   :  { %3465 = vst [vmem:[#allocation17_spill] sm:$0xff] %v3038_v58 }
 0x134   :  { %v3042_v0 = vpop.f32.mrf.mxu0  ;;  %v3044_v4 = vpop.f32.mrf.mxu1 }
 0x135   :  { %3466 = vst [vmem:[#allocation18_spill] sm:$0xff] %v3042_v0  ;;  %v2224_v0 = vadd.f32 %v2223_v60, %v2222_v59 }
 0x136   :  { %v3046_v7 = vpop.f32.mrf.mxu0  ;;  %v3048_v11 = vpop.f32.mrf.mxu1 }
 0x137   :  { %3467 = vst [vmem:[#allocation19_spill] sm:$0xff] %v3046_v7 }
 0x138   :  { %v3050_v16 = vpop.f32.mrf.mxu0  ;;  %v3052_v18 = vpop.f32.mrf.mxu1 }
 0x139   :  { %3468 = vst [vmem:[#allocation20_spill] sm:$0xff] %v3050_v16  ;;  %v2221_v16 = vadd.f32 %v2220_v56, %v2978_v54  ;;  %v1063_v54 = vadd.f32 %v2224_v0, %v2948_v14  ;;  %v2233_v14 = vadd.f32 %v2996_v19, %v2994_v17 }
 0x13a   :  { %v3054_v23 = vpop.f32.mrf.mxu0  ;;  %v3056_v25 = vpop.f32.mrf.mxu1 }
 0x13b   :  { %3469 = vst [vmem:[#allocation21_spill] sm:$0xff] %v3054_v23  ;;  %v2218_v23 = vadd.f32 %v2974_v50, %v2970_v47  ;;  %v1060_v53 = vadd.f32 %v2221_v16, %v2944_v8  ;;  %v2236_v16 = vadd.f32 %v3002_v28, %v3000_v24 }
 0x13c   :  { %v3058_v39 = vpop.f32.mrf.mxu0  ;;  %v3060_v27 = vpop.f32.mrf.mxu1 }
 0x13d   :  { %3470 = vst [vmem:[#allocation22_spill] sm:$0xff] %v3058_v39  ;;  %v1055_v49 = vadd.f32 %v2218_v23, %v2940_v2 }
 0x13e   :  { %v3062_v33 = vpop.f32.mrf.mxu0  ;;  %v3064_v21 = vpop.f32.mrf.mxu1 }
 0x13f   :  { %3471 = vst [vmem:[#allocation23_spill] sm:$0xff] %v3062_v33 }
 0x140   :  { %v3066_v15 = vpop.f32.mrf.mxu0  ;;  %v3068_v3 = vpop.f32.mrf.mxu1 }
 0x141   :  { %3472 = vst [vmem:[#allocation24_spill] sm:$0xff] %v3066_v15 }
 0x142   :  { %v3070_v9 = vpop.f32.mrf.mxu1  ;;  %v2351_v61 = vpop.f32.mrf.mxu0 }
 0x143   :  { %v3087_v50 = vadd.f32 %v2351_v61, %v1060_v53  ;;  %v2230_v61 = vadd.f32 %v2990_v12, %v2988_v10 }
 0x144   :  { %v3075_v7 = vpop.f32.mrf.mxu1  ;;  %v1212_v39 = vpop.f32.mrf.mxu0 }
 0x145   :  { %v3081_v15 = vadd.f32 %v1212_v39, %v2972_v48  ;;  %v1071_v24 = vadd.f32 %v2230_v61, %v2956_v26  ;;  %v2245_v26 = vadd.f32 %v3028_v46, %v3024_v43 }
 0x146   :  { %v3077_v58 = vpop.f32.mrf.mxu1  ;;  %v2352_v33 = vpop.f32.mrf.mxu0 }
 0x147   :  { %v1414_v8 = vmul.f32 %v3081_v15, %v3081_v15  ;;  %v3096_v39 = vadd.f32 %v2352_v33, %v1063_v54  ;;  %v1416_v33 = vmul.f32 %v3087_v50, %v3087_v50 }
 0x148   :  { %v3085_v42 = vpop.f32.mrf.mxu1  ;;  %v1215_v47 = vpop.f32.mrf.mxu0 }
 0x149   :  { %v3090_v56 = vadd.f32 %v1215_v47, %v1055_v49  ;;  %v1417_v17 = vmul.f32 %v3096_v39, %v3096_v39  ;;  %v1076_v47 = vadd.f32 %v2233_v14, %v2960_v32 }
 0x14a   :  { %v3092_v59 = vpop.f32.mrf.mxu1  ;;  %v2355_v60 = vpop.f32.mrf.mxu0 }
 0x14b   :  { %v1374_v2 = vadd.f32 %v3090_v56, %v3081_v15  ;;  %v1415_v48 = vmul.f32 %v3090_v56, %v3090_v56 }
 0x14c   :  { %v3106_v1 = vpop.f32.mrf.mxu1  ;;  %v1228_v49 = vpop.f32.mrf.mxu0 }
 0x14d   :  { %v1375_v53 = vadd.f32 %v1374_v2, %v3087_v50  ;;  %v1446_v0 = vadd.f32 %v1415_v48, %v1414_v8  ;;  %v3114_v23 = vadd.f32 %v1228_v49, %v1068_v5  ;;  %v3130_v5 = vadd.f32 %v2355_v60, %v1076_v47 }
 0x14e   :  { %v3116_v10 = vpop.f32.mrf.mxu1  ;;  %v2356_v12 = vpop.f32.mrf.mxu0  ;;  %v1079_v49 = vadd.f32 %v2236_v16, %v2964_v38  ;;  %v1087_v47 = vadd.f32 %v2242_v35, %v2976_v52  ;;  %v2254_v35 = vadd.f32 %v3052_v18, %v3048_v11 }
 0x14f   :  { %v1447_v19 = vadd.f32 %v1446_v0, %v1416_v33  ;;  %v1376_v20 = vadd.f32 %v1375_v53, %v3096_v39  ;;  %v1418_v2 = vmul.f32 %v3114_v23, %v3114_v23  ;;  %v1084_v0 = vadd.f32 %v2239_v45, %v2968_v44 }
 0x150   :  { %v3124_v54 = vpop.f32.mrf.mxu1  ;;  %v1231_v28 = vpop.f32.mrf.mxu0  ;;  %v3141_v14 = vadd.f32 %v2356_v12, %v1079_v49  ;;  %v1420_v37 = vmul.f32 %v3130_v5, %v3130_v5  ;;  %v2251_v44 = vadd.f32 %v3044_v4, %v3040_v62 }
 0x151   :  { %v1377_v8 = vadd.f32 %v1376_v20, %v3114_v23  ;;  %v1448_v48 = vadd.f32 %v1447_v19, %v1417_v17  ;;  %v3133_v33 = vadd.f32 %v1231_v28, %v1071_v24  ;;  %v2248_v17 = vadd.f32 %v3036_v55, %v3032_v51 }
 0x152   :  { %v3135_v31 = vpop.f32.mrf.mxu1  ;;  %v2359_v32 = vpop.f32.mrf.mxu0  ;;  %v1092_v20 = vadd.f32 %v2245_v26, %v2980_v57  ;;  %v1421_v51 = vmul.f32 %v3141_v14, %v3141_v14  ;;  %v2257_v26 = vadd.f32 %v3060_v27, %v3056_v25 }
 0x153   :  { %v1449_v61 = vadd.f32 %v1448_v48, %v1418_v2  ;;  %v1378_v53 = vadd.f32 %v1377_v8, %v3133_v33  ;;  %v1419_v60 = vmul.f32 %v3133_v33, %v3133_v33  ;;  %v1095_v8 = vadd.f32 %v2248_v17, %v2982_v63 }
 0x154   :  { %v3146_v38 = vpop.f32.mrf.mxu1  ;;  %v1244_v16 = vpop.f32.mrf.mxu0  ;;  %v3170_v48 = vadd.f32 %v2359_v32, %v1092_v20  ;;  %v2260_v17 = vadd.f32 %v3068_v3, %v3064_v21 }
 0x155   :  { %v1379_v41 = vadd.f32 %v1378_v53, %v3130_v5  ;;  %v1450_v43 = vadd.f32 %v1449_v61, %v1419_v60  ;;  %v3154_v46 = vadd.f32 %v1244_v16, %v1084_v0  ;;  %v1100_v0 = vadd.f32 %v2251_v44, %v2986_v6 }
 0x156   :  { %v3156_v12 = vpop.f32.mrf.mxu1  ;;  %v2360_v19 = vpop.f32.mrf.mxu0  ;;  %v1424_v11 = vmul.f32 %v3170_v48, %v3170_v48  ;;  %v2263_v6 = vadd.f32 %v3075_v7, %v3070_v9 }
 0x157   :  { %v1451_v55 = vadd.f32 %v1450_v43, %v1420_v37  ;;  %v1380_v45 = vadd.f32 %v1379_v41, %v3141_v14  ;;  %v1422_v57 = vmul.f32 %v3154_v46, %v3154_v46  ;;  %v3183_v61 = vadd.f32 %v2360_v19, %v1095_v8 }
 0x158   :  { %v3165_v24 = vpop.f32.mrf.mxu1  ;;  %v1247_v28 = vpop.f32.mrf.mxu0  ;;  %v1108_v43 = vadd.f32 %v2257_v26, %v2998_v22  ;;  %v1103_v19 = vadd.f32 %v2254_v35, %v2992_v13 }
 0x159   :  { %v3168_v2 = vadd.f32 %v1247_v28, %v1087_v47  ;;  %v1381_v52 = vadd.f32 %v1380_v45, %v3154_v46  ;;  %v1452_v62 = vadd.f32 %v1451_v55, %v1421_v51  ;;  %v1425_v3 = vmul.f32 %v3183_v61, %v3183_v61 }
 0x15a   :  { %v3175_v4 = vpop.f32.mrf.mxu1  ;;  %v2363_v49 = vpop.f32.mrf.mxu0  ;;  %v2151_v51 = vadd.f32 %v3010_v34, %v3006_v30  ;;  %v1111_v55 = vadd.f32 %v2260_v17, %v3004_v29  ;;  %v2269_v30 = vadd.f32 %v3106_v1, %v3092_v59 }
 0x15b   :  { %v1423_v63 = vmul.f32 %v3168_v2, %v3168_v2  ;;  %v1453_v32 = vadd.f32 %v1452_v62, %v1422_v57  ;;  %v1382_v53 = vadd.f32 %v1381_v52, %v3168_v2  ;;  %v3210_v22 = vadd.f32 %v2363_v49, %v1108_v43 }
 0x15c   :  { %v3186_v60 = vpop.f32.mrf.mxu1  ;;  %v1260_v16 = vpop.f32.mrf.mxu0  ;;  %v2266_v52 = vadd.f32 %v3085_v42, %v3077_v58  ;;  %v1116_v35 = vadd.f32 %v2263_v6, %v2151_v51  ;;  %v2272_v58 = vadd.f32 %v3124_v54, %v3116_v10  ;;  %v2275_v43 = vadd.f32 %v3146_v38, %v3135_v31 }
 0x15d   :  { %v1383_v27 = vadd.f32 %v1382_v53, %v3170_v48  ;;  %v1454_v18 = vadd.f32 %v1453_v32, %v1423_v63  ;;  %v3194_v25 = vadd.f32 %v1260_v16, %v1100_v0  ;;  %v2154_v63 = vadd.f32 %v3018_v40, %v3014_v36  ;;  %v3473_v32 = vld [vmem:[#allocation13_spill] sm:$0xff]  ;;  %v3474_v53 = vld [vmem:[#allocation14_spill] sm:$0xff] }
 0x15e   :  { %v3196_v37 = vpop.f32.mrf.mxu1  ;;  %v2364_v41 = vpop.f32.mrf.mxu0  ;;  %v2157_v42 = vadd.f32 %v3474_v53, %v3473_v32  ;;  %v1428_v59 = vmul.f32 %v3210_v22, %v3210_v22  ;;  %v3479_v53 = vld [vmem:[#allocation19_spill] sm:$0xff] }
 0x15f   :  { %v1455_v21 = vadd.f32 %v1454_v18, %v1424_v11  ;;  %v1384_v20 = vadd.f32 %v1383_v27, %v3183_v61  ;;  %v1426_v9 = vmul.f32 %v3194_v25, %v3194_v25  ;;  %v3221_v57 = vadd.f32 %v2364_v41, %v1111_v55  ;;  %v3475_v27 = vld [vmem:[#allocation15_spill] sm:$0xff]  ;;  %v3476_v18 = vld [vmem:[#allocation16_spill] sm:$0xff] }
 0x160   :  { %v2283_v47 = vpop.f32.mrf.mxu1  ;;  %v1263_v44 = vpop.f32.mrf.mxu0  ;;  %v2160_v41 = vadd.f32 %v3476_v18, %v3475_v27  ;;  %v1124_v36 = vadd.f32 %v2269_v30, %v2157_v42  ;;  %v1119_v40 = vadd.f32 %v2266_v52, %v2154_v63  ;;  %v2278_v30 = vadd.f32 %v3165_v24, %v3156_v12  ;;  %v3480_v42 = vld [vmem:[#allocation20_spill] sm:$0xff] }
 0x161   :  { %v3208_v45 = vadd.f32 %v1263_v44, %v1103_v19  ;;  %v1385_v13 = vadd.f32 %v1384_v20, %v3194_v25  ;;  %v1456_v7 = vadd.f32 %v1455_v21, %v1425_v3  ;;  %v1429_v10 = vmul.f32 %v3221_v57, %v3221_v57  ;;  %v3477_v21 = vld [vmem:[#allocation17_spill] sm:$0xff]  ;;  %v3478_v20 = vld [vmem:[#allocation18_spill] sm:$0xff] }
 0x162   :  { %v2285_v28 = vpop.f32.mrf.mxu1  ;;  %v2367_v8 = vpop.f32.mrf.mxu0  ;;  %v2163_v44 = vadd.f32 %v3478_v20, %v3477_v21  ;;  %v1127_v51 = vadd.f32 %v2272_v58, %v2160_v41  ;;  %v2166_v58 = vadd.f32 %v3480_v42, %v3479_v53  ;;  %v2284_v24 = vadd.f32 %v2283_v47, %v3196_v37  ;;  %v3483_v41 = vld [vmem:[#allocation23_spill] sm:$0xff] }
 0x163   :  { %v1427_v29 = vmul.f32 %v3208_v45, %v3208_v45  ;;  %v1457_v34 = vadd.f32 %v1456_v7, %v1426_v9  ;;  %v1386_v62 = vadd.f32 %v1385_v13, %v3208_v45  ;;  %v3246_v13 = vadd.f32 %v2367_v8, %v1124_v36  ;;  %v3484_v36 = vld [vmem:[#allocation24_spill] sm:$0xff] }
 0x164   :  { %v2286_v49 = vpop.f32.mrf.mxu1  ;;  %v1276_v26 = vpop.f32.mrf.mxu0  ;;  %v1132_v63 = vadd.f32 %v2275_v43, %v2163_v44 }
 0x165   :  { %v1387_v1 = vadd.f32 %v1386_v62, %v3210_v22  ;;  %v1458_v0 = vadd.f32 %v1457_v34, %v1427_v29  ;;  %v3233_v16 = vadd.f32 %v1276_v26, %v1116_v35  ;;  %v2281_v29 = vadd.f32 %v3186_v60, %v3175_v4 }
 0x166   :  { %v2288_v17 = vpop.f32.mrf.mxu1  ;;  %v2368_v11 = vpop.f32.mrf.mxu0  ;;  %v1432_v4 = vmul.f32 %v3246_v13, %v3246_v13 }
 0x167   :  { %v1459_v54 = vadd.f32 %v1458_v0, %v1428_v59  ;;  %v1388_v19 = vadd.f32 %v1387_v1, %v3221_v57  ;;  %v1430_v31 = vmul.f32 %v3233_v16, %v3233_v16  ;;  %v3257_v8 = vadd.f32 %v2368_v11, %v1127_v51  ;;  %v3481_v59 = vld [vmem:[#allocation21_spill] sm:$0xff]  ;;  %v3482_v1 = vld [vmem:[#allocation22_spill] sm:$0xff] }
 0x168   :  { %v2289_v6 = vpop.f32.mrf.mxu1  ;;  %v1279_v3 = vpop.f32.mrf.mxu0  ;;  %v2169_v12 = vadd.f32 %v3482_v1, %v3481_v59 }
 0x169   :  { %v3244_v55 = vadd.f32 %v1279_v3, %v1119_v40  ;;  %v1389_v9 = vadd.f32 %v1388_v19, %v3233_v16  ;;  %v1460_v38 = vadd.f32 %v1459_v54, %v1429_v10  ;;  %v2172_v40 = vadd.f32 %v3484_v36, %v3483_v41 }
 0x16a   :  { %v2291_v7 = vpop.f32.mrf.mxu1  ;;  %v2371_v52 = vpop.f32.mrf.mxu0  ;;  %v1140_v43 = vadd.f32 %v2281_v29, %v2169_v12  ;;  %v1135_v10 = vadd.f32 %v2278_v30, %v2166_v58  ;;  %v2287_v54 = vadd.f32 %v2286_v49, %v2285_v28  ;;  %v1433_v19 = vmul.f32 %v3257_v8, %v3257_v8  ;;  %v3486_v12 = vld [vmem:[#allocation7_spill] sm:$0xff] }
 0x16b   :  { %v1431_v34 = vmul.f32 %v3244_v55, %v3244_v55  ;;  %v1461_v62 = vadd.f32 %v1460_v38, %v1430_v31  ;;  %v1390_v35 = vadd.f32 %v1389_v9, %v3244_v55  ;;  %v1143_v38 = vadd.f32 %v2284_v24, %v2172_v40 }
 0x16c   :  { %v2292_v26 = vpop.f32.mrf.mxu1  ;;  %v1292_v32 = vpop.f32.mrf.mxu0  ;;  %v3275_v20 = vadd.f32 %v2371_v52, %v1140_v43  ;;  %v2290_v30 = vadd.f32 %v2289_v6, %v2288_v17 }
 0x16d   :  { %v1391_v60 = vadd.f32 %v1390_v35, %v3246_v13  ;;  %v1462_v0 = vadd.f32 %v1461_v62, %v1431_v34  ;;  %v3268_v11 = vadd.f32 %v1292_v32, %v1132_v63  ;;  %v2293_v29 = vadd.f32 %v2292_v26, %v2291_v7  ;;  %v3485_v32 = vld [vmem:[#allocation5_spill] sm:$0xff] }
 0x16e   :  { %v2294_v27 = vpop.f32.mrf.mxu1  ;;  %v2372_v18 = vpop.f32.mrf.mxu0  ;;  %v1148_v53 = vadd.f32 %v2287_v54, %v3485_v32  ;;  %v1436_v58 = vmul.f32 %v3275_v20, %v3275_v20 }
 0x16f   :  { %v1463_v37 = vadd.f32 %v1462_v0, %v1432_v4  ;;  %v1392_v47 = vadd.f32 %v1391_v60, %v3257_v8  ;;  %v1434_v9 = vmul.f32 %v3268_v11, %v3268_v11  ;;  %v3284_v35 = vadd.f32 %v2372_v18, %v1143_v38  ;;  %v3487_v4 = vld [vmem:[#allocation6_spill] sm:$0xff] }
 0x170   :  { %v2295_v3 = vpop.f32.mrf.mxu1  ;;  %v1295_v21 = vpop.f32.mrf.mxu0  ;;  %v1156_v24 = vadd.f32 %v2293_v29, %v3486_v12  ;;  %v1151_v60 = vadd.f32 %v2290_v30, %v3487_v4  ;;  %v3489_v29 = vld [vmem:[#allocation9_spill] sm:$0xff] }
 0x171   :  { %v3277_v44 = vadd.f32 %v1295_v21, %v1135_v10  ;;  %v1393_v51 = vadd.f32 %v1392_v47, %v3268_v11  ;;  %v1464_v31 = vadd.f32 %v1463_v37, %v1433_v19  ;;  %v2296_v59 = vadd.f32 %v2295_v3, %v2294_v27  ;;  %v3488_v47 = vld [vmem:[#allocation8_spill] sm:$0xff] }
 0x172   :  { %v2297_v28 = vpop.f32.mrf.mxu1  ;;  %v2375_v49 = vpop.f32.mrf.mxu0  ;;  %v1437_v0 = vmul.f32 %v3284_v35, %v3284_v35 }
 0x173   :  { %v1435_v34 = vmul.f32 %v3277_v44, %v3277_v44  ;;  %v1465_v62 = vadd.f32 %v1464_v31, %v1434_v9  ;;  %v1394_v52 = vadd.f32 %v1393_v51, %v3277_v44  ;;  %v3298_v43 = vadd.f32 %v2375_v49, %v1156_v24 }
 0x174   :  { %v2298_v63 = vpop.f32.mrf.mxu1  ;;  %v1308_v42 = vpop.f32.mrf.mxu0  ;;  %v1159_v3 = vadd.f32 %v2296_v59, %v3488_v47 }
 0x175   :  { %v1395_v1 = vadd.f32 %v1394_v52, %v3275_v20  ;;  %v1466_v17 = vadd.f32 %v1465_v62, %v1435_v34  ;;  %v3291_v6 = vadd.f32 %v1308_v42, %v1148_v53  ;;  %v2299_v41 = vadd.f32 %v2298_v63, %v2297_v28 }
 0x176   :  { %v2300_v7 = vpop.f32.mrf.mxu1  ;;  %v2376_v26 = vpop.f32.mrf.mxu0  ;;  %v1440_v63 = vmul.f32 %v3298_v43, %v3298_v43 }
 0x177   :  { %v1467_v18 = vadd.f32 %v1466_v17, %v1436_v58  ;;  %v1396_v36 = vadd.f32 %v1395_v1, %v3284_v35  ;;  %v1438_v19 = vmul.f32 %v3291_v6, %v3291_v6  ;;  %v3308_v28 = vadd.f32 %v2376_v26, %v1159_v3  ;;  %v3490_v1 = vld [vmem:[#allocation11_spill] sm:$0xff] }
 0x178   :  { %v2301_v40 = vpop.f32.mrf.mxu1  ;;  %v1311_v27 = vpop.f32.mrf.mxu0  ;;  %v1164_v34 = vadd.f32 %v2299_v41, %v3489_v29 }
 0x179   :  { %v3300_v10 = vadd.f32 %v1311_v27, %v1151_v60  ;;  %v1397_v54 = vadd.f32 %v1396_v36, %v3291_v6  ;;  %v1468_v37 = vadd.f32 %v1467_v18, %v1437_v0  ;;  %v2302_v9 = vadd.f32 %v2301_v40, %v2300_v7  ;;  %v3491_v7 = vld [vmem:[#allocation10_spill] sm:$0xff] }
 0x17a   :  { %v2303_v21 = vpop.f32.mrf.mxu1  ;;  %v2379_v51 = vpop.f32.mrf.mxu0  ;;  %v1441_v12 = vmul.f32 %v3308_v28, %v3308_v28 }
 0x17b   :  { %v1439_v31 = vmul.f32 %v3300_v10, %v3300_v10  ;;  %v1469_v38 = vadd.f32 %v1468_v37, %v1438_v19  ;;  %v1398_v49 = vadd.f32 %v1397_v54, %v3300_v10  ;;  %v1167_v26 = vadd.f32 %v2302_v9, %v3491_v7  ;;  %v3492_v19 = vld [vmem:[#allocation12_spill] sm:$0xff] }
 0x17c   :  { %v2304_v30 = vpop.f32.mrf.mxu1  ;;  %v1324_v62 = vpop.f32.mrf.mxu0  ;;  %v1373_v7 = vld [vmem:[#allocation3] sm:$0x1] }
 0x17d   :  { %v2305_v52 = vadd.f32 %v2304_v30, %v2303_v21  ;;  %v1399_v32 = vadd.f32 %v1398_v49, %v3298_v43  ;;  %v1470_v53 = vadd.f32 %v1469_v38, %v1439_v31  ;;  %v3315_v42 = vadd.f32 %v1324_v62, %v1164_v34 }
 0x17e   :  { %v2306_v58 = vpop.f32.mrf.mxu1  ;;  %v2380_v59 = vpop.f32.mrf.mxu0 }
 0x17f   :  { %v1172_v17 = vadd.f32 %v2305_v52, %v3490_v1  ;;  %v1471_v24 = vadd.f32 %v1470_v53, %v1440_v63  ;;  %v1400_v4 = vadd.f32 %v1399_v32, %v3308_v28  ;;  %v1442_v27 = vmul.f32 %v3315_v42, %v3315_v42 }
 0x180   :  { %v2307_v60 = vpop.f32.mrf.mxu1  ;;  %v1327_v0 = vpop.f32.mrf.mxu0 }
 0x181   :  { %v2308_v18 = vadd.f32 %v2307_v60, %v2306_v58  ;;  %v3322_v41 = vadd.f32 %v1327_v0, %v1167_v26  ;;  %v3324_v36 = vadd.f32 %v2379_v51, %v1172_v17  ;;  %v1401_v40 = vadd.f32 %v1400_v4, %v3315_v42 }
 0x182   :  { %v1472_v54 = vadd.f32 %v1471_v24, %v1441_v12  ;;  %v1413_v24 = vld [vmem:[#allocation4] sm:$0x1] }
 0x183   :  { %v1175_v37 = vadd.f32 %v2308_v18, %v3492_v19  ;;  %v1443_v47 = vmul.f32 %v3322_v41, %v3322_v41  ;;  %v1402_v21 = vadd.f32 %v1401_v40, %v3322_v41  ;;  %v1444_v51 = vmul.f32 %v3324_v36, %v3324_v36 }
 0x184   :  { %v1473_v3 = vadd.f32 %v1472_v54, %v1442_v27 }
 0x185   :  { %v3333_v9 = vadd.f32 %v2380_v59, %v1175_v37  ;;  %v1403_v31 = vadd.f32 %v1402_v21, %v3324_v36  ;;  %v1535_v21 = vlaneseq }
 0x186   :  { %v1474_v38 = vadd.f32 %v1473_v3, %v1443_v47 }
 0x187   :  { %v1445_v49 = vmul.f32 %v3333_v9, %v3333_v9  ;;  %v1404_v30 = vadd.f32 %v1403_v31, %v3333_v9  ;;  %v1495_v31 = vld [vmem:[%s3450_s2] sm:$0x1] }
 0x188   :  { %v1475_v29 = vadd.f32 %v1474_v38, %v1444_v51  ;;  %v1536_v51 = vshrl.u32 %v1535_v21, 7 }
 0x189   :  { %v1405_v34 = vrot.slane %v1404_v30, 4 }
 0x18a   :  { %v1476_v62 = vadd.f32 %v1475_v29, %v1445_v49  ;;  %v1537_v38 = vsub.s32 0, %v1536_v51  ;;  %v1499_v29 = vld [vmem:[%s3451_s3] sm:$0x1] }
 0x18b   :  { %v1406_v52 = vadd.f32 %v1405_v34, %v1404_v30 }
 0x18c   :  { %v1477_v63 = vrot.slane %v1476_v62, 4 }
 0x18d   :  { %v1407_v32 = vrot.slane %v1406_v52, 2 }
 0x18e   :  { %v1478_v53 = vadd.f32 %v1477_v63, %v1476_v62 }
 0x18f   :  { %v1408_v58 = vadd.f32 %v1407_v32, %v1406_v52 }
 0x190   :  { %v1479_v59 = vrot.slane %v1478_v53, 2 }
 0x191   :  { %v1409_v1 = vrot.slane %v1408_v58, 1 }
 0x192   :  { %v1480_v17 = vadd.f32 %v1479_v59, %v1478_v53 }
 0x193   :  { %v1410_v26 = vadd.f32 %v1409_v1, %v1408_v58 }
 0x194   :  { %v1481_v12 = vrot.slane %v1480_v17, 1 }
 0x195   :  { %v1411_v4 = vadd.f32 %v1410_v26, %v1373_v7 }
 0x196   :  { %v1482_v60 = vadd.f32 %v1481_v12, %v1480_v17 }
 0x197   :  { %1412 = vst [vmem:[#allocation3] sm:$0x1] %v1411_v4 }
 0x198   :  { %v1483_v0 = vadd.f32 %v1482_v60, %v1413_v24 }
 0x19a   :  { %1484 = vst [vmem:[#allocation4] sm:$0x1] %v1483_v0 }
 0x19e   :  { %v1488_v18 = vld [vmem:[#allocation3] sm:$0x1] }
 0x19f   :  { %v1489_v40 = vmul.f32 0.125, %v1488_v18 }
 0x1a1   :  { %v1490_v27 = vld [vmem:[#allocation4] sm:$0x1]  ;;  %v1492_v19 = vmul.f32 %v1489_v40, %v1489_v40 }
 0x1a2   :  { %v1491_v54 = vmul.f32 0.125, %v1490_v27 }
 0x1a4   :  { %v1493_v37 = vsub.f32 %v1491_v54, %v1492_v19 }
 0x1a6   :  { %v1494_v47 = vmax.f32 %v1493_v37, 0.0 }
 0x1a8   :  { %v1496_v3 = vadd.f32 1e-05, %v1494_v47 }
 0x1aa   :  { %2550 = vrsqrt.f32 %v1496_v3 }
 0x1b7   :  { %v2551_v49 = vpop.eup %2550 }
 0x1b8   :  { %v1498_v30 = vmul.f32 %v2551_v49, %v1495_v31 }
 0x1ba   :  { %v1500_v34 = vmul.f32 %v1498_v30, %v1489_v40  ;;  %v1538_v62 = vrot.slane %v1498_v30, %v1537_v38 }
 0x1bc   :  { %v1501_v52 = vsub.f32 %v1499_v29, %v1500_v34  ;;  %v1540_v63 = vmul.f32 %v1538_v62, %v3081_v15  ;;  %v1541_v32 = vmul.f32 %v1538_v62, %v3090_v56  ;;  %v1542_v53 = vmul.f32 %v1538_v62, %v3087_v50 }
 0x1bd   :  { %v1543_v58 = vmul.f32 %v1538_v62, %v3096_v39  ;;  %v1544_v59 = vmul.f32 %v1538_v62, %v3114_v23  ;;  %v1545_v1 = vmul.f32 %v1538_v62, %v3133_v33  ;;  %v1546_v17 = vmul.f32 %v1538_v62, %v3130_v5 }
 0x1be   :  { %v1547_v7 = vmul.f32 %v1538_v62, %v3141_v14  ;;  %v1548_v26 = vmul.f32 %v1538_v62, %v3154_v46  ;;  %v1549_v12 = vmul.f32 %v1538_v62, %v3168_v2  ;;  %v1550_v15 = vmul.f32 %v1538_v62, %v3170_v48 }
 0x1bf   :  { %v1551_v56 = vmul.f32 %v1538_v62, %v3183_v61  ;;  %v1552_v50 = vmul.f32 %v1538_v62, %v3194_v25  ;;  %v1553_v39 = vmul.f32 %v1538_v62, %v3208_v45  ;;  %v1554_v23 = vmul.f32 %v1538_v62, %v3210_v22 }
 0x1c0   :  { %v1555_v33 = vmul.f32 %v1538_v62, %v3221_v57  ;;  %v1556_v5 = vmul.f32 %v1538_v62, %v3233_v16  ;;  %v1557_v14 = vmul.f32 %v1538_v62, %v3244_v55  ;;  %v1558_v46 = vmul.f32 %v1538_v62, %v3246_v13 }
 0x1c1   :  { %v1559_v2 = vmul.f32 %v1538_v62, %v3257_v8  ;;  %v1560_v48 = vmul.f32 %v1538_v62, %v3268_v11  ;;  %v1561_v61 = vmul.f32 %v1538_v62, %v3277_v44  ;;  %v1562_v25 = vmul.f32 %v1538_v62, %v3275_v20 }
 0x1c2   :  { %v1563_v45 = vmul.f32 %v1538_v62, %v3284_v35  ;;  %v1564_v22 = vmul.f32 %v1538_v62, %v3291_v6  ;;  %v1565_v57 = vmul.f32 %v1538_v62, %v3300_v10  ;;  %v1566_v16 = vmul.f32 %v1538_v62, %v3298_v43 }
 0x1c3   :  { %v1567_v55 = vmul.f32 %v1538_v62, %v3308_v28  ;;  %v1576_v24 = vrot.slane %v1501_v52, %v1537_v38  ;;  %v1568_v13 = vmul.f32 %v1538_v62, %v3315_v42  ;;  %v1569_v8 = vmul.f32 %v1538_v62, %v3322_v41 }
 0x1c4   :  { %v1570_v11 = vmul.f32 %v1538_v62, %v3324_v36  ;;  %v1571_v44 = vmul.f32 %v1538_v62, %v3333_v9 }
 0x1c5   :  { %v3379_v20 = vadd.f32 %v1576_v24, %v1540_v63  ;;  %v3381_v35 = vadd.f32 %v1576_v24, %v1541_v32  ;;  %v3383_v6 = vadd.f32 %v1576_v24, %v1542_v53  ;;  %v3385_v10 = vadd.f32 %v1576_v24, %v1543_v58 }
 0x1c6   :  { %v3387_v43 = vadd.f32 %v1576_v24, %v1544_v59  ;;  %v3389_v28 = vadd.f32 %v1576_v24, %v1545_v1  ;;  %v3391_v4 = vadd.f32 %v1576_v24, %v1546_v17  ;;  %v1585_v42 = vadd.f32 %v1576_v24, %v1547_v7 }
 0x1c7   :  { %v1586_v41 = vadd.f32 %v1576_v24, %v1548_v26  ;;  %v1587_v60 = vadd.f32 %v1576_v24, %v1549_v12  ;;  %v1588_v36 = vadd.f32 %v1576_v24, %v1550_v15  ;;  %v1589_v0 = vadd.f32 %v1576_v24, %v1551_v56 }
 0x1c8   :  { %v1590_v9 = vadd.f32 %v1576_v24, %v1552_v50  ;;  %v1591_v18 = vadd.f32 %v1576_v24, %v1553_v39  ;;  %v1592_v40 = vadd.f32 %v1576_v24, %v1554_v23  ;;  %v1593_v27 = vadd.f32 %v1576_v24, %v1555_v33 }
 0x1c9   :  { %v1594_v54 = vadd.f32 %v1576_v24, %v1556_v5  ;;  %v1595_v19 = vadd.f32 %v1576_v24, %v1557_v14  ;;  %v1596_v37 = vadd.f32 %v1576_v24, %v1558_v46  ;;  %v1597_v47 = vadd.f32 %v1576_v24, %v1559_v2 }
 0x1ca   :  { %v1598_v3 = vadd.f32 %v1576_v24, %v1560_v48  ;;  %v1599_v21 = vadd.f32 %v1576_v24, %v1561_v61  ;;  %v1600_v51 = vadd.f32 %v1576_v24, %v1562_v25  ;;  %v1601_v31 = vadd.f32 %v1576_v24, %v1563_v45 }
 0x1cb   :  { %v1602_v38 = vadd.f32 %v1576_v24, %v1564_v22  ;;  %v1603_v49 = vadd.f32 %v1576_v24, %v1565_v57  ;;  %v1604_v30 = vadd.f32 %v1576_v24, %v1566_v16  ;;  %v1605_v29 = vadd.f32 %v1576_v24, %v1567_v55 }
 0x1cc   :  { %v1606_v34 = vadd.f32 %v1576_v24, %v1568_v13  ;;  %v1607_v62 = vadd.f32 %v1576_v24, %v1569_v8  ;;  %v1608_v52 = vadd.f32 %v1576_v24, %v1570_v11  ;;  %v1609_v63 = vadd.f32 %v1576_v24, %v1571_v44 }
 0x1cd   :  { %v1610_v32 = vmax.f32 %v3379_v20, 0.0  ;;  %v1611_v53 = vmax.f32 %v3381_v35, 0.0  ;;  %v1612_v58 = vmax.f32 %v3383_v6, 0.0  ;;  %v1613_v59 = vmax.f32 %v3385_v10, 0.0 }
 0x1ce   :  { %v1614_v1 = vmax.f32 %v3387_v43, 0.0  ;;  %v1615_v17 = vmax.f32 %v3389_v28, 0.0  ;;  %v1616_v7 = vmax.f32 %v3391_v4, 0.0  ;;  %v1617_v26 = vmax.f32 %v1585_v42, 0.0 }
 0x1cf   :  { %v1618_v12 = vmax.f32 %v1586_v41, 0.0  ;;  %v1619_v15 = vmax.f32 %v1587_v60, 0.0  ;;  %v1620_v56 = vmax.f32 %v1588_v36, 0.0  ;;  %v1621_v50 = vmax.f32 %v1589_v0, 0.0 }
 0x1d0   :  { %v1622_v39 = vmax.f32 %v1590_v9, 0.0  ;;  %v1623_v23 = vmax.f32 %v1591_v18, 0.0  ;;  %v1624_v33 = vmax.f32 %v1592_v40, 0.0  ;;  %v1625_v5 = vmax.f32 %v1593_v27, 0.0 }
 0x1d1   :  { %v1626_v14 = vmax.f32 %v1594_v54, 0.0  ;;  %v1627_v46 = vmax.f32 %v1595_v19, 0.0  ;;  %v1628_v2 = vmax.f32 %v1596_v37, 0.0  ;;  %v1629_v48 = vmax.f32 %v1597_v47, 0.0 }
 0x1d2   :  { %v1630_v61 = vmax.f32 %v1598_v3, 0.0  ;;  %v1631_v25 = vmax.f32 %v1599_v21, 0.0  ;;  %v1632_v45 = vmax.f32 %v1600_v51, 0.0  ;;  %v1633_v22 = vmax.f32 %v1601_v31, 0.0 }
 0x1d3   :  { %v1634_v57 = vmax.f32 %v1602_v38, 0.0  ;;  %v1635_v16 = vmax.f32 %v1603_v49, 0.0  ;;  %v1636_v55 = vmax.f32 %v1604_v30, 0.0  ;;  %v1637_v24 = vmax.f32 %v1605_v29, 0.0 }
 0x1d4   :  { %v1638_v13 = vmax.f32 %v1606_v34, 0.0  ;;  %v1639_v8 = vmax.f32 %v1607_v62, 0.0  ;;  %v1640_v11 = vmax.f32 %v1608_v52, 0.0  ;;  %v1641_v44 = vmax.f32 %v1609_v63, 0.0 }
 0x1d5   :  { %v1993_v20 = vpack.c.bf16 %v1611_v53, %v1610_v32  ;;  %v1998_v35 = vpack.c.bf16 %v1613_v59, %v1612_v58  ;;  %v2003_v6 = vpack.c.bf16 %v1615_v17, %v1614_v1  ;;  %v2008_v10 = vpack.c.bf16 %v1617_v26, %v1616_v7 }
 0x1d6   :  { %v2013_v43 = vpack.c.bf16 %v1619_v15, %v1618_v12  ;;  %v2018_v28 = vpack.c.bf16 %v1621_v50, %v1620_v56  ;;  %v2023_v4 = vpack.c.bf16 %v1623_v23, %v1622_v39  ;;  %v2028_v42 = vpack.c.bf16 %v1625_v5, %v1624_v33 }
 0x1d7   :  { %1994 = vst [vmem:[%s3452_s4] sm:$0xff] %v1993_v20   ;;  %2070 = vst [vmem:[%s3452_s4 + $0x8] sm:$0xff] %v1998_v35   ;;  %v2033_v41 = vpack.c.bf16 %v1627_v46, %v1626_v14  ;;  %v2038_v60 = vpack.c.bf16 %v1629_v48, %v1628_v2  ;;  %v2043_v36 = vpack.c.bf16 %v1631_v25, %v1630_v61 }
 0x1d8   :  { %2071 = vst [vmem:[%s3452_s4 + $0x10] sm:$0xff] %v2003_v6   ;;  %2072 = vst [vmem:[%s3452_s4 + $0x18] sm:$0xff] %v2008_v10   ;;  %v2048_v0 = vpack.c.bf16 %v1633_v22, %v1632_v45  ;;  %v2053_v9 = vpack.c.bf16 %v1635_v16, %v1634_v57  ;;  %v2058_v18 = vpack.c.bf16 %v1637_v24, %v1636_v55 }
 0x1d9   :  { %2073 = vst [vmem:[%s3452_s4 + $0x20] sm:$0xff] %v2013_v43   ;;  %2074 = vst [vmem:[%s3452_s4 + $0x28] sm:$0xff] %v2018_v28   ;;  %v2063_v40 = vpack.c.bf16 %v1639_v8, %v1638_v13  ;;  %v2068_v27 = vpack.c.bf16 %v1641_v44, %v1640_v11 }
 0x1da   :  { %2075 = vst [vmem:[%s3452_s4 + $0x30] sm:$0xff] %v2023_v4   ;;  %2076 = vst [vmem:[%s3452_s4 + $0x38] sm:$0xff] %v2028_v42  }
 0x1db   :  { %2077 = vst [vmem:[%s3452_s4 + $0x40] sm:$0xff] %v2033_v41   ;;  %2078 = vst [vmem:[%s3452_s4 + $0x48] sm:$0xff] %v2038_v60  }
 0x1dc   :  { %2079 = vst [vmem:[%s3452_s4 + $0x50] sm:$0xff] %v2043_v36   ;;  %2080 = vst [vmem:[%s3452_s4 + $0x58] sm:$0xff] %v2048_v0  }
 0x1dd   :  { %2081 = vst [vmem:[%s3452_s4 + $0x60] sm:$0xff] %v2053_v9   ;;  %2082 = vst [vmem:[%s3452_s4 + $0x68] sm:$0xff] %v2058_v18  }
 0x1de   :  { %2083 = vst [vmem:[%s3452_s4 + $0x70] sm:$0xff] %v2063_v40   ;;  %2084 = vst [vmem:[%s3452_s4 + $0x78] sm:$0xff] %v2068_v27  }

</bundles_post_ra>
